<compile_context>
chip_gen: v6e
topology: v6e:2x2x1
jax: 0.10.0
libtpu: 0.0.40
codegen_flags: <defaults>
</compile_context>

<pallas_src>
import math

import jax
import jax.numpy as jnp
from jax.experimental import pallas as pl
from jax.experimental.pallas import tpu as pltpu


# ----------------------------------------------------------------------------
# Small helpers
# ----------------------------------------------------------------------------

def _gelu(x):
    # TODO(synk): PyTorch F.gelu defaults to the erf-exact form; tanh
    # approximation is used here for guaranteed Mosaic lowering (EUP tanh).
    c = 0.7978845608028654  # sqrt(2/pi)
    return 0.5 * x * (1.0 + jnp.tanh(c * (x + 0.044715 * x * x * x)))


# ----------------------------------------------------------------------------
# Config / params
# ----------------------------------------------------------------------------

class CharGPTConfig:
    def __init__(self, vocab=64, hidden=32, heads=4, layers=2, ffn=64,
                 rel_pos_bins=16, max_rel_pos=16, ln_eps=1e-6):
        assert hidden % heads == 0
        self.vocab = vocab
        self.hidden = hidden
        self.heads = heads
        self.layers = layers
        self.ffn = ffn
        self.rel_pos_bins = rel_pos_bins
        self.max_rel_pos = max_rel_pos
        self.ln_eps = ln_eps
        self.head_dim = hidden // heads


def init_params(cfg, seed=0):
    key = jax.random.PRNGKey(seed)

    def nrm(k, shape, std=0.02):
        return (std * jax.random.normal(k, shape)).astype(jnp.float32)

    H, dh, heads = cfg.hidden, cfg.head_dim, cfg.heads
    Ff, V, L = cfg.ffn, cfg.vocab, cfg.layers

    keys = jax.random.split(key, 4 + L)
    p = {}
    emb = nrm(keys[0], (V, H))
    emb = emb.at[0].set(0.0)                          # padding_idx = 0
    p["embedding"] = emb                              # lookup table (f32)
    # Tied decoder weight, pre-transposed once at init (no runtime .T),
    # stored bf16 for the MXU.
    p["emb_t"] = emb.T.astype(jnp.bfloat16)           # (H, V)
    p["rel_pos_emb"] = nrm(keys[1], (cfg.rel_pos_bins, heads))

    # Per-layer weights, stacked along a leading layer axis so the whole
    # decoder stack runs inside ONE pallas_call.  Per-head QKV / output
    # weights are pre-split so the kernel never slices the lane axis:
    #   w_q[li, h] corresponds to torch in_proj_weight[h*dh:(h+1)*dh, :].T
    wq, wk, wv, wo, wff1, wff2 = [], [], [], [], [], []
    for li in range(L):
        lk = jax.random.split(keys[2 + li], 4)
        w_in = nrm(lk[0], (H, 3 * H))
        wq.append(w_in[:, 0 * H:1 * H].reshape(H, heads, dh).transpose(1, 0, 2))
        wk.append(w_in[:, 1 * H:2 * H].reshape(H, heads, dh).transpose(1, 0, 2))
        wv.append(w_in[:, 2 * H:3 * H].reshape(H, heads, dh).transpose(1, 0, 2))
        wo.append(nrm(lk[1], (H, H)).reshape(heads, dh, H))
        wff1.append(nrm(lk[2], (H, Ff)))
        wff2.append(nrm(lk[3], (Ff, H)))

    p["stack"] = dict(
        w_q=jnp.stack(wq).astype(jnp.bfloat16),        # (L, heads, H, dh)
        w_k=jnp.stack(wk).astype(jnp.bfloat16),
        w_v=jnp.stack(wv).astype(jnp.bfloat16),
        b_q=jnp.zeros((L, heads, 1, dh), jnp.float32),
        b_k=jnp.zeros((L, heads, 1, dh), jnp.float32),
        b_v=jnp.zeros((L, heads, 1, dh), jnp.float32),
        w_o=jnp.stack(wo).astype(jnp.bfloat16),        # (L, heads, dh, H)
        b_o=jnp.zeros((L, 1, H), jnp.float32),
        ln1_g=jnp.ones((L, 1, H), jnp.float32),
        ln1_b=jnp.zeros((L, 1, H), jnp.float32),
        w_ff1=jnp.stack(wff1).astype(jnp.bfloat16),    # (L, H, Ff)
        b_ff1=jnp.zeros((L, 1, Ff), jnp.float32),
        w_ff2=jnp.stack(wff2).astype(jnp.bfloat16),    # (L, Ff, H)
        b_ff2=jnp.zeros((L, 1, H), jnp.float32),
        ln2_g=jnp.ones((L, 1, H), jnp.float32),
        ln2_b=jnp.zeros((L, 1, H), jnp.float32),
    )

    hk = jax.random.split(keys[2 + L], 2)
    p["head_w"] = nrm(hk[0], (H, H)).astype(jnp.bfloat16)   # BaseHeadTransform dense
    p["head_b"] = jnp.zeros((1, H), jnp.float32)
    p["head_ln_g"] = jnp.ones((1, H), jnp.float32)
    p["head_ln_b"] = jnp.zeros((1, H), jnp.float32)
    p["decoder_bias"] = jnp.zeros((1, V), jnp.float32)       # char_decoder_bias
    return p


def relative_position_bias(params, cfg, T):
    """(heads, T, T) additive bias from a bucketed relative-position table."""
    # TODO(synk): exact deepkin PositionEncoding bucketing unknown; using a
    # clipped relative-offset embedding table of size rel_pos_bins.
    pos = jnp.arange(T)
    rel = pos[None, :] - pos[:, None]                       # (T, T), j - i
    rel = jnp.clip(rel, -cfg.max_rel_pos, cfg.max_rel_pos)
    bucket = jnp.clip(rel + cfg.rel_pos_bins // 2, 0, cfg.rel_pos_bins - 1)
    bias = params["rel_pos_emb"][bucket]                    # (T, T, heads)
    return jnp.transpose(bias, (2, 0, 1)).astype(jnp.float32)


# ----------------------------------------------------------------------------
# Fully fused forward kernel (one pallas_call, grid over batch)
# ----------------------------------------------------------------------------

def char_gpt_fused_call(x, params, cfg, relpos, dec_mask, pad_bias,
                        targets, valid):
    """x: (B, T, H) f32. Returns per-batch (nll_part, smooth_part), each (B,1,1)."""
    B, T, H = x.shape
    heads, dh, Ff = cfg.heads, cfg.head_dim, cfg.ffn
    V, L = cfg.vocab, cfg.layers
    scale = 1.0 / math.sqrt(dh)
    eps = cfg.ln_eps
    st = params["stack"]

    def kernel(x_ref, relpos_ref, mask_ref, padb_ref, tgt_ref, val_ref,
               wq_ref, wk_ref, wv_ref, bq_ref, bk_ref, bv_ref,
               wo_ref, bo_ref, ln1g_ref, ln1b_ref,
               wff1_ref, bff1_ref, wff2_ref, bff2_ref, ln2g_ref, ln2b_ref,
               hw_ref, hb_ref, hg_ref, hbeta_ref, dw_ref, db_ref,
               nll_ref, sm_ref):
        x2 = x_ref[0]                                      # (T, H) f32

        # Layer-invariant additive attention bias, combined once and hoisted
        # out of the layer loop: causal (T,T) + key-padding (1,T) + rel-pos.
        key_bias = mask_ref[...] + padb_ref[0]             # (T, T) f32
        head_bias = [relpos_ref[h] + key_bias for h in range(heads)]

        # ---- decoder stack (static unroll over layers; x2 stays in VMEM) ----
        for li in range(L):
            xb = x2.astype(jnp.bfloat16)
            proj = jnp.zeros((T, H), jnp.float32)
            for h in range(heads):
                q = jnp.dot(xb, wq_ref[li, h],
                            preferred_element_type=jnp.float32) + bq_ref[li, h]
                k = jnp.dot(xb, wk_ref[li, h],
                            preferred_element_type=jnp.float32) + bk_ref[li, h]
                v = jnp.dot(xb, wv_ref[li, h],
                            preferred_element_type=jnp.float32) + bv_ref[li, h]
                s = jnp.dot(q.astype(jnp.bfloat16), (k.T).astype(jnp.bfloat16),
                            preferred_element_type=jnp.float32) * scale
                s = s + head_bias[h]
                s = s - jnp.max(s, axis=-1, keepdims=True)
                p = jnp.exp(s)
                p = p * pl.reciprocal(jnp.sum(p, axis=-1, keepdims=True),
                                      approx=True)
                o_h = jnp.dot(p.astype(jnp.bfloat16), v.astype(jnp.bfloat16),
                              preferred_element_type=jnp.float32)   # (T, dh)
                proj = proj + jnp.dot(o_h.astype(jnp.bfloat16), wo_ref[li, h],
                                      preferred_element_type=jnp.float32)
            proj = proj + bo_ref[li]

            # residual + LayerNorm 1 (fused)
            y = x2 + proj
            mu = jnp.mean(y, axis=-1, keepdims=True)
            var = jnp.mean((y - mu) * (y - mu), axis=-1, keepdims=True)
            y = (y - mu) * jax.lax.rsqrt(var + eps) * ln1g_ref[li] + ln1b_ref[li]

            # FFN (gelu)
            f1 = jnp.dot(y.astype(jnp.bfloat16), wff1_ref[li],
                         preferred_element_type=jnp.float32) + bff1_ref[li]
            f1 = _gelu(f1)
            f2 = jnp.dot(f1.astype(jnp.bfloat16), wff2_ref[li],
                         preferred_element_type=jnp.float32) + bff2_ref[li]

            # residual + LayerNorm 2 (fused)
            z = y + f2
            mu = jnp.mean(z, axis=-1, keepdims=True)
            var = jnp.mean((z - mu) * (z - mu), axis=-1, keepdims=True)
            x2 = (z - mu) * jax.lax.rsqrt(var + eps) * ln2g_ref[li] + ln2b_ref[li]

        # ---- BaseHeadTransform: dense -> gelu -> LayerNorm (fused) ----
        hs = jnp.dot(x2.astype(jnp.bfloat16), hw_ref[...],
                     preferred_element_type=jnp.float32) + hb_ref[...]
        hs = _gelu(hs)
        mu = jnp.mean(hs, axis=-1, keepdims=True)
        var = jnp.mean((hs - mu) * (hs - mu), axis=-1, keepdims=True)
        hs = (hs - mu) * jax.lax.rsqrt(var + eps) * hg_ref[...] + hbeta_ref[...]

        # ---- tied decoder (pre-transposed weight) + bias ----
        logits = jnp.dot(hs.astype(jnp.bfloat16), dw_ref[...],
                         preferred_element_type=jnp.float32) + db_ref[...]

        # ---- log_softmax + masked label-smoothed NLL partial sums ----
        m = jnp.max(logits, axis=-1, keepdims=True)
        lse = jnp.log(jnp.sum(jnp.exp(logits - m), axis=-1, keepdims=True)) + m
        lp = logits - lse                                   # (T, V)

        tgt = tgt_ref[0]                                    # (T, 1) int32
        val = val_ref[0]                                    # (T, 1) f32 mask
        col = jax.lax.broadcasted_iota(jnp.int32, (T, V), 1)
        tgt_lp = jnp.sum(jnp.where(col == tgt, lp, 0.0),
                         axis=-1, keepdims=True)            # (T, 1)
        nll_ref[0] = -jnp.sum(tgt_lp * val, axis=0, keepdims=True)
        sm_ref[0] = -jnp.sum(jnp.sum(lp, axis=-1, keepdims=True) * val,
                             axis=0, keepdims=True)

    def bcast(shape):
        nd = len(shape)
        return pl.BlockSpec(shape, lambda b, _nd=nd: (0,) * _nd)

    nll_part, sm_part = pl.pallas_call(
        kernel,
        out_shape=(jax.ShapeDtypeStruct((B, 1, 1), jnp.float32),
                   jax.ShapeDtypeStruct((B, 1, 1), jnp.float32)),
        grid=(B,),
        in_specs=[
            pl.BlockSpec((1, T, H), lambda b: (b, 0, 0)),        # x
            bcast((heads, T, T)),                                # rel-pos bias
            bcast((T, T)),                                       # causal mask
            pl.BlockSpec((1, 1, T), lambda b: (b, 0, 0)),        # key pad bias
            pl.BlockSpec((1, T, 1), lambda b: (b, 0, 0)),        # targets
            pl.BlockSpec((1, T, 1), lambda b: (b, 0, 0)),        # valid mask
            bcast((L, heads, H, dh)),                            # w_q
            bcast((L, heads, H, dh)),                            # w_k
            bcast((L, heads, H, dh)),                            # w_v
            bcast((L, heads, 1, dh)),                            # b_q
            bcast((L, heads, 1, dh)),                            # b_k
            bcast((L, heads, 1, dh)),                            # b_v
            bcast((L, heads, dh, H)),                            # w_o
            bcast((L, 1, H)),                                    # b_o
            bcast((L, 1, H)),                                    # ln1_g
            bcast((L, 1, H)),                                    # ln1_b
            bcast((L, H, Ff)),                                   # w_ff1
            bcast((L, 1, Ff)),                                   # b_ff1
            bcast((L, Ff, H)),                                   # w_ff2
            bcast((L, 1, H)),                                    # b_ff2
            bcast((L, 1, H)),                                    # ln2_g
            bcast((L, 1, H)),                                    # ln2_b
            bcast((H, H)),                                       # head_w
            bcast((1, H)),                                       # head_b
            bcast((1, H)),                                       # head_ln_g
            bcast((1, H)),                                       # head_ln_b
            bcast((H, V)),                                       # emb_t (tied)
            bcast((1, V)),                                       # decoder_bias
        ],
        out_specs=(pl.BlockSpec((1, 1, 1), lambda b: (b, 0, 0)),
                   pl.BlockSpec((1, 1, 1), lambda b: (b, 0, 0))),
        compiler_params=pltpu.CompilerParams(
            dimension_semantics=("parallel",)),                   # v7x: 2 TCs
    )(x, relpos, dec_mask, pad_bias, targets, valid,
      st["w_q"], st["w_k"], st["w_v"], st["b_q"], st["b_k"], st["b_v"],
      st["w_o"], st["b_o"], st["ln1_g"], st["ln1_b"],
      st["w_ff1"], st["b_ff1"], st["w_ff2"], st["b_ff2"],
      st["ln2_g"], st["ln2_b"],
      params["head_w"], params["head_b"],
      params["head_ln_g"], params["head_ln_b"],
      params["emb_t"], params["decoder_bias"])
    return nll_part, sm_part


# ----------------------------------------------------------------------------
# Forward (mirrors CharGPT.forward)
# ----------------------------------------------------------------------------

def char_gpt_forward(params, cfg, char_ids, char_id_lengths,
                     input_masks_padded, decoder_mask, epsilon_ls=0.1):
    """Returns (loss_avg, nll_loss_avg).

    char_ids:           (sum(lengths),) int32 concatenated sequences
    char_id_lengths:    python list of ints (static)
    input_masks_padded: (B, T) bool, True at padded key positions
    decoder_mask:       (T, T) float additive causal mask (0 / -1e9)
    """
    # TODO(synk): dropout in the PyTorch layer is omitted (eval-mode forward).
    lengths = [int(l) for l in char_id_lengths]
    B = len(lengths)
    T = max(lengths)
    H = cfg.hidden

    # Dense padded (B, T) id layout (only tiny int slices here; no per-sequence
    # activation padding / splitting in the hot path).
    rows = []
    start = 0
    for L in lengths:
        rows.append(jnp.pad(char_ids[start:start + L], (0, T - L)))
        start += L
    ids_padded = jnp.stack(rows, axis=0).astype(jnp.int32)       # (B, T)

    # Embedding lookup (row 0 is the zeroed padding vector).
    x = jnp.take(params["embedding"], ids_padded, axis=0)        # (B, T, H) f32

    # Attention biases: no (B*heads, T, T) duplication in HBM.
    relpos = relative_position_bias(params, cfg, T)              # (heads, T, T)
    dec_mask = decoder_mask.astype(jnp.float32)                  # (T, T)
    pad_bias = jnp.where(input_masks_padded, -1e9, 0.0)
    pad_bias = pad_bias.astype(jnp.float32).reshape(B, 1, T)     # (B, 1, T)

    # Next-char targets + per-row validity (first length-1 positions count).
    targets = jnp.concatenate(
        [ids_padded[:, 1:], jnp.zeros((B, 1), jnp.int32)], axis=1)   # (B, T)
    pos = jnp.arange(T)
    lengths_arr = jnp.array(lengths)
    valid = (pos[None, :] < (lengths_arr - 1)[:, None]).astype(jnp.float32)
    targets = targets.reshape(B, T, 1)
    valid = valid.reshape(B, T, 1)

    nll_part, sm_part = char_gpt_fused_call(
        x, params, cfg, relpos, dec_mask, pad_bias, targets, valid)
    nll_sum = jnp.sum(nll_part)
    smooth_sum = jnp.sum(sm_part)

    M = sum(L - 1 for L in lengths)                              # valid tokens
    eps_i = epsilon_ls / cfg.vocab
    # TODO(synk): deepkin's label_smoothed_nll_loss source not available;
    # returning per-token averages (matching the loss_avg / nll_loss_avg names
    # in the reference forward).
    loss_avg = ((1.0 - epsilon_ls) * nll_sum + eps_i * smooth_sum) / M
    nll_avg = nll_sum / M
    return loss_avg, nll_avg


# ----------------------------------------------------------------------------
# Main
# ----------------------------------------------------------------------------

if __name__ == "__main__":
    cfg = CharGPTConfig(vocab=64, hidden=32, heads=4, layers=2, ffn=64,
                        rel_pos_bins=16, max_rel_pos=16)
    params = init_params(cfg, seed=0)

    # Small deterministic example: batch=2 sequences of lengths [8, 6].
    char_id_lengths = [8, 6]
    B, T = len(char_id_lengths), max(char_id_lengths)
    key = jax.random.PRNGKey(0)
    char_ids = jax.random.randint(key, (sum(char_id_lengths),), 1, cfg.vocab,
                                  dtype=jnp.int32)

    pos = jnp.arange(T)
    input_masks_padded = pos[None, :] >= jnp.array(char_id_lengths)[:, None]  # (B,T)
    decoder_mask = jnp.where(pos[None, :] > pos[:, None], -1e9, 0.0)          # (T,T)

    loss, nll_loss = char_gpt_forward(params, cfg, char_ids, char_id_lengths,
                                      input_masks_padded, decoder_mask,
                                      epsilon_ls=0.1)
    jax.block_until_ready((loss, nll_loss))
    assert jnp.isfinite(loss) and jnp.isfinite(nll_loss)
    print("KERNEL_OK")
</pallas_src>

<mosaic_0001>
module attributes {stable_mosaic.version = 11 : i64} {
  func.func @kernel(%arg0: i32, %arg1: memref<1x8x32xf32, #tpu.memory_space<vmem>>, %arg2: memref<4x8x8xf32, #tpu.memory_space<vmem>>, %arg3: memref<8x8xf32, #tpu.memory_space<vmem>>, %arg4: memref<1x1x8xf32, #tpu.memory_space<vmem>>, %arg5: memref<1x8x1xi32, #tpu.memory_space<vmem>>, %arg6: memref<1x8x1xf32, #tpu.memory_space<vmem>>, %arg7: memref<2x4x32x8xbf16, #tpu.memory_space<vmem>>, %arg8: memref<2x4x32x8xbf16, #tpu.memory_space<vmem>>, %arg9: memref<2x4x32x8xbf16, #tpu.memory_space<vmem>>, %arg10: memref<2x4x1x8xf32, #tpu.memory_space<vmem>>, %arg11: memref<2x4x1x8xf32, #tpu.memory_space<vmem>>, %arg12: memref<2x4x1x8xf32, #tpu.memory_space<vmem>>, %arg13: memref<2x4x8x32xbf16, #tpu.memory_space<vmem>>, %arg14: memref<2x1x32xf32, #tpu.memory_space<vmem>>, %arg15: memref<2x1x32xf32, #tpu.memory_space<vmem>>, %arg16: memref<2x1x32xf32, #tpu.memory_space<vmem>>, %arg17: memref<2x32x64xbf16, #tpu.memory_space<vmem>>, %arg18: memref<2x1x64xf32, #tpu.memory_space<vmem>>, %arg19: memref<2x64x32xbf16, #tpu.memory_space<vmem>>, %arg20: memref<2x1x32xf32, #tpu.memory_space<vmem>>, %arg21: memref<2x1x32xf32, #tpu.memory_space<vmem>>, %arg22: memref<2x1x32xf32, #tpu.memory_space<vmem>>, %arg23: memref<32x32xbf16, #tpu.memory_space<vmem>>, %arg24: memref<1x32xf32, #tpu.memory_space<vmem>>, %arg25: memref<1x32xf32, #tpu.memory_space<vmem>>, %arg26: memref<1x32xf32, #tpu.memory_space<vmem>>, %arg27: memref<32x64xbf16, #tpu.memory_space<vmem>>, %arg28: memref<1x64xf32, #tpu.memory_space<vmem>>, %arg29: memref<1x1x1xf32, #tpu.memory_space<vmem>>, %arg30: memref<1x1x1xf32, #tpu.memory_space<vmem>>) attributes {dimension_semantics = [#tpu.dimension_semantics<parallel>], iteration_bounds = array<i64: 2>, scalar_prefetch = 0 : i64, scratch_operands = 0 : i64, tpu.core_type = #tpu.core_type<tc>, window_params = [{transform_indices = @transform_0, window_bounds = array<i64: 1, 8, 32>}, {pipeline_mode = #tpu.pipeline_mode<synchronous>, transform_indices = @transform_1, window_bounds = array<i64: 4, 8, 8>}, {pipeline_mode = #tpu.pipeline_mode<synchronous>, transform_indices = @transform_2, window_bounds = array<i64: 8, 8>}, {transform_indices = @transform_3, window_bounds = array<i64: 1, 1, 8>}, {transform_indices = @transform_4, window_bounds = array<i64: 1, 8, 1>}, {transform_indices = @transform_5, window_bounds = array<i64: 1, 8, 1>}, {pipeline_mode = #tpu.pipeline_mode<synchronous>, transform_indices = @transform_6, window_bounds = array<i64: 2, 4, 32, 8>}, {pipeline_mode = #tpu.pipeline_mode<synchronous>, transform_indices = @transform_7, window_bounds = array<i64: 2, 4, 32, 8>}, {pipeline_mode = #tpu.pipeline_mode<synchronous>, transform_indices = @transform_8, window_bounds = array<i64: 2, 4, 32, 8>}, {pipeline_mode = #tpu.pipeline_mode<synchronous>, transform_indices = @transform_9, window_bounds = array<i64: 2, 4, 1, 8>}, {pipeline_mode = #tpu.pipeline_mode<synchronous>, transform_indices = @transform_10, window_bounds = array<i64: 2, 4, 1, 8>}, {pipeline_mode = #tpu.pipeline_mode<synchronous>, transform_indices = @transform_11, window_bounds = array<i64: 2, 4, 1, 8>}, {pipeline_mode = #tpu.pipeline_mode<synchronous>, transform_indices = @transform_12, window_bounds = array<i64: 2, 4, 8, 32>}, {pipeline_mode = #tpu.pipeline_mode<synchronous>, transform_indices = @transform_13, window_bounds = array<i64: 2, 1, 32>}, {pipeline_mode = #tpu.pipeline_mode<synchronous>, transform_indices = @transform_14, window_bounds = array<i64: 2, 1, 32>}, {pipeline_mode = #tpu.pipeline_mode<synchronous>, transform_indices = @transform_15, window_bounds = array<i64: 2, 1, 32>}, {pipeline_mode = #tpu.pipeline_mode<synchronous>, transform_indices = @transform_16, window_bounds = array<i64: 2, 32, 64>}, {pipeline_mode = #tpu.pipeline_mode<synchronous>, transform_indices = @transform_17, window_bounds = array<i64: 2, 1, 64>}, {pipeline_mode = #tpu.pipeline_mode<synchronous>, transform_indices = @transform_18, window_bounds = array<i64: 2, 64, 32>}, {pipeline_mode = #tpu.pipeline_mode<synchronous>, transform_indices = @transform_19, window_bounds = array<i64: 2, 1, 32>}, {pipeline_mode = #tpu.pipeline_mode<synchronous>, transform_indices = @transform_20, window_bounds = array<i64: 2, 1, 32>}, {pipeline_mode = #tpu.pipeline_mode<synchronous>, transform_indices = @transform_21, window_bounds = array<i64: 2, 1, 32>}, {pipeline_mode = #tpu.pipeline_mode<synchronous>, transform_indices = @transform_22, window_bounds = array<i64: 32, 32>}, {pipeline_mode = #tpu.pipeline_mode<synchronous>, transform_indices = @transform_23, window_bounds = array<i64: 1, 32>}, {pipeline_mode = #tpu.pipeline_mode<synchronous>, transform_indices = @transform_24, window_bounds = array<i64: 1, 32>}, {pipeline_mode = #tpu.pipeline_mode<synchronous>, transform_indices = @transform_25, window_bounds = array<i64: 1, 32>}, {pipeline_mode = #tpu.pipeline_mode<synchronous>, transform_indices = @transform_26, window_bounds = array<i64: 32, 64>}, {pipeline_mode = #tpu.pipeline_mode<synchronous>, transform_indices = @transform_27, window_bounds = array<i64: 1, 64>}, {transform_indices = @transform_28, window_bounds = array<i64: 1, 1, 1>}, {transform_indices = @transform_29, window_bounds = array<i64: 1, 1, 1>}]} {
    %c0 = arith.constant 0 : index
    %c0_0 = arith.constant 0 : index
    %c0_1 = arith.constant 0 : index
    %0 = vector.load %arg1[%c0, %c0_0, %c0_1] : memref<1x8x32xf32, #tpu.memory_space<vmem>>, vector<1x8x32xf32>
    %1 = vector.shape_cast %0 : vector<1x8x32xf32> to vector<8x32xf32>
    %c0_2 = arith.constant 0 : index
    %c0_3 = arith.constant 0 : index
    %2 = vector.load %arg3[%c0_2, %c0_3] : memref<8x8xf32, #tpu.memory_space<vmem>>, vector<8x8xf32>
    %c0_4 = arith.constant 0 : index
    %c0_5 = arith.constant 0 : index
    %c0_6 = arith.constant 0 : index
    %3 = vector.load %arg4[%c0_4, %c0_5, %c0_6] : memref<1x1x8xf32, #tpu.memory_space<vmem>>, vector<1x1x8xf32>
    %4 = vector.shape_cast %3 : vector<1x1x8xf32> to vector<1x8xf32>
    %5 = vector.broadcast %4 : vector<1x8xf32> to vector<8x8xf32>
    %6 = arith.addf %2, %5 : vector<8x8xf32>
    %c0_7 = arith.constant 0 : index
    %c0_8 = arith.constant 0 : index
    %c0_9 = arith.constant 0 : index
    %7 = vector.load %arg2[%c0_7, %c0_8, %c0_9] : memref<4x8x8xf32, #tpu.memory_space<vmem>>, vector<1x8x8xf32>
    %8 = vector.shape_cast %7 : vector<1x8x8xf32> to vector<8x8xf32>
    %9 = arith.addf %8, %6 : vector<8x8xf32>
    %c1 = arith.constant 1 : index
    %c0_10 = arith.constant 0 : index
    %c0_11 = arith.constant 0 : index
    %10 = vector.load %arg2[%c1, %c0_10, %c0_11] : memref<4x8x8xf32, #tpu.memory_space<vmem>>, vector<1x8x8xf32>
    %11 = vector.shape_cast %10 : vector<1x8x8xf32> to vector<8x8xf32>
    %12 = arith.addf %11, %6 : vector<8x8xf32>
    %c2 = arith.constant 2 : index
    %c0_12 = arith.constant 0 : index
    %c0_13 = arith.constant 0 : index
    %13 = vector.load %arg2[%c2, %c0_12, %c0_13] : memref<4x8x8xf32, #tpu.memory_space<vmem>>, vector<1x8x8xf32>
    %14 = vector.shape_cast %13 : vector<1x8x8xf32> to vector<8x8xf32>
    %15 = arith.addf %14, %6 : vector<8x8xf32>
    %c3 = arith.constant 3 : index
    %c0_14 = arith.constant 0 : index
    %c0_15 = arith.constant 0 : index
    %16 = vector.load %arg2[%c3, %c0_14, %c0_15] : memref<4x8x8xf32, #tpu.memory_space<vmem>>, vector<1x8x8xf32>
    %17 = vector.shape_cast %16 : vector<1x8x8xf32> to vector<8x8xf32>
    %18 = arith.addf %17, %6 : vector<8x8xf32>
    %19 = arith.truncf %1 : vector<8x32xf32> to vector<8x32xbf16>
    %cst = arith.constant 0.000000e+00 : f32
    %20 = vector.broadcast %cst : f32 to vector<8x32xf32>
    %c0_16 = arith.constant 0 : index
    %c0_17 = arith.constant 0 : index
    %c0_18 = arith.constant 0 : index
    %c0_19 = arith.constant 0 : index
    %21 = vector.load %arg7[%c0_16, %c0_17, %c0_18, %c0_19] : memref<2x4x32x8xbf16, #tpu.memory_space<vmem>>, vector<1x1x32x8xbf16>
    %22 = vector.shape_cast %21 : vector<1x1x32x8xbf16> to vector<32x8xbf16>
    %cst_20 = arith.constant dense<0.000000e+00> : vector<8x8xf32>
    %23 = tpu.matmul %19, %22, %cst_20 {dimension_numbers = #tpu.dot_dimension_numbers<[1], [0], [0], [1], [0, 0, 1, 1], [], []>} : vector<8x32xbf16>, vector<32x8xbf16>, vector<8x8xf32> -> vector<8x8xf32>
    %c0_21 = arith.constant 0 : index
    %c0_22 = arith.constant 0 : index
    %c0_23 = arith.constant 0 : index
    %c0_24 = arith.constant 0 : index
    %24 = vector.load %arg10[%c0_21, %c0_22, %c0_23, %c0_24] : memref<2x4x1x8xf32, #tpu.memory_space<vmem>>, vector<1x1x1x8xf32>
    %25 = vector.shape_cast %24 : vector<1x1x1x8xf32> to vector<1x8xf32>
    %26 = vector.broadcast %25 : vector<1x8xf32> to vector<8x8xf32>
    %27 = arith.addf %23, %26 : vector<8x8xf32>
    %c0_25 = arith.constant 0 : index
    %c0_26 = arith.constant 0 : index
    %c0_27 = arith.constant 0 : index
    %c0_28 = arith.constant 0 : index
    %28 = vector.load %arg8[%c0_25, %c0_26, %c0_27, %c0_28] : memref<2x4x32x8xbf16, #tpu.memory_space<vmem>>, vector<1x1x32x8xbf16>
    %29 = vector.shape_cast %28 : vector<1x1x32x8xbf16> to vector<32x8xbf16>
    %cst_29 = arith.constant dense<0.000000e+00> : vector<8x8xf32>
    %30 = tpu.matmul %19, %29, %cst_29 {dimension_numbers = #tpu.dot_dimension_numbers<[1], [0], [0], [1], [0, 0, 1, 1], [], []>} : vector<8x32xbf16>, vector<32x8xbf16>, vector<8x8xf32> -> vector<8x8xf32>
    %c0_30 = arith.constant 0 : index
    %c0_31 = arith.constant 0 : index
    %c0_32 = arith.constant 0 : index
    %c0_33 = arith.constant 0 : index
    %31 = vector.load %arg11[%c0_30, %c0_31, %c0_32, %c0_33] : memref<2x4x1x8xf32, #tpu.memory_space<vmem>>, vector<1x1x1x8xf32>
    %32 = vector.shape_cast %31 : vector<1x1x1x8xf32> to vector<1x8xf32>
    %33 = vector.broadcast %32 : vector<1x8xf32> to vector<8x8xf32>
    %34 = arith.addf %30, %33 : vector<8x8xf32>
    %c0_34 = arith.constant 0 : index
    %c0_35 = arith.constant 0 : index
    %c0_36 = arith.constant 0 : index
    %c0_37 = arith.constant 0 : index
    %35 = vector.load %arg9[%c0_34, %c0_35, %c0_36, %c0_37] : memref<2x4x32x8xbf16, #tpu.memory_space<vmem>>, vector<1x1x32x8xbf16>
    %36 = vector.shape_cast %35 : vector<1x1x32x8xbf16> to vector<32x8xbf16>
    %cst_38 = arith.constant dense<0.000000e+00> : vector<8x8xf32>
    %37 = tpu.matmul %19, %36, %cst_38 {dimension_numbers = #tpu.dot_dimension_numbers<[1], [0], [0], [1], [0, 0, 1, 1], [], []>} : vector<8x32xbf16>, vector<32x8xbf16>, vector<8x8xf32> -> vector<8x8xf32>
    %c0_39 = arith.constant 0 : index
    %c0_40 = arith.constant 0 : index
    %c0_41 = arith.constant 0 : index
    %c0_42 = arith.constant 0 : index
    %38 = vector.load %arg12[%c0_39, %c0_40, %c0_41, %c0_42] : memref<2x4x1x8xf32, #tpu.memory_space<vmem>>, vector<1x1x1x8xf32>
    %39 = vector.shape_cast %38 : vector<1x1x1x8xf32> to vector<1x8xf32>
    %40 = vector.broadcast %39 : vector<1x8xf32> to vector<8x8xf32>
    %41 = arith.addf %37, %40 : vector<8x8xf32>
    %42 = arith.truncf %27 : vector<8x8xf32> to vector<8x8xbf16>
    %43 = tpu.transpose %34, [1, 0] : vector<8x8xf32> -> vector<8x8xf32>
    %44 = arith.truncf %43 : vector<8x8xf32> to vector<8x8xbf16>
    %cst_43 = arith.constant dense<0.000000e+00> : vector<8x8xf32>
    %45 = tpu.matmul %42, %44, %cst_43 {dimension_numbers = #tpu.dot_dimension_numbers<[1], [0], [0], [1], [0, 0, 1, 1], [], []>} : vector<8x8xbf16>, vector<8x8xbf16>, vector<8x8xf32> -> vector<8x8xf32>
    %cst_44 = arith.constant 0.353553385 : f32
    %46 = vector.broadcast %cst_44 : f32 to vector<8x8xf32>
    %47 = arith.mulf %45, %46 : vector<8x8xf32>
    %48 = arith.addf %47, %9 : vector<8x8xf32>
    %cst_45 = arith.constant dense<0xFF800000> : vector<8xf32>
    %49 = vector.multi_reduction <maximumf>, %48, %cst_45 [1] : vector<8x8xf32> to vector<8xf32>
    %50 = vector.shape_cast %49 : vector<8xf32> to vector<8x1xf32>
    %51 = vector.broadcast %50 : vector<8x1xf32> to vector<8x8xf32>
    %52 = arith.subf %48, %51 : vector<8x8xf32>
    %53 = math.exp %52 : vector<8x8xf32>
    %cst_46 = arith.constant dense<0.000000e+00> : vector<8xf32>
    %54 = vector.multi_reduction <add>, %53, %cst_46 [1] : vector<8x8xf32> to vector<8xf32>
    %55 = vector.shape_cast %54 : vector<8xf32> to vector<8x1xf32>
    %56 = tpu.reciprocal %55 {approx = true} : vector<8x1xf32> -> vector<8x1xf32>
    %57 = vector.broadcast %56 : vector<8x1xf32> to vector<8x8xf32>
    %58 = arith.mulf %53, %57 : vector<8x8xf32>
    %59 = arith.truncf %58 : vector<8x8xf32> to vector<8x8xbf16>
    %60 = arith.truncf %41 : vector<8x8xf32> to vector<8x8xbf16>
    %cst_47 = arith.constant dense<0.000000e+00> : vector<8x8xf32>
    %61 = tpu.matmul %59, %60, %cst_47 {dimension_numbers = #tpu.dot_dimension_numbers<[1], [0], [0], [1], [0, 0, 1, 1], [], []>} : vector<8x8xbf16>, vector<8x8xbf16>, vector<8x8xf32> -> vector<8x8xf32>
    %62 = arith.truncf %61 : vector<8x8xf32> to vector<8x8xbf16>
    %c0_48 = arith.constant 0 : index
    %c0_49 = arith.constant 0 : index
    %c0_50 = arith.constant 0 : index
    %c0_51 = arith.constant 0 : index
    %63 = vector.load %arg13[%c0_48, %c0_49, %c0_50, %c0_51] : memref<2x4x8x32xbf16, #tpu.memory_space<vmem>>, vector<1x1x8x32xbf16>
    %64 = vector.shape_cast %63 : vector<1x1x8x32xbf16> to vector<8x32xbf16>
    %cst_52 = arith.constant dense<0.000000e+00> : vector<8x32xf32>
    %65 = tpu.matmul %62, %64, %cst_52 {dimension_numbers = #tpu.dot_dimension_numbers<[1], [0], [0], [1], [0, 0, 1, 1], [], []>} : vector<8x8xbf16>, vector<8x32xbf16>, vector<8x32xf32> -> vector<8x32xf32>
    %66 = arith.addf %20, %65 : vector<8x32xf32>
    %c0_53 = arith.constant 0 : index
    %c1_54 = arith.constant 1 : index
    %c0_55 = arith.constant 0 : index
    %c0_56 = arith.constant 0 : index
    %67 = vector.load %arg7[%c0_53, %c1_54, %c0_55, %c0_56] : memref<2x4x32x8xbf16, #tpu.memory_space<vmem>>, vector<1x1x32x8xbf16>
    %68 = vector.shape_cast %67 : vector<1x1x32x8xbf16> to vector<32x8xbf16>
    %cst_57 = arith.constant dense<0.000000e+00> : vector<8x8xf32>
    %69 = tpu.matmul %19, %68, %cst_57 {dimension_numbers = #tpu.dot_dimension_numbers<[1], [0], [0], [1], [0, 0, 1, 1], [], []>} : vector<8x32xbf16>, vector<32x8xbf16>, vector<8x8xf32> -> vector<8x8xf32>
    %c0_58 = arith.constant 0 : index
    %c1_59 = arith.constant 1 : index
    %c0_60 = arith.constant 0 : index
    %c0_61 = arith.constant 0 : index
    %70 = vector.load %arg10[%c0_58, %c1_59, %c0_60, %c0_61] : memref<2x4x1x8xf32, #tpu.memory_space<vmem>>, vector<1x1x1x8xf32>
    %71 = vector.shape_cast %70 : vector<1x1x1x8xf32> to vector<1x8xf32>
    %72 = vector.broadcast %71 : vector<1x8xf32> to vector<8x8xf32>
    %73 = arith.addf %69, %72 : vector<8x8xf32>
    %c0_62 = arith.constant 0 : index
    %c1_63 = arith.constant 1 : index
    %c0_64 = arith.constant 0 : index
    %c0_65 = arith.constant 0 : index
    %74 = vector.load %arg8[%c0_62, %c1_63, %c0_64, %c0_65] : memref<2x4x32x8xbf16, #tpu.memory_space<vmem>>, vector<1x1x32x8xbf16>
    %75 = vector.shape_cast %74 : vector<1x1x32x8xbf16> to vector<32x8xbf16>
    %cst_66 = arith.constant dense<0.000000e+00> : vector<8x8xf32>
    %76 = tpu.matmul %19, %75, %cst_66 {dimension_numbers = #tpu.dot_dimension_numbers<[1], [0], [0], [1], [0, 0, 1, 1], [], []>} : vector<8x32xbf16>, vector<32x8xbf16>, vector<8x8xf32> -> vector<8x8xf32>
    %c0_67 = arith.constant 0 : index
    %c1_68 = arith.constant 1 : index
    %c0_69 = arith.constant 0 : index
    %c0_70 = arith.constant 0 : index
    %77 = vector.load %arg11[%c0_67, %c1_68, %c0_69, %c0_70] : memref<2x4x1x8xf32, #tpu.memory_space<vmem>>, vector<1x1x1x8xf32>
    %78 = vector.shape_cast %77 : vector<1x1x1x8xf32> to vector<1x8xf32>
    %79 = vector.broadcast %78 : vector<1x8xf32> to vector<8x8xf32>
    %80 = arith.addf %76, %79 : vector<8x8xf32>
    %c0_71 = arith.constant 0 : index
    %c1_72 = arith.constant 1 : index
    %c0_73 = arith.constant 0 : index
    %c0_74 = arith.constant 0 : index
    %81 = vector.load %arg9[%c0_71, %c1_72, %c0_73, %c0_74] : memref<2x4x32x8xbf16, #tpu.memory_space<vmem>>, vector<1x1x32x8xbf16>
    %82 = vector.shape_cast %81 : vector<1x1x32x8xbf16> to vector<32x8xbf16>
    %cst_75 = arith.constant dense<0.000000e+00> : vector<8x8xf32>
    %83 = tpu.matmul %19, %82, %cst_75 {dimension_numbers = #tpu.dot_dimension_numbers<[1], [0], [0], [1], [0, 0, 1, 1], [], []>} : vector<8x32xbf16>, vector<32x8xbf16>, vector<8x8xf32> -> vector<8x8xf32>
    %c0_76 = arith.constant 0 : index
    %c1_77 = arith.constant 1 : index
    %c0_78 = arith.constant 0 : index
    %c0_79 = arith.constant 0 : index
    %84 = vector.load %arg12[%c0_76, %c1_77, %c0_78, %c0_79] : memref<2x4x1x8xf32, #tpu.memory_space<vmem>>, vector<1x1x1x8xf32>
    %85 = vector.shape_cast %84 : vector<1x1x1x8xf32> to vector<1x8xf32>
    %86 = vector.broadcast %85 : vector<1x8xf32> to vector<8x8xf32>
    %87 = arith.addf %83, %86 : vector<8x8xf32>
    %88 = arith.truncf %73 : vector<8x8xf32> to vector<8x8xbf16>
    %89 = tpu.transpose %80, [1, 0] : vector<8x8xf32> -> vector<8x8xf32>
    %90 = arith.truncf %89 : vector<8x8xf32> to vector<8x8xbf16>
    %cst_80 = arith.constant dense<0.000000e+00> : vector<8x8xf32>
    %91 = tpu.matmul %88, %90, %cst_80 {dimension_numbers = #tpu.dot_dimension_numbers<[1], [0], [0], [1], [0, 0, 1, 1], [], []>} : vector<8x8xbf16>, vector<8x8xbf16>, vector<8x8xf32> -> vector<8x8xf32>
    %cst_81 = arith.constant 0.353553385 : f32
    %92 = vector.broadcast %cst_81 : f32 to vector<8x8xf32>
    %93 = arith.mulf %91, %92 : vector<8x8xf32>
    %94 = arith.addf %93, %12 : vector<8x8xf32>
    %cst_82 = arith.constant dense<0xFF800000> : vector<8xf32>
    %95 = vector.multi_reduction <maximumf>, %94, %cst_82 [1] : vector<8x8xf32> to vector<8xf32>
    %96 = vector.shape_cast %95 : vector<8xf32> to vector<8x1xf32>
    %97 = vector.broadcast %96 : vector<8x1xf32> to vector<8x8xf32>
    %98 = arith.subf %94, %97 : vector<8x8xf32>
    %99 = math.exp %98 : vector<8x8xf32>
    %cst_83 = arith.constant dense<0.000000e+00> : vector<8xf32>
    %100 = vector.multi_reduction <add>, %99, %cst_83 [1] : vector<8x8xf32> to vector<8xf32>
    %101 = vector.shape_cast %100 : vector<8xf32> to vector<8x1xf32>
    %102 = tpu.reciprocal %101 {approx = true} : vector<8x1xf32> -> vector<8x1xf32>
    %103 = vector.broadcast %102 : vector<8x1xf32> to vector<8x8xf32>
    %104 = arith.mulf %99, %103 : vector<8x8xf32>
    %105 = arith.truncf %104 : vector<8x8xf32> to vector<8x8xbf16>
    %106 = arith.truncf %87 : vector<8x8xf32> to vector<8x8xbf16>
    %cst_84 = arith.constant dense<0.000000e+00> : vector<8x8xf32>
    %107 = tpu.matmul %105, %106, %cst_84 {dimension_numbers = #tpu.dot_dimension_numbers<[1], [0], [0], [1], [0, 0, 1, 1], [], []>} : vector<8x8xbf16>, vector<8x8xbf16>, vector<8x8xf32> -> vector<8x8xf32>
    %108 = arith.truncf %107 : vector<8x8xf32> to vector<8x8xbf16>
    %c0_85 = arith.constant 0 : index
    %c1_86 = arith.constant 1 : index
    %c0_87 = arith.constant 0 : index
    %c0_88 = arith.constant 0 : index
    %109 = vector.load %arg13[%c0_85, %c1_86, %c0_87, %c0_88] : memref<2x4x8x32xbf16, #tpu.memory_space<vmem>>, vector<1x1x8x32xbf16>
    %110 = vector.shape_cast %109 : vector<1x1x8x32xbf16> to vector<8x32xbf16>
    %cst_89 = arith.constant dense<0.000000e+00> : vector<8x32xf32>
    %111 = tpu.matmul %108, %110, %cst_89 {dimension_numbers = #tpu.dot_dimension_numbers<[1], [0], [0], [1], [0, 0, 1, 1], [], []>} : vector<8x8xbf16>, vector<8x32xbf16>, vector<8x32xf32> -> vector<8x32xf32>
    %112 = arith.addf %66, %111 : vector<8x32xf32>
    %c0_90 = arith.constant 0 : index
    %c2_91 = arith.constant 2 : index
    %c0_92 = arith.constant 0 : index
    %c0_93 = arith.constant 0 : index
    %113 = vector.load %arg7[%c0_90, %c2_91, %c0_92, %c0_93] : memref<2x4x32x8xbf16, #tpu.memory_space<vmem>>, vector<1x1x32x8xbf16>
    %114 = vector.shape_cast %113 : vector<1x1x32x8xbf16> to vector<32x8xbf16>
    %cst_94 = arith.constant dense<0.000000e+00> : vector<8x8xf32>
    %115 = tpu.matmul %19, %114, %cst_94 {dimension_numbers = #tpu.dot_dimension_numbers<[1], [0], [0], [1], [0, 0, 1, 1], [], []>} : vector<8x32xbf16>, vector<32x8xbf16>, vector<8x8xf32> -> vector<8x8xf32>
    %c0_95 = arith.constant 0 : index
    %c2_96 = arith.constant 2 : index
    %c0_97 = arith.constant 0 : index
    %c0_98 = arith.constant 0 : index
    %116 = vector.load %arg10[%c0_95, %c2_96, %c0_97, %c0_98] : memref<2x4x1x8xf32, #tpu.memory_space<vmem>>, vector<1x1x1x8xf32>
    %117 = vector.shape_cast %116 : vector<1x1x1x8xf32> to vector<1x8xf32>
    %118 = vector.broadcast %117 : vector<1x8xf32> to vector<8x8xf32>
    %119 = arith.addf %115, %118 : vector<8x8xf32>
    %c0_99 = arith.constant 0 : index
    %c2_100 = arith.constant 2 : index
    %c0_101 = arith.constant 0 : index
    %c0_102 = arith.constant 0 : index
    %120 = vector.load %arg8[%c0_99, %c2_100, %c0_101, %c0_102] : memref<2x4x32x8xbf16, #tpu.memory_space<vmem>>, vector<1x1x32x8xbf16>
    %121 = vector.shape_cast %120 : vector<1x1x32x8xbf16> to vector<32x8xbf16>
    %cst_103 = arith.constant dense<0.000000e+00> : vector<8x8xf32>
    %122 = tpu.matmul %19, %121, %cst_103 {dimension_numbers = #tpu.dot_dimension_numbers<[1], [0], [0], [1], [0, 0, 1, 1], [], []>} : vector<8x32xbf16>, vector<32x8xbf16>, vector<8x8xf32> -> vector<8x8xf32>
    %c0_104 = arith.constant 0 : index
    %c2_105 = arith.constant 2 : index
    %c0_106 = arith.constant 0 : index
    %c0_107 = arith.constant 0 : index
    %123 = vector.load %arg11[%c0_104, %c2_105, %c0_106, %c0_107] : memref<2x4x1x8xf32, #tpu.memory_space<vmem>>, vector<1x1x1x8xf32>
    %124 = vector.shape_cast %123 : vector<1x1x1x8xf32> to vector<1x8xf32>
    %125 = vector.broadcast %124 : vector<1x8xf32> to vector<8x8xf32>
    %126 = arith.addf %122, %125 : vector<8x8xf32>
    %c0_108 = arith.constant 0 : index
    %c2_109 = arith.constant 2 : index
    %c0_110 = arith.constant 0 : index
    %c0_111 = arith.constant 0 : index
    %127 = vector.load %arg9[%c0_108, %c2_109, %c0_110, %c0_111] : memref<2x4x32x8xbf16, #tpu.memory_space<vmem>>, vector<1x1x32x8xbf16>
    %128 = vector.shape_cast %127 : vector<1x1x32x8xbf16> to vector<32x8xbf16>
    %cst_112 = arith.constant dense<0.000000e+00> : vector<8x8xf32>
    %129 = tpu.matmul %19, %128, %cst_112 {dimension_numbers = #tpu.dot_dimension_numbers<[1], [0], [0], [1], [0, 0, 1, 1], [], []>} : vector<8x32xbf16>, vector<32x8xbf16>, vector<8x8xf32> -> vector<8x8xf32>
    %c0_113 = arith.constant 0 : index
    %c2_114 = arith.constant 2 : index
    %c0_115 = arith.constant 0 : index
    %c0_116 = arith.constant 0 : index
    %130 = vector.load %arg12[%c0_113, %c2_114, %c0_115, %c0_116] : memref<2x4x1x8xf32, #tpu.memory_space<vmem>>, vector<1x1x1x8xf32>
    %131 = vector.shape_cast %130 : vector<1x1x1x8xf32> to vector<1x8xf32>
    %132 = vector.broadcast %131 : vector<1x8xf32> to vector<8x8xf32>
    %133 = arith.addf %129, %132 : vector<8x8xf32>
    %134 = arith.truncf %119 : vector<8x8xf32> to vector<8x8xbf16>
    %135 = tpu.transpose %126, [1, 0] : vector<8x8xf32> -> vector<8x8xf32>
    %136 = arith.truncf %135 : vector<8x8xf32> to vector<8x8xbf16>
    %cst_117 = arith.constant dense<0.000000e+00> : vector<8x8xf32>
    %137 = tpu.matmul %134, %136, %cst_117 {dimension_numbers = #tpu.dot_dimension_numbers<[1], [0], [0], [1], [0, 0, 1, 1], [], []>} : vector<8x8xbf16>, vector<8x8xbf16>, vector<8x8xf32> -> vector<8x8xf32>
    %cst_118 = arith.constant 0.353553385 : f32
    %138 = vector.broadcast %cst_118 : f32 to vector<8x8xf32>
    %139 = arith.mulf %137, %138 : vector<8x8xf32>
    %140 = arith.addf %139, %15 : vector<8x8xf32>
    %cst_119 = arith.constant dense<0xFF800000> : vector<8xf32>
    %141 = vector.multi_reduction <maximumf>, %140, %cst_119 [1] : vector<8x8xf32> to vector<8xf32>
    %142 = vector.shape_cast %141 : vector<8xf32> to vector<8x1xf32>
    %143 = vector.broadcast %142 : vector<8x1xf32> to vector<8x8xf32>
    %144 = arith.subf %140, %143 : vector<8x8xf32>
    %145 = math.exp %144 : vector<8x8xf32>
    %cst_120 = arith.constant dense<0.000000e+00> : vector<8xf32>
    %146 = vector.multi_reduction <add>, %145, %cst_120 [1] : vector<8x8xf32> to vector<8xf32>
    %147 = vector.shape_cast %146 : vector<8xf32> to vector<8x1xf32>
    %148 = tpu.reciprocal %147 {approx = true} : vector<8x1xf32> -> vector<8x1xf32>
    %149 = vector.broadcast %148 : vector<8x1xf32> to vector<8x8xf32>
    %150 = arith.mulf %145, %149 : vector<8x8xf32>
    %151 = arith.truncf %150 : vector<8x8xf32> to vector<8x8xbf16>
    %152 = arith.truncf %133 : vector<8x8xf32> to vector<8x8xbf16>
    %cst_121 = arith.constant dense<0.000000e+00> : vector<8x8xf32>
    %153 = tpu.matmul %151, %152, %cst_121 {dimension_numbers = #tpu.dot_dimension_numbers<[1], [0], [0], [1], [0, 0, 1, 1], [], []>} : vector<8x8xbf16>, vector<8x8xbf16>, vector<8x8xf32> -> vector<8x8xf32>
    %154 = arith.truncf %153 : vector<8x8xf32> to vector<8x8xbf16>
    %c0_122 = arith.constant 0 : index
    %c2_123 = arith.constant 2 : index
    %c0_124 = arith.constant 0 : index
    %c0_125 = arith.constant 0 : index
    %155 = vector.load %arg13[%c0_122, %c2_123, %c0_124, %c0_125] : memref<2x4x8x32xbf16, #tpu.memory_space<vmem>>, vector<1x1x8x32xbf16>
    %156 = vector.shape_cast %155 : vector<1x1x8x32xbf16> to vector<8x32xbf16>
    %cst_126 = arith.constant dense<0.000000e+00> : vector<8x32xf32>
    %157 = tpu.matmul %154, %156, %cst_126 {dimension_numbers = #tpu.dot_dimension_numbers<[1], [0], [0], [1], [0, 0, 1, 1], [], []>} : vector<8x8xbf16>, vector<8x32xbf16>, vector<8x32xf32> -> vector<8x32xf32>
    %158 = arith.addf %112, %157 : vector<8x32xf32>
    %c0_127 = arith.constant 0 : index
    %c3_128 = arith.constant 3 : index
    %c0_129 = arith.constant 0 : index
    %c0_130 = arith.constant 0 : index
    %159 = vector.load %arg7[%c0_127, %c3_128, %c0_129, %c0_130] : memref<2x4x32x8xbf16, #tpu.memory_space<vmem>>, vector<1x1x32x8xbf16>
    %160 = vector.shape_cast %159 : vector<1x1x32x8xbf16> to vector<32x8xbf16>
    %cst_131 = arith.constant dense<0.000000e+00> : vector<8x8xf32>
    %161 = tpu.matmul %19, %160, %cst_131 {dimension_numbers = #tpu.dot_dimension_numbers<[1], [0], [0], [1], [0, 0, 1, 1], [], []>} : vector<8x32xbf16>, vector<32x8xbf16>, vector<8x8xf32> -> vector<8x8xf32>
    %c0_132 = arith.constant 0 : index
    %c3_133 = arith.constant 3 : index
    %c0_134 = arith.constant 0 : index
    %c0_135 = arith.constant 0 : index
    %162 = vector.load %arg10[%c0_132, %c3_133, %c0_134, %c0_135] : memref<2x4x1x8xf32, #tpu.memory_space<vmem>>, vector<1x1x1x8xf32>
    %163 = vector.shape_cast %162 : vector<1x1x1x8xf32> to vector<1x8xf32>
    %164 = vector.broadcast %163 : vector<1x8xf32> to vector<8x8xf32>
    %165 = arith.addf %161, %164 : vector<8x8xf32>
    %c0_136 = arith.constant 0 : index
    %c3_137 = arith.constant 3 : index
    %c0_138 = arith.constant 0 : index
    %c0_139 = arith.constant 0 : index
    %166 = vector.load %arg8[%c0_136, %c3_137, %c0_138, %c0_139] : memref<2x4x32x8xbf16, #tpu.memory_space<vmem>>, vector<1x1x32x8xbf16>
    %167 = vector.shape_cast %166 : vector<1x1x32x8xbf16> to vector<32x8xbf16>
    %cst_140 = arith.constant dense<0.000000e+00> : vector<8x8xf32>
    %168 = tpu.matmul %19, %167, %cst_140 {dimension_numbers = #tpu.dot_dimension_numbers<[1], [0], [0], [1], [0, 0, 1, 1], [], []>} : vector<8x32xbf16>, vector<32x8xbf16>, vector<8x8xf32> -> vector<8x8xf32>
    %c0_141 = arith.constant 0 : index
    %c3_142 = arith.constant 3 : index
    %c0_143 = arith.constant 0 : index
    %c0_144 = arith.constant 0 : index
    %169 = vector.load %arg11[%c0_141, %c3_142, %c0_143, %c0_144] : memref<2x4x1x8xf32, #tpu.memory_space<vmem>>, vector<1x1x1x8xf32>
    %170 = vector.shape_cast %169 : vector<1x1x1x8xf32> to vector<1x8xf32>
    %171 = vector.broadcast %170 : vector<1x8xf32> to vector<8x8xf32>
    %172 = arith.addf %168, %171 : vector<8x8xf32>
    %c0_145 = arith.constant 0 : index
    %c3_146 = arith.constant 3 : index
    %c0_147 = arith.constant 0 : index
    %c0_148 = arith.constant 0 : index
    %173 = vector.load %arg9[%c0_145, %c3_146, %c0_147, %c0_148] : memref<2x4x32x8xbf16, #tpu.memory_space<vmem>>, vector<1x1x32x8xbf16>
    %174 = vector.shape_cast %173 : vector<1x1x32x8xbf16> to vector<32x8xbf16>
    %cst_149 = arith.constant dense<0.000000e+00> : vector<8x8xf32>
    %175 = tpu.matmul %19, %174, %cst_149 {dimension_numbers = #tpu.dot_dimension_numbers<[1], [0], [0], [1], [0, 0, 1, 1], [], []>} : vector<8x32xbf16>, vector<32x8xbf16>, vector<8x8xf32> -> vector<8x8xf32>
    %c0_150 = arith.constant 0 : index
    %c3_151 = arith.constant 3 : index
    %c0_152 = arith.constant 0 : index
    %c0_153 = arith.constant 0 : index
    %176 = vector.load %arg12[%c0_150, %c3_151, %c0_152, %c0_153] : memref<2x4x1x8xf32, #tpu.memory_space<vmem>>, vector<1x1x1x8xf32>
    %177 = vector.shape_cast %176 : vector<1x1x1x8xf32> to vector<1x8xf32>
    %178 = vector.broadcast %177 : vector<1x8xf32> to vector<8x8xf32>
    %179 = arith.addf %175, %178 : vector<8x8xf32>
    %180 = arith.truncf %165 : vector<8x8xf32> to vector<8x8xbf16>
    %181 = tpu.transpose %172, [1, 0] : vector<8x8xf32> -> vector<8x8xf32>
    %182 = arith.truncf %181 : vector<8x8xf32> to vector<8x8xbf16>
    %cst_154 = arith.constant dense<0.000000e+00> : vector<8x8xf32>
    %183 = tpu.matmul %180, %182, %cst_154 {dimension_numbers = #tpu.dot_dimension_numbers<[1], [0], [0], [1], [0, 0, 1, 1], [], []>} : vector<8x8xbf16>, vector<8x8xbf16>, vector<8x8xf32> -> vector<8x8xf32>
    %cst_155 = arith.constant 0.353553385 : f32
    %184 = vector.broadcast %cst_155 : f32 to vector<8x8xf32>
    %185 = arith.mulf %183, %184 : vector<8x8xf32>
    %186 = arith.addf %185, %18 : vector<8x8xf32>
    %cst_156 = arith.constant dense<0xFF800000> : vector<8xf32>
    %187 = vector.multi_reduction <maximumf>, %186, %cst_156 [1] : vector<8x8xf32> to vector<8xf32>
    %188 = vector.shape_cast %187 : vector<8xf32> to vector<8x1xf32>
    %189 = vector.broadcast %188 : vector<8x1xf32> to vector<8x8xf32>
    %190 = arith.subf %186, %189 : vector<8x8xf32>
    %191 = math.exp %190 : vector<8x8xf32>
    %cst_157 = arith.constant dense<0.000000e+00> : vector<8xf32>
    %192 = vector.multi_reduction <add>, %191, %cst_157 [1] : vector<8x8xf32> to vector<8xf32>
    %193 = vector.shape_cast %192 : vector<8xf32> to vector<8x1xf32>
    %194 = tpu.reciprocal %193 {approx = true} : vector<8x1xf32> -> vector<8x1xf32>
    %195 = vector.broadcast %194 : vector<8x1xf32> to vector<8x8xf32>
    %196 = arith.mulf %191, %195 : vector<8x8xf32>
    %197 = arith.truncf %196 : vector<8x8xf32> to vector<8x8xbf16>
    %198 = arith.truncf %179 : vector<8x8xf32> to vector<8x8xbf16>
    %cst_158 = arith.constant dense<0.000000e+00> : vector<8x8xf32>
    %199 = tpu.matmul %197, %198, %cst_158 {dimension_numbers = #tpu.dot_dimension_numbers<[1], [0], [0], [1], [0, 0, 1, 1], [], []>} : vector<8x8xbf16>, vector<8x8xbf16>, vector<8x8xf32> -> vector<8x8xf32>
    %200 = arith.truncf %199 : vector<8x8xf32> to vector<8x8xbf16>
    %c0_159 = arith.constant 0 : index
    %c3_160 = arith.constant 3 : index
    %c0_161 = arith.constant 0 : index
    %c0_162 = arith.constant 0 : index
    %201 = vector.load %arg13[%c0_159, %c3_160, %c0_161, %c0_162] : memref<2x4x8x32xbf16, #tpu.memory_space<vmem>>, vector<1x1x8x32xbf16>
    %202 = vector.shape_cast %201 : vector<1x1x8x32xbf16> to vector<8x32xbf16>
    %cst_163 = arith.constant dense<0.000000e+00> : vector<8x32xf32>
    %203 = tpu.matmul %200, %202, %cst_163 {dimension_numbers = #tpu.dot_dimension_numbers<[1], [0], [0], [1], [0, 0, 1, 1], [], []>} : vector<8x8xbf16>, vector<8x32xbf16>, vector<8x32xf32> -> vector<8x32xf32>
    %204 = arith.addf %158, %203 : vector<8x32xf32>
    %c0_164 = arith.constant 0 : index
    %c0_165 = arith.constant 0 : index
    %c0_166 = arith.constant 0 : index
    %205 = vector.load %arg14[%c0_164, %c0_165, %c0_166] : memref<2x1x32xf32, #tpu.memory_space<vmem>>, vector<1x1x32xf32>
    %206 = vector.shape_cast %205 : vector<1x1x32xf32> to vector<1x32xf32>
    %207 = vector.broadcast %206 : vector<1x32xf32> to vector<8x32xf32>
    %208 = arith.addf %204, %207 : vector<8x32xf32>
    %209 = arith.addf %1, %208 : vector<8x32xf32>
    %cst_167 = arith.constant dense<0.000000e+00> : vector<8xf32>
    %210 = vector.multi_reduction <add>, %209, %cst_167 [1] : vector<8x32xf32> to vector<8xf32>
    %211 = vector.shape_cast %210 : vector<8xf32> to vector<8x1xf32>
    %cst_168 = arith.constant 3.200000e+01 : f32
    %212 = vector.broadcast %cst_168 : f32 to vector<8x1xf32>
    %213 = arith.divf %211, %212 : vector<8x1xf32>
    %214 = vector.broadcast %213 : vector<8x1xf32> to vector<8x32xf32>
    %215 = arith.subf %209, %214 : vector<8x32xf32>
    %216 = vector.broadcast %213 : vector<8x1xf32> to vector<8x32xf32>
    %217 = arith.subf %209, %216 : vector<8x32xf32>
    %218 = arith.mulf %215, %217 : vector<8x32xf32>
    %cst_169 = arith.constant dense<0.000000e+00> : vector<8xf32>
    %219 = vector.multi_reduction <add>, %218, %cst_169 [1] : vector<8x32xf32> to vector<8xf32>
    %220 = vector.shape_cast %219 : vector<8xf32> to vector<8x1xf32>
    %cst_170 = arith.constant 3.200000e+01 : f32
    %221 = vector.broadcast %cst_170 : f32 to vector<8x1xf32>
    %222 = arith.divf %220, %221 : vector<8x1xf32>
    %223 = vector.broadcast %213 : vector<8x1xf32> to vector<8x32xf32>
    %224 = arith.subf %209, %223 : vector<8x32xf32>
    %cst_171 = arith.constant 9.99999997E-7 : f32
    %225 = vector.broadcast %cst_171 : f32 to vector<8x1xf32>
    %226 = arith.addf %222, %225 : vector<8x1xf32>
    %227 = math.rsqrt %226 : vector<8x1xf32>
    %228 = vector.broadcast %227 : vector<8x1xf32> to vector<8x32xf32>
    %229 = arith.mulf %224, %228 : vector<8x32xf32>
    %c0_172 = arith.constant 0 : index
    %c0_173 = arith.constant 0 : index
    %c0_174 = arith.constant 0 : index
    %230 = vector.load %arg15[%c0_172, %c0_173, %c0_174] : memref<2x1x32xf32, #tpu.memory_space<vmem>>, vector<1x1x32xf32>
    %231 = vector.shape_cast %230 : vector<1x1x32xf32> to vector<1x32xf32>
    %232 = vector.broadcast %231 : vector<1x32xf32> to vector<8x32xf32>
    %233 = arith.mulf %229, %232 : vector<8x32xf32>
    %c0_175 = arith.constant 0 : index
    %c0_176 = arith.constant 0 : index
    %c0_177 = arith.constant 0 : index
    %234 = vector.load %arg16[%c0_175, %c0_176, %c0_177] : memref<2x1x32xf32, #tpu.memory_space<vmem>>, vector<1x1x32xf32>
    %235 = vector.shape_cast %234 : vector<1x1x32xf32> to vector<1x32xf32>
    %236 = vector.broadcast %235 : vector<1x32xf32> to vector<8x32xf32>
    %237 = arith.addf %233, %236 : vector<8x32xf32>
    %238 = arith.truncf %237 : vector<8x32xf32> to vector<8x32xbf16>
    %c0_178 = arith.constant 0 : index
    %c0_179 = arith.constant 0 : index
    %c0_180 = arith.constant 0 : index
    %239 = vector.load %arg17[%c0_178, %c0_179, %c0_180] : memref<2x32x64xbf16, #tpu.memory_space<vmem>>, vector<1x32x64xbf16>
    %240 = vector.shape_cast %239 : vector<1x32x64xbf16> to vector<32x64xbf16>
    %cst_181 = arith.constant dense<0.000000e+00> : vector<8x64xf32>
    %241 = tpu.matmul %238, %240, %cst_181 {dimension_numbers = #tpu.dot_dimension_numbers<[1], [0], [0], [1], [0, 0, 1, 1], [], []>} : vector<8x32xbf16>, vector<32x64xbf16>, vector<8x64xf32> -> vector<8x64xf32>
    %c0_182 = arith.constant 0 : index
    %c0_183 = arith.constant 0 : index
    %c0_184 = arith.constant 0 : index
    %242 = vector.load %arg18[%c0_182, %c0_183, %c0_184] : memref<2x1x64xf32, #tpu.memory_space<vmem>>, vector<1x1x64xf32>
    %243 = vector.shape_cast %242 : vector<1x1x64xf32> to vector<1x64xf32>
    %244 = vector.broadcast %243 : vector<1x64xf32> to vector<8x64xf32>
    %245 = arith.addf %241, %244 : vector<8x64xf32>
    %cst_185 = arith.constant 5.000000e-01 : f32
    %246 = vector.broadcast %cst_185 : f32 to vector<8x64xf32>
    %247 = arith.mulf %246, %245 : vector<8x64xf32>
    %cst_186 = arith.constant 4.471500e-02 : f32
    %248 = vector.broadcast %cst_186 : f32 to vector<8x64xf32>
    %249 = arith.mulf %248, %245 : vector<8x64xf32>
    %250 = arith.mulf %249, %245 : vector<8x64xf32>
    %251 = arith.mulf %250, %245 : vector<8x64xf32>
    %252 = arith.addf %245, %251 : vector<8x64xf32>
    %cst_187 = arith.constant 0.797884583 : f32
    %253 = vector.broadcast %cst_187 : f32 to vector<8x64xf32>
    %254 = arith.mulf %253, %252 : vector<8x64xf32>
    %255 = math.tanh %254 : vector<8x64xf32>
    %cst_188 = arith.constant 1.000000e+00 : f32
    %256 = vector.broadcast %cst_188 : f32 to vector<8x64xf32>
    %257 = arith.addf %256, %255 : vector<8x64xf32>
    %258 = arith.mulf %247, %257 : vector<8x64xf32>
    %259 = arith.truncf %258 : vector<8x64xf32> to vector<8x64xbf16>
    %c0_189 = arith.constant 0 : index
    %c0_190 = arith.constant 0 : index
    %c0_191 = arith.constant 0 : index
    %260 = vector.load %arg19[%c0_189, %c0_190, %c0_191] : memref<2x64x32xbf16, #tpu.memory_space<vmem>>, vector<1x64x32xbf16>
    %261 = vector.shape_cast %260 : vector<1x64x32xbf16> to vector<64x32xbf16>
    %cst_192 = arith.constant dense<0.000000e+00> : vector<8x32xf32>
    %262 = tpu.matmul %259, %261, %cst_192 {dimension_numbers = #tpu.dot_dimension_numbers<[1], [0], [0], [1], [0, 0, 1, 1], [], []>} : vector<8x64xbf16>, vector<64x32xbf16>, vector<8x32xf32> -> vector<8x32xf32>
    %c0_193 = arith.constant 0 : index
    %c0_194 = arith.constant 0 : index
    %c0_195 = arith.constant 0 : index
    %263 = vector.load %arg20[%c0_193, %c0_194, %c0_195] : memref<2x1x32xf32, #tpu.memory_space<vmem>>, vector<1x1x32xf32>
    %264 = vector.shape_cast %263 : vector<1x1x32xf32> to vector<1x32xf32>
    %265 = vector.broadcast %264 : vector<1x32xf32> to vector<8x32xf32>
    %266 = arith.addf %262, %265 : vector<8x32xf32>
    %267 = arith.addf %237, %266 : vector<8x32xf32>
    %cst_196 = arith.constant dense<0.000000e+00> : vector<8xf32>
    %268 = vector.multi_reduction <add>, %267, %cst_196 [1] : vector<8x32xf32> to vector<8xf32>
    %269 = vector.shape_cast %268 : vector<8xf32> to vector<8x1xf32>
    %cst_197 = arith.constant 3.200000e+01 : f32
    %270 = vector.broadcast %cst_197 : f32 to vector<8x1xf32>
    %271 = arith.divf %269, %270 : vector<8x1xf32>
    %272 = vector.broadcast %271 : vector<8x1xf32> to vector<8x32xf32>
    %273 = arith.subf %267, %272 : vector<8x32xf32>
    %274 = vector.broadcast %271 : vector<8x1xf32> to vector<8x32xf32>
    %275 = arith.subf %267, %274 : vector<8x32xf32>
    %276 = arith.mulf %273, %275 : vector<8x32xf32>
    %cst_198 = arith.constant dense<0.000000e+00> : vector<8xf32>
    %277 = vector.multi_reduction <add>, %276, %cst_198 [1] : vector<8x32xf32> to vector<8xf32>
    %278 = vector.shape_cast %277 : vector<8xf32> to vector<8x1xf32>
    %cst_199 = arith.constant 3.200000e+01 : f32
    %279 = vector.broadcast %cst_199 : f32 to vector<8x1xf32>
    %280 = arith.divf %278, %279 : vector<8x1xf32>
    %281 = vector.broadcast %271 : vector<8x1xf32> to vector<8x32xf32>
    %282 = arith.subf %267, %281 : vector<8x32xf32>
    %cst_200 = arith.constant 9.99999997E-7 : f32
    %283 = vector.broadcast %cst_200 : f32 to vector<8x1xf32>
    %284 = arith.addf %280, %283 : vector<8x1xf32>
    %285 = math.rsqrt %284 : vector<8x1xf32>
    %286 = vector.broadcast %285 : vector<8x1xf32> to vector<8x32xf32>
    %287 = arith.mulf %282, %286 : vector<8x32xf32>
    %c0_201 = arith.constant 0 : index
    %c0_202 = arith.constant 0 : index
    %c0_203 = arith.constant 0 : index
    %288 = vector.load %arg21[%c0_201, %c0_202, %c0_203] : memref<2x1x32xf32, #tpu.memory_space<vmem>>, vector<1x1x32xf32>
    %289 = vector.shape_cast %288 : vector<1x1x32xf32> to vector<1x32xf32>
    %290 = vector.broadcast %289 : vector<1x32xf32> to vector<8x32xf32>
    %291 = arith.mulf %287, %290 : vector<8x32xf32>
    %c0_204 = arith.constant 0 : index
    %c0_205 = arith.constant 0 : index
    %c0_206 = arith.constant 0 : index
    %292 = vector.load %arg22[%c0_204, %c0_205, %c0_206] : memref<2x1x32xf32, #tpu.memory_space<vmem>>, vector<1x1x32xf32>
    %293 = vector.shape_cast %292 : vector<1x1x32xf32> to vector<1x32xf32>
    %294 = vector.broadcast %293 : vector<1x32xf32> to vector<8x32xf32>
    %295 = arith.addf %291, %294 : vector<8x32xf32>
    %296 = arith.truncf %295 : vector<8x32xf32> to vector<8x32xbf16>
    %cst_207 = arith.constant 0.000000e+00 : f32
    %297 = vector.broadcast %cst_207 : f32 to vector<8x32xf32>
    %c1_208 = arith.constant 1 : index
    %c0_209 = arith.constant 0 : index
    %c0_210 = arith.constant 0 : index
    %c0_211 = arith.constant 0 : index
    %298 = vector.load %arg7[%c1_208, %c0_209, %c0_210, %c0_211] : memref<2x4x32x8xbf16, #tpu.memory_space<vmem>>, vector<1x1x32x8xbf16>
    %299 = vector.shape_cast %298 : vector<1x1x32x8xbf16> to vector<32x8xbf16>
    %cst_212 = arith.constant dense<0.000000e+00> : vector<8x8xf32>
    %300 = tpu.matmul %296, %299, %cst_212 {dimension_numbers = #tpu.dot_dimension_numbers<[1], [0], [0], [1], [0, 0, 1, 1], [], []>} : vector<8x32xbf16>, vector<32x8xbf16>, vector<8x8xf32> -> vector<8x8xf32>
    %c1_213 = arith.constant 1 : index
    %c0_214 = arith.constant 0 : index
    %c0_215 = arith.constant 0 : index
    %c0_216 = arith.constant 0 : index
    %301 = vector.load %arg10[%c1_213, %c0_214, %c0_215, %c0_216] : memref<2x4x1x8xf32, #tpu.memory_space<vmem>>, vector<1x1x1x8xf32>
    %302 = vector.shape_cast %301 : vector<1x1x1x8xf32> to vector<1x8xf32>
    %303 = vector.broadcast %302 : vector<1x8xf32> to vector<8x8xf32>
    %304 = arith.addf %300, %303 : vector<8x8xf32>
    %c1_217 = arith.constant 1 : index
    %c0_218 = arith.constant 0 : index
    %c0_219 = arith.constant 0 : index
    %c0_220 = arith.constant 0 : index
    %305 = vector.load %arg8[%c1_217, %c0_218, %c0_219, %c0_220] : memref<2x4x32x8xbf16, #tpu.memory_space<vmem>>, vector<1x1x32x8xbf16>
    %306 = vector.shape_cast %305 : vector<1x1x32x8xbf16> to vector<32x8xbf16>
    %cst_221 = arith.constant dense<0.000000e+00> : vector<8x8xf32>
    %307 = tpu.matmul %296, %306, %cst_221 {dimension_numbers = #tpu.dot_dimension_numbers<[1], [0], [0], [1], [0, 0, 1, 1], [], []>} : vector<8x32xbf16>, vector<32x8xbf16>, vector<8x8xf32> -> vector<8x8xf32>
    %c1_222 = arith.constant 1 : index
    %c0_223 = arith.constant 0 : index
    %c0_224 = arith.constant 0 : index
    %c0_225 = arith.constant 0 : index
    %308 = vector.load %arg11[%c1_222, %c0_223, %c0_224, %c0_225] : memref<2x4x1x8xf32, #tpu.memory_space<vmem>>, vector<1x1x1x8xf32>
    %309 = vector.shape_cast %308 : vector<1x1x1x8xf32> to vector<1x8xf32>
    %310 = vector.broadcast %309 : vector<1x8xf32> to vector<8x8xf32>
    %311 = arith.addf %307, %310 : vector<8x8xf32>
    %c1_226 = arith.constant 1 : index
    %c0_227 = arith.constant 0 : index
    %c0_228 = arith.constant 0 : index
    %c0_229 = arith.constant 0 : index
    %312 = vector.load %arg9[%c1_226, %c0_227, %c0_228, %c0_229] : memref<2x4x32x8xbf16, #tpu.memory_space<vmem>>, vector<1x1x32x8xbf16>
    %313 = vector.shape_cast %312 : vector<1x1x32x8xbf16> to vector<32x8xbf16>
    %cst_230 = arith.constant dense<0.000000e+00> : vector<8x8xf32>
    %314 = tpu.matmul %296, %313, %cst_230 {dimension_numbers = #tpu.dot_dimension_numbers<[1], [0], [0], [1], [0, 0, 1, 1], [], []>} : vector<8x32xbf16>, vector<32x8xbf16>, vector<8x8xf32> -> vector<8x8xf32>
    %c1_231 = arith.constant 1 : index
    %c0_232 = arith.constant 0 : index
    %c0_233 = arith.constant 0 : index
    %c0_234 = arith.constant 0 : index
    %315 = vector.load %arg12[%c1_231, %c0_232, %c0_233, %c0_234] : memref<2x4x1x8xf32, #tpu.memory_space<vmem>>, vector<1x1x1x8xf32>
    %316 = vector.shape_cast %315 : vector<1x1x1x8xf32> to vector<1x8xf32>
    %317 = vector.broadcast %316 : vector<1x8xf32> to vector<8x8xf32>
    %318 = arith.addf %314, %317 : vector<8x8xf32>
    %319 = arith.truncf %304 : vector<8x8xf32> to vector<8x8xbf16>
    %320 = tpu.transpose %311, [1, 0] : vector<8x8xf32> -> vector<8x8xf32>
    %321 = arith.truncf %320 : vector<8x8xf32> to vector<8x8xbf16>
    %cst_235 = arith.constant dense<0.000000e+00> : vector<8x8xf32>
    %322 = tpu.matmul %319, %321, %cst_235 {dimension_numbers = #tpu.dot_dimension_numbers<[1], [0], [0], [1], [0, 0, 1, 1], [], []>} : vector<8x8xbf16>, vector<8x8xbf16>, vector<8x8xf32> -> vector<8x8xf32>
    %cst_236 = arith.constant 0.353553385 : f32
    %323 = vector.broadcast %cst_236 : f32 to vector<8x8xf32>
    %324 = arith.mulf %322, %323 : vector<8x8xf32>
    %325 = arith.addf %324, %9 : vector<8x8xf32>
    %cst_237 = arith.constant dense<0xFF800000> : vector<8xf32>
    %326 = vector.multi_reduction <maximumf>, %325, %cst_237 [1] : vector<8x8xf32> to vector<8xf32>
    %327 = vector.shape_cast %326 : vector<8xf32> to vector<8x1xf32>
    %328 = vector.broadcast %327 : vector<8x1xf32> to vector<8x8xf32>
    %329 = arith.subf %325, %328 : vector<8x8xf32>
    %330 = math.exp %329 : vector<8x8xf32>
    %cst_238 = arith.constant dense<0.000000e+00> : vector<8xf32>
    %331 = vector.multi_reduction <add>, %330, %cst_238 [1] : vector<8x8xf32> to vector<8xf32>
    %332 = vector.shape_cast %331 : vector<8xf32> to vector<8x1xf32>
    %333 = tpu.reciprocal %332 {approx = true} : vector<8x1xf32> -> vector<8x1xf32>
    %334 = vector.broadcast %333 : vector<8x1xf32> to vector<8x8xf32>
    %335 = arith.mulf %330, %334 : vector<8x8xf32>
    %336 = arith.truncf %335 : vector<8x8xf32> to vector<8x8xbf16>
    %337 = arith.truncf %318 : vector<8x8xf32> to vector<8x8xbf16>
    %cst_239 = arith.constant dense<0.000000e+00> : vector<8x8xf32>
    %338 = tpu.matmul %336, %337, %cst_239 {dimension_numbers = #tpu.dot_dimension_numbers<[1], [0], [0], [1], [0, 0, 1, 1], [], []>} : vector<8x8xbf16>, vector<8x8xbf16>, vector<8x8xf32> -> vector<8x8xf32>
    %339 = arith.truncf %338 : vector<8x8xf32> to vector<8x8xbf16>
    %c1_240 = arith.constant 1 : index
    %c0_241 = arith.constant 0 : index
    %c0_242 = arith.constant 0 : index
    %c0_243 = arith.constant 0 : index
    %340 = vector.load %arg13[%c1_240, %c0_241, %c0_242, %c0_243] : memref<2x4x8x32xbf16, #tpu.memory_space<vmem>>, vector<1x1x8x32xbf16>
    %341 = vector.shape_cast %340 : vector<1x1x8x32xbf16> to vector<8x32xbf16>
    %cst_244 = arith.constant dense<0.000000e+00> : vector<8x32xf32>
    %342 = tpu.matmul %339, %341, %cst_244 {dimension_numbers = #tpu.dot_dimension_numbers<[1], [0], [0], [1], [0, 0, 1, 1], [], []>} : vector<8x8xbf16>, vector<8x32xbf16>, vector<8x32xf32> -> vector<8x32xf32>
    %343 = arith.addf %297, %342 : vector<8x32xf32>
    %c1_245 = arith.constant 1 : index
    %c1_246 = arith.constant 1 : index
    %c0_247 = arith.constant 0 : index
    %c0_248 = arith.constant 0 : index
    %344 = vector.load %arg7[%c1_245, %c1_246, %c0_247, %c0_248] : memref<2x4x32x8xbf16, #tpu.memory_space<vmem>>, vector<1x1x32x8xbf16>
    %345 = vector.shape_cast %344 : vector<1x1x32x8xbf16> to vector<32x8xbf16>
    %cst_249 = arith.constant dense<0.000000e+00> : vector<8x8xf32>
    %346 = tpu.matmul %296, %345, %cst_249 {dimension_numbers = #tpu.dot_dimension_numbers<[1], [0], [0], [1], [0, 0, 1, 1], [], []>} : vector<8x32xbf16>, vector<32x8xbf16>, vector<8x8xf32> -> vector<8x8xf32>
    %c1_250 = arith.constant 1 : index
    %c1_251 = arith.constant 1 : index
    %c0_252 = arith.constant 0 : index
    %c0_253 = arith.constant 0 : index
    %347 = vector.load %arg10[%c1_250, %c1_251, %c0_252, %c0_253] : memref<2x4x1x8xf32, #tpu.memory_space<vmem>>, vector<1x1x1x8xf32>
    %348 = vector.shape_cast %347 : vector<1x1x1x8xf32> to vector<1x8xf32>
    %349 = vector.broadcast %348 : vector<1x8xf32> to vector<8x8xf32>
    %350 = arith.addf %346, %349 : vector<8x8xf32>
    %c1_254 = arith.constant 1 : index
    %c1_255 = arith.constant 1 : index
    %c0_256 = arith.constant 0 : index
    %c0_257 = arith.constant 0 : index
    %351 = vector.load %arg8[%c1_254, %c1_255, %c0_256, %c0_257] : memref<2x4x32x8xbf16, #tpu.memory_space<vmem>>, vector<1x1x32x8xbf16>
    %352 = vector.shape_cast %351 : vector<1x1x32x8xbf16> to vector<32x8xbf16>
    %cst_258 = arith.constant dense<0.000000e+00> : vector<8x8xf32>
    %353 = tpu.matmul %296, %352, %cst_258 {dimension_numbers = #tpu.dot_dimension_numbers<[1], [0], [0], [1], [0, 0, 1, 1], [], []>} : vector<8x32xbf16>, vector<32x8xbf16>, vector<8x8xf32> -> vector<8x8xf32>
    %c1_259 = arith.constant 1 : index
    %c1_260 = arith.constant 1 : index
    %c0_261 = arith.constant 0 : index
    %c0_262 = arith.constant 0 : index
    %354 = vector.load %arg11[%c1_259, %c1_260, %c0_261, %c0_262] : memref<2x4x1x8xf32, #tpu.memory_space<vmem>>, vector<1x1x1x8xf32>
    %355 = vector.shape_cast %354 : vector<1x1x1x8xf32> to vector<1x8xf32>
    %356 = vector.broadcast %355 : vector<1x8xf32> to vector<8x8xf32>
    %357 = arith.addf %353, %356 : vector<8x8xf32>
    %c1_263 = arith.constant 1 : index
    %c1_264 = arith.constant 1 : index
    %c0_265 = arith.constant 0 : index
    %c0_266 = arith.constant 0 : index
    %358 = vector.load %arg9[%c1_263, %c1_264, %c0_265, %c0_266] : memref<2x4x32x8xbf16, #tpu.memory_space<vmem>>, vector<1x1x32x8xbf16>
    %359 = vector.shape_cast %358 : vector<1x1x32x8xbf16> to vector<32x8xbf16>
    %cst_267 = arith.constant dense<0.000000e+00> : vector<8x8xf32>
    %360 = tpu.matmul %296, %359, %cst_267 {dimension_numbers = #tpu.dot_dimension_numbers<[1], [0], [0], [1], [0, 0, 1, 1], [], []>} : vector<8x32xbf16>, vector<32x8xbf16>, vector<8x8xf32> -> vector<8x8xf32>
    %c1_268 = arith.constant 1 : index
    %c1_269 = arith.constant 1 : index
    %c0_270 = arith.constant 0 : index
    %c0_271 = arith.constant 0 : index
    %361 = vector.load %arg12[%c1_268, %c1_269, %c0_270, %c0_271] : memref<2x4x1x8xf32, #tpu.memory_space<vmem>>, vector<1x1x1x8xf32>
    %362 = vector.shape_cast %361 : vector<1x1x1x8xf32> to vector<1x8xf32>
    %363 = vector.broadcast %362 : vector<1x8xf32> to vector<8x8xf32>
    %364 = arith.addf %360, %363 : vector<8x8xf32>
    %365 = arith.truncf %350 : vector<8x8xf32> to vector<8x8xbf16>
    %366 = tpu.transpose %357, [1, 0] : vector<8x8xf32> -> vector<8x8xf32>
    %367 = arith.truncf %366 : vector<8x8xf32> to vector<8x8xbf16>
    %cst_272 = arith.constant dense<0.000000e+00> : vector<8x8xf32>
    %368 = tpu.matmul %365, %367, %cst_272 {dimension_numbers = #tpu.dot_dimension_numbers<[1], [0], [0], [1], [0, 0, 1, 1], [], []>} : vector<8x8xbf16>, vector<8x8xbf16>, vector<8x8xf32> -> vector<8x8xf32>
    %cst_273 = arith.constant 0.353553385 : f32
    %369 = vector.broadcast %cst_273 : f32 to vector<8x8xf32>
    %370 = arith.mulf %368, %369 : vector<8x8xf32>
    %371 = arith.addf %370, %12 : vector<8x8xf32>
    %cst_274 = arith.constant dense<0xFF800000> : vector<8xf32>
    %372 = vector.multi_reduction <maximumf>, %371, %cst_274 [1] : vector<8x8xf32> to vector<8xf32>
    %373 = vector.shape_cast %372 : vector<8xf32> to vector<8x1xf32>
    %374 = vector.broadcast %373 : vector<8x1xf32> to vector<8x8xf32>
    %375 = arith.subf %371, %374 : vector<8x8xf32>
    %376 = math.exp %375 : vector<8x8xf32>
    %cst_275 = arith.constant dense<0.000000e+00> : vector<8xf32>
    %377 = vector.multi_reduction <add>, %376, %cst_275 [1] : vector<8x8xf32> to vector<8xf32>
    %378 = vector.shape_cast %377 : vector<8xf32> to vector<8x1xf32>
    %379 = tpu.reciprocal %378 {approx = true} : vector<8x1xf32> -> vector<8x1xf32>
    %380 = vector.broadcast %379 : vector<8x1xf32> to vector<8x8xf32>
    %381 = arith.mulf %376, %380 : vector<8x8xf32>
    %382 = arith.truncf %381 : vector<8x8xf32> to vector<8x8xbf16>
    %383 = arith.truncf %364 : vector<8x8xf32> to vector<8x8xbf16>
    %cst_276 = arith.constant dense<0.000000e+00> : vector<8x8xf32>
    %384 = tpu.matmul %382, %383, %cst_276 {dimension_numbers = #tpu.dot_dimension_numbers<[1], [0], [0], [1], [0, 0, 1, 1], [], []>} : vector<8x8xbf16>, vector<8x8xbf16>, vector<8x8xf32> -> vector<8x8xf32>
    %385 = arith.truncf %384 : vector<8x8xf32> to vector<8x8xbf16>
    %c1_277 = arith.constant 1 : index
    %c1_278 = arith.constant 1 : index
    %c0_279 = arith.constant 0 : index
    %c0_280 = arith.constant 0 : index
    %386 = vector.load %arg13[%c1_277, %c1_278, %c0_279, %c0_280] : memref<2x4x8x32xbf16, #tpu.memory_space<vmem>>, vector<1x1x8x32xbf16>
    %387 = vector.shape_cast %386 : vector<1x1x8x32xbf16> to vector<8x32xbf16>
    %cst_281 = arith.constant dense<0.000000e+00> : vector<8x32xf32>
    %388 = tpu.matmul %385, %387, %cst_281 {dimension_numbers = #tpu.dot_dimension_numbers<[1], [0], [0], [1], [0, 0, 1, 1], [], []>} : vector<8x8xbf16>, vector<8x32xbf16>, vector<8x32xf32> -> vector<8x32xf32>
    %389 = arith.addf %343, %388 : vector<8x32xf32>
    %c1_282 = arith.constant 1 : index
    %c2_283 = arith.constant 2 : index
    %c0_284 = arith.constant 0 : index
    %c0_285 = arith.constant 0 : index
    %390 = vector.load %arg7[%c1_282, %c2_283, %c0_284, %c0_285] : memref<2x4x32x8xbf16, #tpu.memory_space<vmem>>, vector<1x1x32x8xbf16>
    %391 = vector.shape_cast %390 : vector<1x1x32x8xbf16> to vector<32x8xbf16>
    %cst_286 = arith.constant dense<0.000000e+00> : vector<8x8xf32>
    %392 = tpu.matmul %296, %391, %cst_286 {dimension_numbers = #tpu.dot_dimension_numbers<[1], [0], [0], [1], [0, 0, 1, 1], [], []>} : vector<8x32xbf16>, vector<32x8xbf16>, vector<8x8xf32> -> vector<8x8xf32>
    %c1_287 = arith.constant 1 : index
    %c2_288 = arith.constant 2 : index
    %c0_289 = arith.constant 0 : index
    %c0_290 = arith.constant 0 : index
    %393 = vector.load %arg10[%c1_287, %c2_288, %c0_289, %c0_290] : memref<2x4x1x8xf32, #tpu.memory_space<vmem>>, vector<1x1x1x8xf32>
    %394 = vector.shape_cast %393 : vector<1x1x1x8xf32> to vector<1x8xf32>
    %395 = vector.broadcast %394 : vector<1x8xf32> to vector<8x8xf32>
    %396 = arith.addf %392, %395 : vector<8x8xf32>
    %c1_291 = arith.constant 1 : index
    %c2_292 = arith.constant 2 : index
    %c0_293 = arith.constant 0 : index
    %c0_294 = arith.constant 0 : index
    %397 = vector.load %arg8[%c1_291, %c2_292, %c0_293, %c0_294] : memref<2x4x32x8xbf16, #tpu.memory_space<vmem>>, vector<1x1x32x8xbf16>
    %398 = vector.shape_cast %397 : vector<1x1x32x8xbf16> to vector<32x8xbf16>
    %cst_295 = arith.constant dense<0.000000e+00> : vector<8x8xf32>
    %399 = tpu.matmul %296, %398, %cst_295 {dimension_numbers = #tpu.dot_dimension_numbers<[1], [0], [0], [1], [0, 0, 1, 1], [], []>} : vector<8x32xbf16>, vector<32x8xbf16>, vector<8x8xf32> -> vector<8x8xf32>
    %c1_296 = arith.constant 1 : index
    %c2_297 = arith.constant 2 : index
    %c0_298 = arith.constant 0 : index
    %c0_299 = arith.constant 0 : index
    %400 = vector.load %arg11[%c1_296, %c2_297, %c0_298, %c0_299] : memref<2x4x1x8xf32, #tpu.memory_space<vmem>>, vector<1x1x1x8xf32>
    %401 = vector.shape_cast %400 : vector<1x1x1x8xf32> to vector<1x8xf32>
    %402 = vector.broadcast %401 : vector<1x8xf32> to vector<8x8xf32>
    %403 = arith.addf %399, %402 : vector<8x8xf32>
    %c1_300 = arith.constant 1 : index
    %c2_301 = arith.constant 2 : index
    %c0_302 = arith.constant 0 : index
    %c0_303 = arith.constant 0 : index
    %404 = vector.load %arg9[%c1_300, %c2_301, %c0_302, %c0_303] : memref<2x4x32x8xbf16, #tpu.memory_space<vmem>>, vector<1x1x32x8xbf16>
    %405 = vector.shape_cast %404 : vector<1x1x32x8xbf16> to vector<32x8xbf16>
    %cst_304 = arith.constant dense<0.000000e+00> : vector<8x8xf32>
    %406 = tpu.matmul %296, %405, %cst_304 {dimension_numbers = #tpu.dot_dimension_numbers<[1], [0], [0], [1], [0, 0, 1, 1], [], []>} : vector<8x32xbf16>, vector<32x8xbf16>, vector<8x8xf32> -> vector<8x8xf32>
    %c1_305 = arith.constant 1 : index
    %c2_306 = arith.constant 2 : index
    %c0_307 = arith.constant 0 : index
    %c0_308 = arith.constant 0 : index
    %407 = vector.load %arg12[%c1_305, %c2_306, %c0_307, %c0_308] : memref<2x4x1x8xf32, #tpu.memory_space<vmem>>, vector<1x1x1x8xf32>
    %408 = vector.shape_cast %407 : vector<1x1x1x8xf32> to vector<1x8xf32>
    %409 = vector.broadcast %408 : vector<1x8xf32> to vector<8x8xf32>
    %410 = arith.addf %406, %409 : vector<8x8xf32>
    %411 = arith.truncf %396 : vector<8x8xf32> to vector<8x8xbf16>
    %412 = tpu.transpose %403, [1, 0] : vector<8x8xf32> -> vector<8x8xf32>
    %413 = arith.truncf %412 : vector<8x8xf32> to vector<8x8xbf16>
    %cst_309 = arith.constant dense<0.000000e+00> : vector<8x8xf32>
    %414 = tpu.matmul %411, %413, %cst_309 {dimension_numbers = #tpu.dot_dimension_numbers<[1], [0], [0], [1], [0, 0, 1, 1], [], []>} : vector<8x8xbf16>, vector<8x8xbf16>, vector<8x8xf32> -> vector<8x8xf32>
    %cst_310 = arith.constant 0.353553385 : f32
    %415 = vector.broadcast %cst_310 : f32 to vector<8x8xf32>
    %416 = arith.mulf %414, %415 : vector<8x8xf32>
    %417 = arith.addf %416, %15 : vector<8x8xf32>
    %cst_311 = arith.constant dense<0xFF800000> : vector<8xf32>
    %418 = vector.multi_reduction <maximumf>, %417, %cst_311 [1] : vector<8x8xf32> to vector<8xf32>
    %419 = vector.shape_cast %418 : vector<8xf32> to vector<8x1xf32>
    %420 = vector.broadcast %419 : vector<8x1xf32> to vector<8x8xf32>
    %421 = arith.subf %417, %420 : vector<8x8xf32>
    %422 = math.exp %421 : vector<8x8xf32>
    %cst_312 = arith.constant dense<0.000000e+00> : vector<8xf32>
    %423 = vector.multi_reduction <add>, %422, %cst_312 [1] : vector<8x8xf32> to vector<8xf32>
    %424 = vector.shape_cast %423 : vector<8xf32> to vector<8x1xf32>
    %425 = tpu.reciprocal %424 {approx = true} : vector<8x1xf32> -> vector<8x1xf32>
    %426 = vector.broadcast %425 : vector<8x1xf32> to vector<8x8xf32>
    %427 = arith.mulf %422, %426 : vector<8x8xf32>
    %428 = arith.truncf %427 : vector<8x8xf32> to vector<8x8xbf16>
    %429 = arith.truncf %410 : vector<8x8xf32> to vector<8x8xbf16>
    %cst_313 = arith.constant dense<0.000000e+00> : vector<8x8xf32>
    %430 = tpu.matmul %428, %429, %cst_313 {dimension_numbers = #tpu.dot_dimension_numbers<[1], [0], [0], [1], [0, 0, 1, 1], [], []>} : vector<8x8xbf16>, vector<8x8xbf16>, vector<8x8xf32> -> vector<8x8xf32>
    %431 = arith.truncf %430 : vector<8x8xf32> to vector<8x8xbf16>
    %c1_314 = arith.constant 1 : index
    %c2_315 = arith.constant 2 : index
    %c0_316 = arith.constant 0 : index
    %c0_317 = arith.constant 0 : index
    %432 = vector.load %arg13[%c1_314, %c2_315, %c0_316, %c0_317] : memref<2x4x8x32xbf16, #tpu.memory_space<vmem>>, vector<1x1x8x32xbf16>
    %433 = vector.shape_cast %432 : vector<1x1x8x32xbf16> to vector<8x32xbf16>
    %cst_318 = arith.constant dense<0.000000e+00> : vector<8x32xf32>
    %434 = tpu.matmul %431, %433, %cst_318 {dimension_numbers = #tpu.dot_dimension_numbers<[1], [0], [0], [1], [0, 0, 1, 1], [], []>} : vector<8x8xbf16>, vector<8x32xbf16>, vector<8x32xf32> -> vector<8x32xf32>
    %435 = arith.addf %389, %434 : vector<8x32xf32>
    %c1_319 = arith.constant 1 : index
    %c3_320 = arith.constant 3 : index
    %c0_321 = arith.constant 0 : index
    %c0_322 = arith.constant 0 : index
    %436 = vector.load %arg7[%c1_319, %c3_320, %c0_321, %c0_322] : memref<2x4x32x8xbf16, #tpu.memory_space<vmem>>, vector<1x1x32x8xbf16>
    %437 = vector.shape_cast %436 : vector<1x1x32x8xbf16> to vector<32x8xbf16>
    %cst_323 = arith.constant dense<0.000000e+00> : vector<8x8xf32>
    %438 = tpu.matmul %296, %437, %cst_323 {dimension_numbers = #tpu.dot_dimension_numbers<[1], [0], [0], [1], [0, 0, 1, 1], [], []>} : vector<8x32xbf16>, vector<32x8xbf16>, vector<8x8xf32> -> vector<8x8xf32>
    %c1_324 = arith.constant 1 : index
    %c3_325 = arith.constant 3 : index
    %c0_326 = arith.constant 0 : index
    %c0_327 = arith.constant 0 : index
    %439 = vector.load %arg10[%c1_324, %c3_325, %c0_326, %c0_327] : memref<2x4x1x8xf32, #tpu.memory_space<vmem>>, vector<1x1x1x8xf32>
    %440 = vector.shape_cast %439 : vector<1x1x1x8xf32> to vector<1x8xf32>
    %441 = vector.broadcast %440 : vector<1x8xf32> to vector<8x8xf32>
    %442 = arith.addf %438, %441 : vector<8x8xf32>
    %c1_328 = arith.constant 1 : index
    %c3_329 = arith.constant 3 : index
    %c0_330 = arith.constant 0 : index
    %c0_331 = arith.constant 0 : index
    %443 = vector.load %arg8[%c1_328, %c3_329, %c0_330, %c0_331] : memref<2x4x32x8xbf16, #tpu.memory_space<vmem>>, vector<1x1x32x8xbf16>
    %444 = vector.shape_cast %443 : vector<1x1x32x8xbf16> to vector<32x8xbf16>
    %cst_332 = arith.constant dense<0.000000e+00> : vector<8x8xf32>
    %445 = tpu.matmul %296, %444, %cst_332 {dimension_numbers = #tpu.dot_dimension_numbers<[1], [0], [0], [1], [0, 0, 1, 1], [], []>} : vector<8x32xbf16>, vector<32x8xbf16>, vector<8x8xf32> -> vector<8x8xf32>
    %c1_333 = arith.constant 1 : index
    %c3_334 = arith.constant 3 : index
    %c0_335 = arith.constant 0 : index
    %c0_336 = arith.constant 0 : index
    %446 = vector.load %arg11[%c1_333, %c3_334, %c0_335, %c0_336] : memref<2x4x1x8xf32, #tpu.memory_space<vmem>>, vector<1x1x1x8xf32>
    %447 = vector.shape_cast %446 : vector<1x1x1x8xf32> to vector<1x8xf32>
    %448 = vector.broadcast %447 : vector<1x8xf32> to vector<8x8xf32>
    %449 = arith.addf %445, %448 : vector<8x8xf32>
    %c1_337 = arith.constant 1 : index
    %c3_338 = arith.constant 3 : index
    %c0_339 = arith.constant 0 : index
    %c0_340 = arith.constant 0 : index
    %450 = vector.load %arg9[%c1_337, %c3_338, %c0_339, %c0_340] : memref<2x4x32x8xbf16, #tpu.memory_space<vmem>>, vector<1x1x32x8xbf16>
    %451 = vector.shape_cast %450 : vector<1x1x32x8xbf16> to vector<32x8xbf16>
    %cst_341 = arith.constant dense<0.000000e+00> : vector<8x8xf32>
    %452 = tpu.matmul %296, %451, %cst_341 {dimension_numbers = #tpu.dot_dimension_numbers<[1], [0], [0], [1], [0, 0, 1, 1], [], []>} : vector<8x32xbf16>, vector<32x8xbf16>, vector<8x8xf32> -> vector<8x8xf32>
    %c1_342 = arith.constant 1 : index
    %c3_343 = arith.constant 3 : index
    %c0_344 = arith.constant 0 : index
    %c0_345 = arith.constant 0 : index
    %453 = vector.load %arg12[%c1_342, %c3_343, %c0_344, %c0_345] : memref<2x4x1x8xf32, #tpu.memory_space<vmem>>, vector<1x1x1x8xf32>
    %454 = vector.shape_cast %453 : vector<1x1x1x8xf32> to vector<1x8xf32>
    %455 = vector.broadcast %454 : vector<1x8xf32> to vector<8x8xf32>
    %456 = arith.addf %452, %455 : vector<8x8xf32>
    %457 = arith.truncf %442 : vector<8x8xf32> to vector<8x8xbf16>
    %458 = tpu.transpose %449, [1, 0] : vector<8x8xf32> -> vector<8x8xf32>
    %459 = arith.truncf %458 : vector<8x8xf32> to vector<8x8xbf16>
    %cst_346 = arith.constant dense<0.000000e+00> : vector<8x8xf32>
    %460 = tpu.matmul %457, %459, %cst_346 {dimension_numbers = #tpu.dot_dimension_numbers<[1], [0], [0], [1], [0, 0, 1, 1], [], []>} : vector<8x8xbf16>, vector<8x8xbf16>, vector<8x8xf32> -> vector<8x8xf32>
    %cst_347 = arith.constant 0.353553385 : f32
    %461 = vector.broadcast %cst_347 : f32 to vector<8x8xf32>
    %462 = arith.mulf %460, %461 : vector<8x8xf32>
    %463 = arith.addf %462, %18 : vector<8x8xf32>
    %cst_348 = arith.constant dense<0xFF800000> : vector<8xf32>
    %464 = vector.multi_reduction <maximumf>, %463, %cst_348 [1] : vector<8x8xf32> to vector<8xf32>
    %465 = vector.shape_cast %464 : vector<8xf32> to vector<8x1xf32>
    %466 = vector.broadcast %465 : vector<8x1xf32> to vector<8x8xf32>
    %467 = arith.subf %463, %466 : vector<8x8xf32>
    %468 = math.exp %467 : vector<8x8xf32>
    %cst_349 = arith.constant dense<0.000000e+00> : vector<8xf32>
    %469 = vector.multi_reduction <add>, %468, %cst_349 [1] : vector<8x8xf32> to vector<8xf32>
    %470 = vector.shape_cast %469 : vector<8xf32> to vector<8x1xf32>
    %471 = tpu.reciprocal %470 {approx = true} : vector<8x1xf32> -> vector<8x1xf32>
    %472 = vector.broadcast %471 : vector<8x1xf32> to vector<8x8xf32>
    %473 = arith.mulf %468, %472 : vector<8x8xf32>
    %474 = arith.truncf %473 : vector<8x8xf32> to vector<8x8xbf16>
    %475 = arith.truncf %456 : vector<8x8xf32> to vector<8x8xbf16>
    %cst_350 = arith.constant dense<0.000000e+00> : vector<8x8xf32>
    %476 = tpu.matmul %474, %475, %cst_350 {dimension_numbers = #tpu.dot_dimension_numbers<[1], [0], [0], [1], [0, 0, 1, 1], [], []>} : vector<8x8xbf16>, vector<8x8xbf16>, vector<8x8xf32> -> vector<8x8xf32>
    %477 = arith.truncf %476 : vector<8x8xf32> to vector<8x8xbf16>
    %c1_351 = arith.constant 1 : index
    %c3_352 = arith.constant 3 : index
    %c0_353 = arith.constant 0 : index
    %c0_354 = arith.constant 0 : index
    %478 = vector.load %arg13[%c1_351, %c3_352, %c0_353, %c0_354] : memref<2x4x8x32xbf16, #tpu.memory_space<vmem>>, vector<1x1x8x32xbf16>
    %479 = vector.shape_cast %478 : vector<1x1x8x32xbf16> to vector<8x32xbf16>
    %cst_355 = arith.constant dense<0.000000e+00> : vector<8x32xf32>
    %480 = tpu.matmul %477, %479, %cst_355 {dimension_numbers = #tpu.dot_dimension_numbers<[1], [0], [0], [1], [0, 0, 1, 1], [], []>} : vector<8x8xbf16>, vector<8x32xbf16>, vector<8x32xf32> -> vector<8x32xf32>
    %481 = arith.addf %435, %480 : vector<8x32xf32>
    %c1_356 = arith.constant 1 : index
    %c0_357 = arith.constant 0 : index
    %c0_358 = arith.constant 0 : index
    %482 = vector.load %arg14[%c1_356, %c0_357, %c0_358] : memref<2x1x32xf32, #tpu.memory_space<vmem>>, vector<1x1x32xf32>
    %483 = vector.shape_cast %482 : vector<1x1x32xf32> to vector<1x32xf32>
    %484 = vector.broadcast %483 : vector<1x32xf32> to vector<8x32xf32>
    %485 = arith.addf %481, %484 : vector<8x32xf32>
    %486 = arith.addf %295, %485 : vector<8x32xf32>
    %cst_359 = arith.constant dense<0.000000e+00> : vector<8xf32>
    %487 = vector.multi_reduction <add>, %486, %cst_359 [1] : vector<8x32xf32> to vector<8xf32>
    %488 = vector.shape_cast %487 : vector<8xf32> to vector<8x1xf32>
    %cst_360 = arith.constant 3.200000e+01 : f32
    %489 = vector.broadcast %cst_360 : f32 to vector<8x1xf32>
    %490 = arith.divf %488, %489 : vector<8x1xf32>
    %491 = vector.broadcast %490 : vector<8x1xf32> to vector<8x32xf32>
    %492 = arith.subf %486, %491 : vector<8x32xf32>
    %493 = vector.broadcast %490 : vector<8x1xf32> to vector<8x32xf32>
    %494 = arith.subf %486, %493 : vector<8x32xf32>
    %495 = arith.mulf %492, %494 : vector<8x32xf32>
    %cst_361 = arith.constant dense<0.000000e+00> : vector<8xf32>
    %496 = vector.multi_reduction <add>, %495, %cst_361 [1] : vector<8x32xf32> to vector<8xf32>
    %497 = vector.shape_cast %496 : vector<8xf32> to vector<8x1xf32>
    %cst_362 = arith.constant 3.200000e+01 : f32
    %498 = vector.broadcast %cst_362 : f32 to vector<8x1xf32>
    %499 = arith.divf %497, %498 : vector<8x1xf32>
    %500 = vector.broadcast %490 : vector<8x1xf32> to vector<8x32xf32>
    %501 = arith.subf %486, %500 : vector<8x32xf32>
    %cst_363 = arith.constant 9.99999997E-7 : f32
    %502 = vector.broadcast %cst_363 : f32 to vector<8x1xf32>
    %503 = arith.addf %499, %502 : vector<8x1xf32>
    %504 = math.rsqrt %503 : vector<8x1xf32>
    %505 = vector.broadcast %504 : vector<8x1xf32> to vector<8x32xf32>
    %506 = arith.mulf %501, %505 : vector<8x32xf32>
    %c1_364 = arith.constant 1 : index
    %c0_365 = arith.constant 0 : index
    %c0_366 = arith.constant 0 : index
    %507 = vector.load %arg15[%c1_364, %c0_365, %c0_366] : memref<2x1x32xf32, #tpu.memory_space<vmem>>, vector<1x1x32xf32>
    %508 = vector.shape_cast %507 : vector<1x1x32xf32> to vector<1x32xf32>
    %509 = vector.broadcast %508 : vector<1x32xf32> to vector<8x32xf32>
    %510 = arith.mulf %506, %509 : vector<8x32xf32>
    %c1_367 = arith.constant 1 : index
    %c0_368 = arith.constant 0 : index
    %c0_369 = arith.constant 0 : index
    %511 = vector.load %arg16[%c1_367, %c0_368, %c0_369] : memref<2x1x32xf32, #tpu.memory_space<vmem>>, vector<1x1x32xf32>
    %512 = vector.shape_cast %511 : vector<1x1x32xf32> to vector<1x32xf32>
    %513 = vector.broadcast %512 : vector<1x32xf32> to vector<8x32xf32>
    %514 = arith.addf %510, %513 : vector<8x32xf32>
    %515 = arith.truncf %514 : vector<8x32xf32> to vector<8x32xbf16>
    %c1_370 = arith.constant 1 : index
    %c0_371 = arith.constant 0 : index
    %c0_372 = arith.constant 0 : index
    %516 = vector.load %arg17[%c1_370, %c0_371, %c0_372] : memref<2x32x64xbf16, #tpu.memory_space<vmem>>, vector<1x32x64xbf16>
    %517 = vector.shape_cast %516 : vector<1x32x64xbf16> to vector<32x64xbf16>
    %cst_373 = arith.constant dense<0.000000e+00> : vector<8x64xf32>
    %518 = tpu.matmul %515, %517, %cst_373 {dimension_numbers = #tpu.dot_dimension_numbers<[1], [0], [0], [1], [0, 0, 1, 1], [], []>} : vector<8x32xbf16>, vector<32x64xbf16>, vector<8x64xf32> -> vector<8x64xf32>
    %c1_374 = arith.constant 1 : index
    %c0_375 = arith.constant 0 : index
    %c0_376 = arith.constant 0 : index
    %519 = vector.load %arg18[%c1_374, %c0_375, %c0_376] : memref<2x1x64xf32, #tpu.memory_space<vmem>>, vector<1x1x64xf32>
    %520 = vector.shape_cast %519 : vector<1x1x64xf32> to vector<1x64xf32>
    %521 = vector.broadcast %520 : vector<1x64xf32> to vector<8x64xf32>
    %522 = arith.addf %518, %521 : vector<8x64xf32>
    %cst_377 = arith.constant 5.000000e-01 : f32
    %523 = vector.broadcast %cst_377 : f32 to vector<8x64xf32>
    %524 = arith.mulf %523, %522 : vector<8x64xf32>
    %cst_378 = arith.constant 4.471500e-02 : f32
    %525 = vector.broadcast %cst_378 : f32 to vector<8x64xf32>
    %526 = arith.mulf %525, %522 : vector<8x64xf32>
    %527 = arith.mulf %526, %522 : vector<8x64xf32>
    %528 = arith.mulf %527, %522 : vector<8x64xf32>
    %529 = arith.addf %522, %528 : vector<8x64xf32>
    %cst_379 = arith.constant 0.797884583 : f32
    %530 = vector.broadcast %cst_379 : f32 to vector<8x64xf32>
    %531 = arith.mulf %530, %529 : vector<8x64xf32>
    %532 = math.tanh %531 : vector<8x64xf32>
    %cst_380 = arith.constant 1.000000e+00 : f32
    %533 = vector.broadcast %cst_380 : f32 to vector<8x64xf32>
    %534 = arith.addf %533, %532 : vector<8x64xf32>
    %535 = arith.mulf %524, %534 : vector<8x64xf32>
    %536 = arith.truncf %535 : vector<8x64xf32> to vector<8x64xbf16>
    %c1_381 = arith.constant 1 : index
    %c0_382 = arith.constant 0 : index
    %c0_383 = arith.constant 0 : index
    %537 = vector.load %arg19[%c1_381, %c0_382, %c0_383] : memref<2x64x32xbf16, #tpu.memory_space<vmem>>, vector<1x64x32xbf16>
    %538 = vector.shape_cast %537 : vector<1x64x32xbf16> to vector<64x32xbf16>
    %cst_384 = arith.constant dense<0.000000e+00> : vector<8x32xf32>
    %539 = tpu.matmul %536, %538, %cst_384 {dimension_numbers = #tpu.dot_dimension_numbers<[1], [0], [0], [1], [0, 0, 1, 1], [], []>} : vector<8x64xbf16>, vector<64x32xbf16>, vector<8x32xf32> -> vector<8x32xf32>
    %c1_385 = arith.constant 1 : index
    %c0_386 = arith.constant 0 : index
    %c0_387 = arith.constant 0 : index
    %540 = vector.load %arg20[%c1_385, %c0_386, %c0_387] : memref<2x1x32xf32, #tpu.memory_space<vmem>>, vector<1x1x32xf32>
    %541 = vector.shape_cast %540 : vector<1x1x32xf32> to vector<1x32xf32>
    %542 = vector.broadcast %541 : vector<1x32xf32> to vector<8x32xf32>
    %543 = arith.addf %539, %542 : vector<8x32xf32>
    %544 = arith.addf %514, %543 : vector<8x32xf32>
    %cst_388 = arith.constant dense<0.000000e+00> : vector<8xf32>
    %545 = vector.multi_reduction <add>, %544, %cst_388 [1] : vector<8x32xf32> to vector<8xf32>
    %546 = vector.shape_cast %545 : vector<8xf32> to vector<8x1xf32>
    %cst_389 = arith.constant 3.200000e+01 : f32
    %547 = vector.broadcast %cst_389 : f32 to vector<8x1xf32>
    %548 = arith.divf %546, %547 : vector<8x1xf32>
    %549 = vector.broadcast %548 : vector<8x1xf32> to vector<8x32xf32>
    %550 = arith.subf %544, %549 : vector<8x32xf32>
    %551 = vector.broadcast %548 : vector<8x1xf32> to vector<8x32xf32>
    %552 = arith.subf %544, %551 : vector<8x32xf32>
    %553 = arith.mulf %550, %552 : vector<8x32xf32>
    %cst_390 = arith.constant dense<0.000000e+00> : vector<8xf32>
    %554 = vector.multi_reduction <add>, %553, %cst_390 [1] : vector<8x32xf32> to vector<8xf32>
    %555 = vector.shape_cast %554 : vector<8xf32> to vector<8x1xf32>
    %cst_391 = arith.constant 3.200000e+01 : f32
    %556 = vector.broadcast %cst_391 : f32 to vector<8x1xf32>
    %557 = arith.divf %555, %556 : vector<8x1xf32>
    %558 = vector.broadcast %548 : vector<8x1xf32> to vector<8x32xf32>
    %559 = arith.subf %544, %558 : vector<8x32xf32>
    %cst_392 = arith.constant 9.99999997E-7 : f32
    %560 = vector.broadcast %cst_392 : f32 to vector<8x1xf32>
    %561 = arith.addf %557, %560 : vector<8x1xf32>
    %562 = math.rsqrt %561 : vector<8x1xf32>
    %563 = vector.broadcast %562 : vector<8x1xf32> to vector<8x32xf32>
    %564 = arith.mulf %559, %563 : vector<8x32xf32>
    %c1_393 = arith.constant 1 : index
    %c0_394 = arith.constant 0 : index
    %c0_395 = arith.constant 0 : index
    %565 = vector.load %arg21[%c1_393, %c0_394, %c0_395] : memref<2x1x32xf32, #tpu.memory_space<vmem>>, vector<1x1x32xf32>
    %566 = vector.shape_cast %565 : vector<1x1x32xf32> to vector<1x32xf32>
    %567 = vector.broadcast %566 : vector<1x32xf32> to vector<8x32xf32>
    %568 = arith.mulf %564, %567 : vector<8x32xf32>
    %c1_396 = arith.constant 1 : index
    %c0_397 = arith.constant 0 : index
    %c0_398 = arith.constant 0 : index
    %569 = vector.load %arg22[%c1_396, %c0_397, %c0_398] : memref<2x1x32xf32, #tpu.memory_space<vmem>>, vector<1x1x32xf32>
    %570 = vector.shape_cast %569 : vector<1x1x32xf32> to vector<1x32xf32>
    %571 = vector.broadcast %570 : vector<1x32xf32> to vector<8x32xf32>
    %572 = arith.addf %568, %571 : vector<8x32xf32>
    %573 = arith.truncf %572 : vector<8x32xf32> to vector<8x32xbf16>
    %c0_399 = arith.constant 0 : index
    %c0_400 = arith.constant 0 : index
    %574 = vector.load %arg23[%c0_399, %c0_400] : memref<32x32xbf16, #tpu.memory_space<vmem>>, vector<32x32xbf16>
    %cst_401 = arith.constant dense<0.000000e+00> : vector<8x32xf32>
    %575 = tpu.matmul %573, %574, %cst_401 {dimension_numbers = #tpu.dot_dimension_numbers<[1], [0], [0], [1], [0, 0, 1, 1], [], []>} : vector<8x32xbf16>, vector<32x32xbf16>, vector<8x32xf32> -> vector<8x32xf32>
    %c0_402 = arith.constant 0 : index
    %c0_403 = arith.constant 0 : index
    %576 = vector.load %arg24[%c0_402, %c0_403] : memref<1x32xf32, #tpu.memory_space<vmem>>, vector<1x32xf32>
    %577 = vector.broadcast %576 : vector<1x32xf32> to vector<8x32xf32>
    %578 = arith.addf %575, %577 : vector<8x32xf32>
    %cst_404 = arith.constant 5.000000e-01 : f32
    %579 = vector.broadcast %cst_404 : f32 to vector<8x32xf32>
    %580 = arith.mulf %579, %578 : vector<8x32xf32>
    %cst_405 = arith.constant 4.471500e-02 : f32
    %581 = vector.broadcast %cst_405 : f32 to vector<8x32xf32>
    %582 = arith.mulf %581, %578 : vector<8x32xf32>
    %583 = arith.mulf %582, %578 : vector<8x32xf32>
    %584 = arith.mulf %583, %578 : vector<8x32xf32>
    %585 = arith.addf %578, %584 : vector<8x32xf32>
    %cst_406 = arith.constant 0.797884583 : f32
    %586 = vector.broadcast %cst_406 : f32 to vector<8x32xf32>
    %587 = arith.mulf %586, %585 : vector<8x32xf32>
    %588 = math.tanh %587 : vector<8x32xf32>
    %cst_407 = arith.constant 1.000000e+00 : f32
    %589 = vector.broadcast %cst_407 : f32 to vector<8x32xf32>
    %590 = arith.addf %589, %588 : vector<8x32xf32>
    %591 = arith.mulf %580, %590 : vector<8x32xf32>
    %cst_408 = arith.constant dense<0.000000e+00> : vector<8xf32>
    %592 = vector.multi_reduction <add>, %591, %cst_408 [1] : vector<8x32xf32> to vector<8xf32>
    %593 = vector.shape_cast %592 : vector<8xf32> to vector<8x1xf32>
    %cst_409 = arith.constant 3.200000e+01 : f32
    %594 = vector.broadcast %cst_409 : f32 to vector<8x1xf32>
    %595 = arith.divf %593, %594 : vector<8x1xf32>
    %596 = vector.broadcast %595 : vector<8x1xf32> to vector<8x32xf32>
    %597 = arith.subf %591, %596 : vector<8x32xf32>
    %598 = vector.broadcast %595 : vector<8x1xf32> to vector<8x32xf32>
    %599 = arith.subf %591, %598 : vector<8x32xf32>
    %600 = arith.mulf %597, %599 : vector<8x32xf32>
    %cst_410 = arith.constant dense<0.000000e+00> : vector<8xf32>
    %601 = vector.multi_reduction <add>, %600, %cst_410 [1] : vector<8x32xf32> to vector<8xf32>
    %602 = vector.shape_cast %601 : vector<8xf32> to vector<8x1xf32>
    %cst_411 = arith.constant 3.200000e+01 : f32
    %603 = vector.broadcast %cst_411 : f32 to vector<8x1xf32>
    %604 = arith.divf %602, %603 : vector<8x1xf32>
    %605 = vector.broadcast %595 : vector<8x1xf32> to vector<8x32xf32>
    %606 = arith.subf %591, %605 : vector<8x32xf32>
    %cst_412 = arith.constant 9.99999997E-7 : f32
    %607 = vector.broadcast %cst_412 : f32 to vector<8x1xf32>
    %608 = arith.addf %604, %607 : vector<8x1xf32>
    %609 = math.rsqrt %608 : vector<8x1xf32>
    %610 = vector.broadcast %609 : vector<8x1xf32> to vector<8x32xf32>
    %611 = arith.mulf %606, %610 : vector<8x32xf32>
    %c0_413 = arith.constant 0 : index
    %c0_414 = arith.constant 0 : index
    %612 = vector.load %arg25[%c0_413, %c0_414] : memref<1x32xf32, #tpu.memory_space<vmem>>, vector<1x32xf32>
    %613 = vector.broadcast %612 : vector<1x32xf32> to vector<8x32xf32>
    %614 = arith.mulf %611, %613 : vector<8x32xf32>
    %c0_415 = arith.constant 0 : index
    %c0_416 = arith.constant 0 : index
    %615 = vector.load %arg26[%c0_415, %c0_416] : memref<1x32xf32, #tpu.memory_space<vmem>>, vector<1x32xf32>
    %616 = vector.broadcast %615 : vector<1x32xf32> to vector<8x32xf32>
    %617 = arith.addf %614, %616 : vector<8x32xf32>
    %618 = arith.truncf %617 : vector<8x32xf32> to vector<8x32xbf16>
    %c0_417 = arith.constant 0 : index
    %c0_418 = arith.constant 0 : index
    %619 = vector.load %arg27[%c0_417, %c0_418] : memref<32x64xbf16, #tpu.memory_space<vmem>>, vector<32x64xbf16>
    %cst_419 = arith.constant dense<0.000000e+00> : vector<8x64xf32>
    %620 = tpu.matmul %618, %619, %cst_419 {dimension_numbers = #tpu.dot_dimension_numbers<[1], [0], [0], [1], [0, 0, 1, 1], [], []>} : vector<8x32xbf16>, vector<32x64xbf16>, vector<8x64xf32> -> vector<8x64xf32>
    %c0_420 = arith.constant 0 : index
    %c0_421 = arith.constant 0 : index
    %621 = vector.load %arg28[%c0_420, %c0_421] : memref<1x64xf32, #tpu.memory_space<vmem>>, vector<1x64xf32>
    %622 = vector.broadcast %621 : vector<1x64xf32> to vector<8x64xf32>
    %623 = arith.addf %620, %622 : vector<8x64xf32>
    %cst_422 = arith.constant dense<0xFF800000> : vector<8xf32>
    %624 = vector.multi_reduction <maximumf>, %623, %cst_422 [1] : vector<8x64xf32> to vector<8xf32>
    %625 = vector.shape_cast %624 : vector<8xf32> to vector<8x1xf32>
    %626 = vector.broadcast %625 : vector<8x1xf32> to vector<8x64xf32>
    %627 = arith.subf %623, %626 : vector<8x64xf32>
    %628 = math.exp %627 : vector<8x64xf32>
    %cst_423 = arith.constant dense<0.000000e+00> : vector<8xf32>
    %629 = vector.multi_reduction <add>, %628, %cst_423 [1] : vector<8x64xf32> to vector<8xf32>
    %630 = vector.shape_cast %629 : vector<8xf32> to vector<8x1xf32>
    %631 = math.log %630 : vector<8x1xf32>
    %632 = arith.addf %631, %625 : vector<8x1xf32>
    %633 = vector.broadcast %632 : vector<8x1xf32> to vector<8x64xf32>
    %634 = arith.subf %623, %633 : vector<8x64xf32>
    %c0_424 = arith.constant 0 : index
    %c0_425 = arith.constant 0 : index
    %c0_426 = arith.constant 0 : index
    %635 = vector.load %arg5[%c0_424, %c0_425, %c0_426] : memref<1x8x1xi32, #tpu.memory_space<vmem>>, vector<1x8x1xi32>
    %636 = vector.shape_cast %635 : vector<1x8x1xi32> to vector<8x1xi32>
    %c0_427 = arith.constant 0 : index
    %c0_428 = arith.constant 0 : index
    %c0_429 = arith.constant 0 : index
    %637 = vector.load %arg6[%c0_427, %c0_428, %c0_429] : memref<1x8x1xf32, #tpu.memory_space<vmem>>, vector<1x8x1xf32>
    %638 = vector.shape_cast %637 : vector<1x8x1xf32> to vector<8x1xf32>
    %639 = tpu.iota {dimensions = array<i32: 1>} : vector<8x64xi32>
    %640 = vector.broadcast %636 : vector<8x1xi32> to vector<8x64xi32>
    %641 = arith.cmpi eq, %639, %640 : vector<8x64xi32>
    %cst_430 = arith.constant 0.000000e+00 : f32
    %642 = vector.broadcast %cst_430 : f32 to vector<8x64xf32>
    %643 = arith.select %641, %634, %642 : vector<8x64xi1>, vector<8x64xf32>
    %cst_431 = arith.constant dense<0.000000e+00> : vector<8xf32>
    %644 = vector.multi_reduction <add>, %643, %cst_431 [1] : vector<8x64xf32> to vector<8xf32>
    %645 = vector.shape_cast %644 : vector<8xf32> to vector<8x1xf32>
    %646 = arith.mulf %645, %638 : vector<8x1xf32>
    %cst_432 = arith.constant dense<0.000000e+00> : vector<1xf32>
    %647 = vector.multi_reduction <add>, %646, %cst_432 [0] : vector<8x1xf32> to vector<1xf32>
    %648 = vector.shape_cast %647 : vector<1xf32> to vector<1x1xf32>
    %cst_433 = arith.constant 0.000000e+00 : f32
    %649 = vector.broadcast %cst_433 : f32 to vector<1x1xf32>
    %650 = arith.subf %649, %648 : vector<1x1xf32>
    %c0_434 = arith.constant 0 : index
    %c0_435 = arith.constant 0 : index
    %c0_436 = arith.constant 0 : index
    %651 = vector.load %arg29[%c0_434, %c0_435, %c0_436] : memref<1x1x1xf32, #tpu.memory_space<vmem>>, vector<1x1x1xf32>
    %652 = vector.shape_cast %651 : vector<1x1x1xf32> to vector<1x1xf32>
    %653 = vector.shape_cast %650 : vector<1x1xf32> to vector<1x1x1xf32>
    tpu.vector_store %arg29[%c0_434, %c0_435, %c0_436], %653 {strides = array<i32>} : memref<1x1x1xf32, #tpu.memory_space<vmem>>, vector<1x1x1xf32>,
    %cst_437 = arith.constant dense<0.000000e+00> : vector<8xf32>
    %654 = vector.multi_reduction <add>, %634, %cst_437 [1] : vector<8x64xf32> to vector<8xf32>
    %655 = vector.shape_cast %654 : vector<8xf32> to vector<8x1xf32>
    %656 = arith.mulf %655, %638 : vector<8x1xf32>
    %cst_438 = arith.constant dense<0.000000e+00> : vector<1xf32>
    %657 = vector.multi_reduction <add>, %656, %cst_438 [0] : vector<8x1xf32> to vector<1xf32>
    %658 = vector.shape_cast %657 : vector<1xf32> to vector<1x1xf32>
    %cst_439 = arith.constant 0.000000e+00 : f32
    %659 = vector.broadcast %cst_439 : f32 to vector<1x1xf32>
    %660 = arith.subf %659, %658 : vector<1x1xf32>
    %c0_440 = arith.constant 0 : index
    %c0_441 = arith.constant 0 : index
    %c0_442 = arith.constant 0 : index
    %661 = vector.load %arg30[%c0_440, %c0_441, %c0_442] : memref<1x1x1xf32, #tpu.memory_space<vmem>>, vector<1x1x1xf32>
    %662 = vector.shape_cast %661 : vector<1x1x1xf32> to vector<1x1xf32>
    %663 = vector.shape_cast %660 : vector<1x1xf32> to vector<1x1x1xf32>
    tpu.vector_store %arg30[%c0_440, %c0_441, %c0_442], %663 {strides = array<i32>} : memref<1x1x1xf32, #tpu.memory_space<vmem>>, vector<1x1x1xf32>,
    return
  }
  func.func @transform_0(%arg0: i32) -> (i32, i32, i32) {
    %c0_i32 = arith.constant 0 : i32
    %c0_i32_0 = arith.constant 0 : i32
    %c0_i32_1 = arith.constant 0 : i32
    return %arg0, %c0_i32, %c0_i32_0 : i32, i32, i32
  }
  func.func @transform_1(%arg0: i32) -> (i32, i32, i32) {
    %c0_i32 = arith.constant 0 : i32
    %c0_i32_0 = arith.constant 0 : i32
    %c0_i32_1 = arith.constant 0 : i32
    %c0_i32_2 = arith.constant 0 : i32
    return %c0_i32, %c0_i32_0, %c0_i32_1 : i32, i32, i32
  }
  func.func @transform_2(%arg0: i32) -> (i32, i32) {
    %c0_i32 = arith.constant 0 : i32
    %c0_i32_0 = arith.constant 0 : i32
    %c0_i32_1 = arith.constant 0 : i32
    return %c0_i32, %c0_i32_0 : i32, i32
  }
  func.func @transform_3(%arg0: i32) -> (i32, i32, i32) {
    %c0_i32 = arith.constant 0 : i32
    %c0_i32_0 = arith.constant 0 : i32
    %c0_i32_1 = arith.constant 0 : i32
    return %arg0, %c0_i32, %c0_i32_0 : i32, i32, i32
  }
  func.func @transform_4(%arg0: i32) -> (i32, i32, i32) {
    %c0_i32 = arith.constant 0 : i32
    %c0_i32_0 = arith.constant 0 : i32
    %c0_i32_1 = arith.constant 0 : i32
    return %arg0, %c0_i32, %c0_i32_0 : i32, i32, i32
  }
  func.func @transform_5(%arg0: i32) -> (i32, i32, i32) {
    %c0_i32 = arith.constant 0 : i32
    %c0_i32_0 = arith.constant 0 : i32
    %c0_i32_1 = arith.constant 0 : i32
    return %arg0, %c0_i32, %c0_i32_0 : i32, i32, i32
  }
  func.func @transform_6(%arg0: i32) -> (i32, i32, i32, i32) {
    %c0_i32 = arith.constant 0 : i32
    %c0_i32_0 = arith.constant 0 : i32
    %c0_i32_1 = arith.constant 0 : i32
    %c0_i32_2 = arith.constant 0 : i32
    %c0_i32_3 = arith.constant 0 : i32
    return %c0_i32, %c0_i32_0, %c0_i32_1, %c0_i32_2 : i32, i32, i32, i32
  }
  func.func @transform_7(%arg0: i32) -> (i32, i32, i32, i32) {
    %c0_i32 = arith.constant 0 : i32
    %c0_i32_0 = arith.constant 0 : i32
    %c0_i32_1 = arith.constant 0 : i32
    %c0_i32_2 = arith.constant 0 : i32
    %c0_i32_3 = arith.constant 0 : i32
    return %c0_i32, %c0_i32_0, %c0_i32_1, %c0_i32_2 : i32, i32, i32, i32
  }
  func.func @transform_8(%arg0: i32) -> (i32, i32, i32, i32) {
    %c0_i32 = arith.constant 0 : i32
    %c0_i32_0 = arith.constant 0 : i32
    %c0_i32_1 = arith.constant 0 : i32
    %c0_i32_2 = arith.constant 0 : i32
    %c0_i32_3 = arith.constant 0 : i32
    return %c0_i32, %c0_i32_0, %c0_i32_1, %c0_i32_2 : i32, i32, i32, i32
  }
  func.func @transform_9(%arg0: i32) -> (i32, i32, i32, i32) {
    %c0_i32 = arith.constant 0 : i32
    %c0_i32_0 = arith.constant 0 : i32
    %c0_i32_1 = arith.constant 0 : i32
    %c0_i32_2 = arith.constant 0 : i32
    %c0_i32_3 = arith.constant 0 : i32
    return %c0_i32, %c0_i32_0, %c0_i32_1, %c0_i32_2 : i32, i32, i32, i32
  }
  func.func @transform_10(%arg0: i32) -> (i32, i32, i32, i32) {
    %c0_i32 = arith.constant 0 : i32
    %c0_i32_0 = arith.constant 0 : i32
    %c0_i32_1 = arith.constant 0 : i32
    %c0_i32_2 = arith.constant 0 : i32
    %c0_i32_3 = arith.constant 0 : i32
    return %c0_i32, %c0_i32_0, %c0_i32_1, %c0_i32_2 : i32, i32, i32, i32
  }
  func.func @transform_11(%arg0: i32) -> (i32, i32, i32, i32) {
    %c0_i32 = arith.constant 0 : i32
    %c0_i32_0 = arith.constant 0 : i32
    %c0_i32_1 = arith.constant 0 : i32
    %c0_i32_2 = arith.constant 0 : i32
    %c0_i32_3 = arith.constant 0 : i32
    return %c0_i32, %c0_i32_0, %c0_i32_1, %c0_i32_2 : i32, i32, i32, i32
  }
  func.func @transform_12(%arg0: i32) -> (i32, i32, i32, i32) {
    %c0_i32 = arith.constant 0 : i32
    %c0_i32_0 = arith.constant 0 : i32
    %c0_i32_1 = arith.constant 0 : i32
    %c0_i32_2 = arith.constant 0 : i32
    %c0_i32_3 = arith.constant 0 : i32
    return %c0_i32, %c0_i32_0, %c0_i32_1, %c0_i32_2 : i32, i32, i32, i32
  }
  func.func @transform_13(%arg0: i32) -> (i32, i32, i32) {
    %c0_i32 = arith.constant 0 : i32
    %c0_i32_0 = arith.constant 0 : i32
    %c0_i32_1 = arith.constant 0 : i32
    %c0_i32_2 = arith.constant 0 : i32
    return %c0_i32, %c0_i32_0, %c0_i32_1 : i32, i32, i32
  }
  func.func @transform_14(%arg0: i32) -> (i32, i32, i32) {
    %c0_i32 = arith.constant 0 : i32
    %c0_i32_0 = arith.constant 0 : i32
    %c0_i32_1 = arith.constant 0 : i32
    %c0_i32_2 = arith.constant 0 : i32
    return %c0_i32, %c0_i32_0, %c0_i32_1 : i32, i32, i32
  }
  func.func @transform_15(%arg0: i32) -> (i32, i32, i32) {
    %c0_i32 = arith.constant 0 : i32
    %c0_i32_0 = arith.constant 0 : i32
    %c0_i32_1 = arith.constant 0 : i32
    %c0_i32_2 = arith.constant 0 : i32
    return %c0_i32, %c0_i32_0, %c0_i32_1 : i32, i32, i32
  }
  func.func @transform_16(%arg0: i32) -> (i32, i32, i32) {
    %c0_i32 = arith.constant 0 : i32
    %c0_i32_0 = arith.constant 0 : i32
    %c0_i32_1 = arith.constant 0 : i32
    %c0_i32_2 = arith.constant 0 : i32
    return %c0_i32, %c0_i32_0, %c0_i32_1 : i32, i32, i32
  }
  func.func @transform_17(%arg0: i32) -> (i32, i32, i32) {
    %c0_i32 = arith.constant 0 : i32
    %c0_i32_0 = arith.constant 0 : i32
    %c0_i32_1 = arith.constant 0 : i32
    %c0_i32_2 = arith.constant 0 : i32
    return %c0_i32, %c0_i32_0, %c0_i32_1 : i32, i32, i32
  }
  func.func @transform_18(%arg0: i32) -> (i32, i32, i32) {
    %c0_i32 = arith.constant 0 : i32
    %c0_i32_0 = arith.constant 0 : i32
    %c0_i32_1 = arith.constant 0 : i32
    %c0_i32_2 = arith.constant 0 : i32
    return %c0_i32, %c0_i32_0, %c0_i32_1 : i32, i32, i32
  }
  func.func @transform_19(%arg0: i32) -> (i32, i32, i32) {
    %c0_i32 = arith.constant 0 : i32
    %c0_i32_0 = arith.constant 0 : i32
    %c0_i32_1 = arith.constant 0 : i32
    %c0_i32_2 = arith.constant 0 : i32
    return %c0_i32, %c0_i32_0, %c0_i32_1 : i32, i32, i32
  }
  func.func @transform_20(%arg0: i32) -> (i32, i32, i32) {
    %c0_i32 = arith.constant 0 : i32
    %c0_i32_0 = arith.constant 0 : i32
    %c0_i32_1 = arith.constant 0 : i32
    %c0_i32_2 = arith.constant 0 : i32
    return %c0_i32, %c0_i32_0, %c0_i32_1 : i32, i32, i32
  }
  func.func @transform_21(%arg0: i32) -> (i32, i32, i32) {
    %c0_i32 = arith.constant 0 : i32
    %c0_i32_0 = arith.constant 0 : i32
    %c0_i32_1 = arith.constant 0 : i32
    %c0_i32_2 = arith.constant 0 : i32
    return %c0_i32, %c0_i32_0, %c0_i32_1 : i32, i32, i32
  }
  func.func @transform_22(%arg0: i32) -> (i32, i32) {
    %c0_i32 = arith.constant 0 : i32
    %c0_i32_0 = arith.constant 0 : i32
    %c0_i32_1 = arith.constant 0 : i32
    return %c0_i32, %c0_i32_0 : i32, i32
  }
  func.func @transform_23(%arg0: i32) -> (i32, i32) {
    %c0_i32 = arith.constant 0 : i32
    %c0_i32_0 = arith.constant 0 : i32
    %c0_i32_1 = arith.constant 0 : i32
    return %c0_i32, %c0_i32_0 : i32, i32
  }
  func.func @transform_24(%arg0: i32) -> (i32, i32) {
    %c0_i32 = arith.constant 0 : i32
    %c0_i32_0 = arith.constant 0 : i32
    %c0_i32_1 = arith.constant 0 : i32
    return %c0_i32, %c0_i32_0 : i32, i32
  }
  func.func @transform_25(%arg0: i32) -> (i32, i32) {
    %c0_i32 = arith.constant 0 : i32
    %c0_i32_0 = arith.constant 0 : i32
    %c0_i32_1 = arith.constant 0 : i32
    return %c0_i32, %c0_i32_0 : i32, i32
  }
  func.func @transform_26(%arg0: i32) -> (i32, i32) {
    %c0_i32 = arith.constant 0 : i32
    %c0_i32_0 = arith.constant 0 : i32
    %c0_i32_1 = arith.constant 0 : i32
    return %c0_i32, %c0_i32_0 : i32, i32
  }
  func.func @transform_27(%arg0: i32) -> (i32, i32) {
    %c0_i32 = arith.constant 0 : i32
    %c0_i32_0 = arith.constant 0 : i32
    %c0_i32_1 = arith.constant 0 : i32
    return %c0_i32, %c0_i32_0 : i32, i32
  }
  func.func @transform_28(%arg0: i32) -> (i32, i32, i32) {
    %c0_i32 = arith.constant 0 : i32
    %c0_i32_0 = arith.constant 0 : i32
    %c0_i32_1 = arith.constant 0 : i32
    return %arg0, %c0_i32, %c0_i32_0 : i32, i32, i32
  }
  func.func @transform_29(%arg0: i32) -> (i32, i32, i32) {
    %c0_i32 = arith.constant 0 : i32
    %c0_i32_0 = arith.constant 0 : i32
    %c0_i32_1 = arith.constant 0 : i32
    return %arg0, %c0_i32, %c0_i32_0 : i32, i32, i32
  }
}

</mosaic_0001>

<bundles_post_ra>
// kernel: tpu_custom_call.1
= control target key start
LH: loop header
LB: loop body
LE: loop exit
PB: predicated region body
PF: predicated region fallthrough
CT: control target
= control target key end

     0   :  { %s5889_s6 = smov 1   ;;  %s5890_s10 = smov 2   ;;  %s6606_s0 = inlined_call_operand.smem [shape: u32[30], index: -1, kind: input, shape index: {}] }
   0x1   :  { %s5929_s5 = sld [smem:[%s6606_s0]]   ;;  %s5891_s14 = smov 3  }
   0x2   :  { %s5934_s9 = sld [smem:[%s6606_s0 + %s5889_s6]]   ;;  %s5892_s18 = smov 4  }
   0x3   :  { %s5939_s13 = sld [smem:[%s6606_s0 + %s5890_s10]]   ;;  %s5893_s22 = smov 5  }
   0x4   :  { %s5944_s17 = sld [smem:[%s6606_s0 + %s5891_s14]]   ;;  %s5894_s26 = smov 6  }
   0x5   :  { %s5949_s21 = sld [smem:[%s6606_s0 + %s5892_s18]]   ;;  %s5895_s30 = smov 7  }
   0x6   :  { %s5954_s25 = sld [smem:[%s6606_s0 + %s5893_s22]]   ;;  %s5896_s4 = smov 8  }
   0x7   :  { %s5959_s29 = sld [smem:[%s6606_s0 + %s5894_s26]]   ;;  %s5897_s10 = smov 9  }
   0x8   :  { %s5964_s3 = sld [smem:[%s6606_s0 + %s5895_s30]]   ;;  %s5898_s15 = smov 10  }
   0x9   :  { %s5969_s8 = sld [smem:[%s6606_s0 + %s5896_s4]]   ;;  %s5899_s20 = smov 11  }
   0xa   :  { %s5974_s14 = sld [smem:[%s6606_s0 + %s5897_s10]]   ;;  %s5900_s26 = smov 12  }
   0xb   :  { %6614 = sst [smem:[#allocation2_spill]] %s5949_s21  ;;  %s5901_s1 = smov 13  }
   0xc   :  { %6615 = sst [smem:[#allocation3_spill]] %s5954_s25  ;;  %s5902_s7 = smov 14  }
   0xd   :  { %s5979_s19 = sld [smem:[%s6606_s0 + %s5898_s15]]   ;;  %s5903_s15 = smov 15  }
   0xe   :  { %s5984_s24 = sld [smem:[%s6606_s0 + %s5899_s20]]   ;;  %s5904_s22 = smov 16  }
   0xf   :  { %s5989_s30 = sld [smem:[%s6606_s0 + %s5900_s26]]   ;;  %s5905_s28 = smov 17  }
  0x10   :  { %s5994_s6 = sld [smem:[%s6606_s0 + %s5901_s1]]  }
  0x11   :  { %s5999_s12 = sld [smem:[%s6606_s0 + %s5902_s7]]   ;;  %s5906_s7 = smov 18  }
  0x12   :  { %s6004_s20 = sld [smem:[%s6606_s0 + %s5903_s15]]   ;;  %s5907_s15 = smov 19  }
  0x13   :  { %s6009_s27 = sld [smem:[%s6606_s0 + %s5904_s22]]   ;;  %s5908_s22 = smov 20  }
  0x14   :  { %s6014_s4 = sld [smem:[%s6606_s0 + %s5905_s28]]   ;;  %s5909_s28 = smov 21  }
  0x15   :  { %s6019_s25 = sld [smem:[%s6606_s0 + %s5906_s7]]   ;;  %s5910_s7 = smov 22  }
  0x16   :  { %s6024_s21 = sld [smem:[%s6606_s0 + %s5907_s15]]   ;;  %s5911_s15 = smov 23  }
  0x18   :  { %6616 = sst [smem:[#allocation4_spill]] %s6004_s20 }
  0x19   :  { %s6029_s20 = sld [smem:[%s6606_s0 + %s5908_s22]]   ;;  %s5912_s22 = smov 24  }
  0x1a   :  { %6617 = sst [smem:[#allocation5_spill]] %s6014_s4 }
  0x1b   :  { %6618 = sst [smem:[#allocation6_spill]] %s6019_s25 }
  0x1c   :  { %6619 = sst [smem:[#allocation7_spill]] %s6024_s21 }
  0x1d   :  { %s6034_s4 = sld [smem:[%s6606_s0 + %s5909_s28]]   ;;  %s5913_s28 = smov 25  }
  0x1e   :  { %s6039_s25 = sld [smem:[%s6606_s0 + %s5910_s7]]   ;;  %s5914_s7 = smov 26  }
  0x1f   :  { %6620 = sst [smem:[#allocation8_spill]] %s6029_s20 }
  0x20   :  { %s6044_s21 = sld [smem:[%s6606_s0 + %s5911_s15]]   ;;  %s5915_s15 = smov 27  }
  0x21   :  { %s6049_s20 = sld [smem:[%s6606_s0 + %s5912_s22]]   ;;  %s5916_s22 = smov 28  }
  0x23   :  { %6621 = sst [smem:[#allocation9_spill]] %s6034_s4 }
  0x24   :  { %6622 = sst [smem:[#allocation10_spill]] %s6039_s25 }
  0x25   :  { %s6054_s4 = sld [smem:[%s6606_s0 + %s5913_s28]]   ;;  %s5917_s28 = smov 29  }
  0x26   :  { %6623 = sst [smem:[#allocation11_spill]] %s6044_s21 }
  0x27   :  { %6624 = sst [smem:[#allocation12_spill]] %s6049_s20 }
  0x28   :  { %s6059_s25 = sld [smem:[%s6606_s0 + %s5914_s7]]   ;;  %s6076_s7 = smov 0  }
  0x29   :  { %s6064_s21 = sld [smem:[%s6606_s0 + %s5915_s15]]  }
  0x2a   :  { %s6069_s20 = sld [smem:[%s6606_s0 + %s5916_s22]]  }
  0x2b   :  { %6625 = sst [smem:[#allocation13_spill]] %s6054_s4 }
  0x2c   :  { %s6074_s4 = sld [smem:[%s6606_s0 + %s5917_s28]]  }
  0x2d LB: > { %s4884_s10 = sadd.s32 4294967295, %s5887_s7   ;;  %p4888_p0 = scmp.ge.s32.totalorder %s5887_s7, 1  ;;  %s5887_s7 = sphi %s6076_s7, %s70_s7  }
  0x2e   : > { %p845_p1 = scmp.lt.s32.totalorder %s5887_s7, 3 }
  0x30   : > { %p846_p2 = pnand %p4888_p0, %p845_p1 }
  0x31   : > { %p932_p3 = scmp.lt.s32.totalorder (!%p846_p2), %s4884_s10, 1  ;;  %s6626_s16 = sld [smem:[#allocation4_spill]] (!%p846_p2) }
  0x32   : > { %849 = sbr.rel (%p846_p2) target bundleno = 11412 (0x2c94), region = 132  ;;  %s6627_s18 = sld [smem:[#allocation6_spill]] (!%p846_p2) }
  0x33   : > { %s6628_s22 = sld [smem:[#allocation5_spill]] (!%p846_p2) }
  0x34   : > { %s6629_s23 = sld [smem:[#allocation7_spill]] (!%p846_p2) }
  0x35   : > { %s6630_s26 = sld [smem:[#allocation8_spill]] (!%p846_p2) }
  0x36   : > { %s6631_s28 = sld [smem:[#allocation9_spill]] (!%p846_p2) }
  0x37   : > { %v5765_v0 = vld [vmem:[%s5964_s3 + $0x8] sm:$0xff]   ;;  %v5918_v1 = vmov 0.0   ;;  %v5766_v2 = vld [vmem:[%s5964_s3] sm:$0xff]   ;;  %vm5919_vm0 = vmmov 0   ;;  %s6639_s10 = smov (!%p932_p3, %s4884_s10), 1  ;;  %vm999_vm1 = vcmask 261120  }
  0x38   : > { %5339 = vmatprep.subr.bf16.mxu1 %v5918_v1  ;;  %5331 = vmatprep.subr.bf16.mxu0 %v5918_v1  ;;  %v5767_v3 = vld [vmem:[%s5959_s29 + $0x8] sm:$0xff]   ;;  %v5768_v4 = vld [vmem:[%s5959_s29] sm:$0xff]   ;;  %s6098_s0 = sshll.u32 %s6639_s10, 3  ;;  %vm1207_vm2 = vcmask 1043456   ;;  %vm1203_vm3 = vcmask 64512   ;;  %s938_s15 = scalar_lea.vmem %s5944_s17, %s6639_s10  ;;  %v5773_v50 = vld [vmem:[%s5959_s29 + $0x18] sm:$0xff]  }
  0x39   : > { %5340 = vmatpush3.bf16.msra.mxu1 %v5765_v0  ;;  %5343 = vmatprep.mubr.msk.bf16.mxu1 %vm5919_vm0, %v5918_v1  ;;  %s935_s11 = scalar_lea.vmem %s5929_s5, %s6098_s0  ;;  %v4900_v7 = vld [vmem:[%s5979_s19] ss:$0 sm:$0xff]  ;;  %v5769_v23 = vld [vmem:[%s5969_s8 + $0x8] sm:$0xff]   ;;  %v5774_v51 = vld [vmem:[%s5959_s29 + $0x10] sm:$0xff]   ;;  %vm2672_vm4 = vcmask 523264   ;;  %s6632_s1 = sld [smem:[#allocation10_spill]] }
  0x3a   : > { %5341 = vmatprep.subr.bf16.mxu1 %v5918_v1  ;;  %5335 = vmatprep.mubr.msk.bf16.mxu0 %vm5919_vm0, %v5918_v1  ;;  %v6104_v5 = vld [vmem:[%s935_s11] sm:$0xff]  ;;  %v5771_v55 = vld [vmem:[%s5964_s3 + $0x18] sm:$0xff]   ;;  %v5772_v57 = vld [vmem:[%s5964_s3 + $0x10] sm:$0xff]   ;;  %s6633_s2 = sld [smem:[#allocation11_spill]]  ;;  %vm4726_vm6 = vcmask 7168   ;;  %vm4735_vm7 = vcmask 0  }
  0x3b   : > { %5332 = vmatpush3.bf16.msra.mxu0 %v5767_v3  ;;  %v6108_v6 = vpack.c.bf16 %v6104_v5, %v6104_v5  ;;  %v4896_v17 = vld [vmem:[%s5974_s14] ss:$0 sm:$0xff]  ;;  %v4924_v3 = vld [vmem:[%s5979_s19 + $0x1] ss:$0 sm:$0xff]  ;;  %s6634_s11 = sld [smem:[#allocation12_spill]] }
  0x3c   : > { %5333 = vmatprep.subr.bf16.mxu0 %v5918_v1  ;;  %v5770_v24 = vld [vmem:[%s5969_s8] sm:$0xff]  }
  0x3d   : > { %5342 = vmatpush3.bf16.msra.mxu1 %v5766_v2  ;;  %v955_v25 = vld [vmem:[%s5939_s13] sm:$0xff] }
  0x3e   : > { %5355 = vmatprep.subr.bf16.mxu1 %v5918_v1  ;;  %v4892_v26 = vld [vmem:[%s938_s15] ss:$0 sm:$0xff]  ;;  %s6635_s15 = sld [smem:[#allocation13_spill]] }
  0x3f   : > { %5334 = vmatpush3.bf16.msra.mxu0 %v5768_v4  ;;  %v6137_v27 = vadd.f32 %v4892_v26, %v955_v25  ;;  %v964_v28 = vld [vmem:[%s5934_s9] sm:$0xff] }
  0x40   : > { %5347 = vmatprep.subr.bf16.mxu0 %v5918_v1  ;;  %5344 = vmatmul.mubr.msk.bf16.vlgmr.msra.gmra.mxu1 %vm999_vm1, %v6108_v6  ;;  %v4904_v42 = vld [vmem:[%s5984_s24] ss:$0 sm:$0xff] }
  0x41   : > { %5357 = vmatprep.mubr.msk.bf16.mxu1 %vm5919_vm0, %v5918_v1  ;;  %v6141_v29 = vadd.f32 %v964_v28, %v6137_v27 }
  0x42   : > { %5336 = vmatmul.mubr.msk.bf16.vlgmr.msra.gmra.mxu0 %vm999_vm1, %v6108_v6 }
  0x43   : > { %5351 = vmatprep.mubr.msk.bf16.mxu0 %vm5919_vm0, %v5918_v1  ;;  %5348 = vmatpush3.bf16.msra.mxu0 %v5769_v23 }
  0x44   : > { %5349 = vmatprep.subr.bf16.mxu0 %v5918_v1 }
  0x47   : > { %5350 = vmatpush3.bf16.msra.mxu0 %v5770_v24 }
  0x48   : > { %5361 = vmatprep.subr.bf16.mxu0 %v5918_v1 }
  0x4a   : > { %5352 = vmatmul.mubr.msk.bf16.vlgmr.msra.gmra.mxu0 %vm999_vm1, %v6108_v6 }
  0x4b   : > { %5363 = vmatprep.mubr.msk.bf16.mxu0 %vm5919_vm0, %v5918_v1 }
 0x100   : > { %v1100_v8 = vpop.f32.mrf.mxu1 }
 0x101   : > { %v1101_v9 = vadd.f32 %v4900_v7, %v1100_v8 }
 0x102   : > { %v1037_v10 = vpop.f32.mrf.mxu0  ;;  %v5345_v11 = vpop.f32.mrf.mxu1 }
 0x103   : > { %1170 = vxpose.xlu0.b32.start.end [1/1] (short) (narrow) %v1101_v9, 8  ;;  %v1038_v18 = vadd.f32 %v4896_v17, %v1037_v10  ;;  %v4915_v11 = vld [vmem:[%s5974_s14 + $0x1] ss:$0 sm:$0xff]  ;;  %v5775_v17 = vld [vmem:[%s5969_s8 + $0x18] sm:$0xff]  }
 0x104   : > { %v5337_v12 = vpop.f32.mrf.mxu0  ;;  %v1103_v13 = vpop.f32.mrf.mxu1 }
 0x105   : > { %v1169_v21 = vpack.c.bf16 %v1038_v18, %v1038_v18  ;;  %v5776_v18 = vld [vmem:[%s5969_s8 + $0x10] sm:$0xff]  }
 0x106   : > { %v1040_v14 = vpop.f32.mrf.mxu0  ;;  %v5346_v15 = vpop.f32.mrf.mxu1 }
 0x108   : > { %v5338_v16 = vpop.f32.mrf.mxu0 }
 0x10a   : > { %v1163_v43 = vpop.f32.mrf.mxu0 }
 0x10b   : > { %v1164_v44 = vadd.f32 %v4904_v42, %v1163_v43 }
 0x10c   : > { %v5353_v45 = vpop.f32.mrf.mxu0 }
 0x10d   : > { %v1265_v46 = vpack.c.bf16 %v1164_v44, %v1164_v44  ;;  %v1313_v45 = vld [vmem:[%s5989_s30] sm:$0xf] }
 0x10e   : > { %v1166_v47 = vpop.f32.mrf.mxu0 }
 0x10f   : > { %v1270_v48 = vsel %vm1207_vm2, %v1265_v46, 0 }
 0x110   : > { %v5354_v49 = vpop.f32.mrf.mxu0  ;;  %5362 = vmatpush3.bf16.msra.mxu0 %v1270_v48  ;;  %v1703_v48 = vsel %vm1207_vm2, %v1313_v45, 0 }
 0x111   : > { %5375 = vmatprep.subr.bf16.mxu0 %v5918_v1  ;;  %v5777_v49 = vld [vmem:[%s5964_s3 + $0x28] sm:$0xff]  }
 0x17f   : > { %v1186_v19 = vpop.trf.xlu0 }
 0x180   : > { %v1202_v20 = vpack.c.bf16 %v1186_v19, %v1186_v19  ;;  %v4893_v19 = vld [vmem:[%s5934_s9 + $0x8] sm:$0xff] }
 0x182   : > { %v1209_v22 = vsel %vm1207_vm2, %v1202_v20, 0  ;;  %v6187_v20 = vadd.f32 %v4893_v19, %v6137_v27 }
 0x183   : > { %5356 = vmatpush3.bf16.msra.mxu1 %v1209_v22 }
 0x184   : > { %5367 = vmatprep.subr.bf16.mxu1 %v5918_v1 }
 0x186   : > { %5358 = vmatmul.mubr.msk.bf16.vlgmr.msra.gmra.mxu1 %vm1203_vm3, %v1169_v21 }
 0x187   : > { %5371 = vmatprep.mubr.msk.bf16.mxu1 %vm5919_vm0, %v5918_v1  ;;  %5368 = vmatpush3.bf16.msra.mxu1 %v5773_v50 }
 0x188   : > { %5369 = vmatprep.subr.bf16.mxu1 %v5918_v1 }
 0x18b   : > { %5370 = vmatpush3.bf16.msra.mxu1 %v5774_v51  ;;  %v5778_v51 = vld [vmem:[%s5964_s3 + $0x20] sm:$0xff]  }
 0x18c   : > { %5383 = vmatprep.subr.bf16.mxu1 %v5918_v1 }
 0x18e   : > { %5372 = vmatmul.mubr.msk.bf16.vlgmr.msra.gmra.mxu1 %vm999_vm1, %v6108_v6 }
 0x18f   : > { %5387 = vmatprep.mubr.msk.bf16.mxu1 %vm5919_vm0, %v5918_v1  ;;  %5384 = vmatpush3.bf16.msra.mxu1 %v5775_v17  ;;  %v4947_v17 = vld [vmem:[%s5974_s14 + $0x2] ss:$0 sm:$0xff] }
 0x190   : > { %5385 = vmatprep.subr.bf16.mxu1 %v5918_v1 }
 0x193   : > { %5386 = vmatpush3.bf16.msra.mxu1 %v5776_v18 }
 0x194   : > { %5397 = vmatprep.subr.bf16.mxu1 %v5918_v1 }
 0x196   : > { %5388 = vmatmul.mubr.msk.bf16.vlgmr.msra.gmra.mxu1 %vm999_vm1, %v6108_v6 }
 0x197   : > { %5399 = vmatprep.mubr.msk.bf16.mxu1 %vm5919_vm0, %v5918_v1 }
 0x246   : > { %v1245_v30 = vpop.f32.mrf.mxu1 }
 0x247   : > { %v1251_v31 = vmul.f32 0.35355338, %v1245_v30 }
 0x248   : > { %v5359_v32 = vpop.f32.mrf.mxu1 }
 0x249   : > { %v1252_v33 = vadd.f32 %v1251_v31, %v6141_v29 }
 0x24a   : > { %v1248_v34 = vpop.f32.mrf.mxu1 }
 0x24b   : > { %v1253_v35 = vsel %vm1203_vm3, %v1252_v33, -inf }
 0x24c   : > { %1254 = vmax.xlane.f32.xlu0 %v1253_v35  ;;  %v5360_v36 = vpop.f32.mrf.mxu1  ;;  %v4933_v35 = vld [vmem:[%s5984_s24 + $0x1] ss:$0 sm:$0xff] }
 0x24e   : > { %v1373_v58 = vpop.f32.mrf.mxu1 }
 0x24f   : > { %v1374_v12 = vadd.f32 %v4915_v11, %v1373_v58 }
 0x250   : > { %v5373_v59 = vpop.f32.mrf.mxu1 }
 0x251   : > { %v1509_v15 = vpack.c.bf16 %v1374_v12, %v1374_v12  ;;  %v5780_v59 = vld [vmem:[%s5959_s29 + $0x20] sm:$0xff]  }
 0x252   : > { %v1376_v60 = vpop.f32.mrf.mxu1 }
 0x254   : > { %v5374_v61 = vpop.f32.mrf.mxu1 }
 0x256   : > { %v1503_v36 = vpop.f32.mrf.mxu1 }
 0x2d5   : > { %v1255_v37 = vpop.xlane.xlu0 %1254 }
 0x2d6   : > { %v1256_v38 = vsub.f32 %v1252_v33, %v1255_v37  ;;  %v1504_v37 = vadd.f32 %v4933_v35, %v1503_v36 }
 0x2d8   : > { %v1257_v39 = vmul.f32 1.442695, %v1256_v38  ;;  %v5389_v38 = vpop.f32.mrf.mxu1 }
 0x2da   : > { %5829 = vpow2.f32 %v1257_v39  ;;  %v1603_v39 = vpack.c.bf16 %v1504_v37, %v1504_v37 }
 0x2e7   : > { %v5830_v40 = vpop.eup %5829 }
 0x2e8   : > { %v1259_v41 = vsel %vm1203_vm3, %v5830_v40, 0.0 }
 0x2e9   : > { %1260 = vadd.xlane.f32.xlu1 %v1259_v41  ;;  %v1608_v41 = vsel %vm1207_vm2, %v1603_v39, 0 }
 0x2ea   : > { %5398 = vmatpush3.bf16.msra.mxu1 %v1608_v41 }
 0x2eb   : > { %5409 = vmatprep.subr.bf16.mxu1 %v5918_v1 }
 0x372   : > { %v1261_v52 = vpop.xlane.xlu1 %1260 }
 0x373   : > { %5831 = vrcp.f32 %v1261_v52  ;;  %v4939_v52 = vld [vmem:[%s5989_s30 + $0x4] sm:$0xf] }
 0x380   : > { %v5832_v53 = vpop.eup %5831 }
 0x381   : > { %v1263_v54 = vmul.f32 %v5832_v53, %v5830_v40  ;;  %v1506_v40 = vpop.f32.mrf.mxu1  ;;  %v1657_v53 = vsel %vm1207_vm2, %v4939_v52, 0 }
 0x383   : > { %v1264_v56 = vpack.c.bf16 %v1263_v54, %v1263_v54  ;;  %v5390_v42 = vpop.f32.mrf.mxu1 }
 0x385   : > { %5364 = vmatmul.mubr.msk.bf16.vlgmr.msra.gmra.mxu0 %vm1203_vm3, %v1264_v56 }
 0x386   : > { %5376 = vmatpush3.bf16.msra.mxu0 %v5771_v55  ;;  %5379 = vmatprep.mubr.msk.bf16.mxu0 %vm5919_vm0, %v5918_v1  ;;  %v5779_v55 = vld [vmem:[%s5959_s29 + $0x28] sm:$0xff]  }
 0x387   : > { %5377 = vmatprep.subr.bf16.mxu0 %v5918_v1 }
 0x38a   : > { %5378 = vmatpush3.bf16.msra.mxu0 %v5772_v57 }
 0x38b   : > { %5391 = vmatprep.subr.bf16.mxu0 %v5918_v1 }
 0x38d   : > { %5380 = vmatmul.mubr.msk.bf16.vlgmr.msra.gmra.mxu0 %vm999_vm1, %v6108_v6 }
 0x38e   : > { %5393 = vmatprep.mubr.msk.bf16.mxu0 %vm5919_vm0, %v5918_v1 }
 0x445   : > { %v6168_v62 = vpop.f32.mrf.mxu0 }
 0x446   : > { %v1312_v50 = vpack.c.bf16 %v6168_v62, %v6168_v62 }
 0x447   : > { %v5365_v63 = vpop.f32.mrf.mxu0 }
 0x449   : > { %v1309_v0 = vpop.f32.mrf.mxu0 }
 0x44b   : > { %v5366_v2 = vpop.f32.mrf.mxu0 }
 0x44c   : > { %v4956_v2 = vld [vmem:[%s5979_s19 + $0x2] ss:$0 sm:$0xff] }
 0x44d   : > { %v1438_v4 = vpop.f32.mrf.mxu0 }
 0x44e   : > { %v1439_v7 = vadd.f32 %v4924_v3, %v1438_v4 }
 0x44f   : > { %v5381_v8 = vpop.f32.mrf.mxu0 }
 0x450   : > { %1510 = vxpose.xlu1.b32.start.end [1/1] (short) (narrow) %v1439_v7, 8 }
 0x451   : > { %v1441_v9 = vpop.f32.mrf.mxu0 }
 0x453   : > { %v5382_v10 = vpop.f32.mrf.mxu0 }
 0x4cc   : > { %v1526_v13 = vpop.trf.xlu1 }
 0x4cd   : > { %v1542_v14 = vpack.c.bf16 %v1526_v13, %v1526_v13 }
 0x4cf   : > { %v1547_v16 = vsel %vm1207_vm2, %v1542_v14, 0 }
 0x4d0   : > { %5392 = vmatpush3.bf16.msra.mxu0 %v1547_v16 }
 0x4d1   : > { %5403 = vmatprep.subr.bf16.mxu0 %v5918_v1 }
 0x4d3   : > { %5394 = vmatmul.mubr.msk.bf16.vlgmr.msra.gmra.mxu0 %vm1203_vm3, %v1509_v15 }
 0x4d4   : > { %5405 = vmatprep.mubr.msk.bf16.mxu0 %vm5919_vm0, %v5918_v1  ;;  %5404 = vmatpush3.bf16.msra.mxu0 %v1657_v53 }
 0x4d5   : > { %5415 = vmatprep.subr.bf16.mxu0 %v5918_v1 }
 0x593   : > { %v1583_v21 = vpop.f32.mrf.mxu0 }
 0x594   : > { %v1589_v22 = vmul.f32 0.35355338, %v1583_v21 }
 0x595   : > { %v5395_v23 = vpop.f32.mrf.mxu0 }
 0x596   : > { %v1590_v24 = vadd.f32 %v1589_v22, %v6187_v20 }
 0x597   : > { %v1586_v25 = vpop.f32.mrf.mxu0 }
 0x598   : > { %v1591_v26 = vsel %vm1203_vm3, %v1590_v24, -inf  ;;  %v5781_v25 = vld [vmem:[%s5969_s8 + $0x28] sm:$0xff]  }
 0x599   : > { %1592 = vmax.xlane.f32.xlu0 %v1591_v26  ;;  %v5396_v28 = vpop.f32.mrf.mxu0  ;;  %v5782_v26 = vld [vmem:[%s5969_s8 + $0x20] sm:$0xff]  }
 0x59a   : > { %v4894_v28 = vld [vmem:[%s5934_s9 + $0x10] sm:$0xff] }
 0x622   : > { %v1593_v30 = vpop.xlane.xlu0 %1592 }
 0x623   : > { %v1594_v31 = vsub.f32 %v1590_v24, %v1593_v30  ;;  %v6249_v30 = vadd.f32 %v4894_v28, %v6137_v27 }
 0x625   : > { %v1595_v32 = vmul.f32 1.442695, %v1594_v31 }
 0x627   : > { %5833 = vpow2.f32 %v1595_v32 }
 0x634   : > { %v5834_v33 = vpop.eup %5833 }
 0x635   : > { %v1597_v34 = vsel %vm1203_vm3, %v5834_v33, 0.0 }
 0x636   : > { %1598 = vadd.xlane.f32.xlu0 %v1597_v34 }
 0x6bf   : > { %v1599_v43 = vpop.xlane.xlu0 %1598 }
 0x6c0   : > { %5835 = vrcp.f32 %v1599_v43  ;;  %v4965_v43 = vld [vmem:[%s5984_s24 + $0x2] ss:$0 sm:$0xff] }
 0x6cd   : > { %v5836_v44 = vpop.eup %5835 }
 0x6ce   : > { %v1601_v46 = vmul.f32 %v5836_v44, %v5834_v33 }
 0x6d0   : > { %v1602_v47 = vpack.c.bf16 %v1601_v46, %v1601_v46 }
 0x6d2   : > { %5400 = vmatmul.mubr.msk.bf16.vlgmr.msra.gmra.mxu1 %vm1203_vm3, %v1602_v47 }
 0x6d3   : > { %5410 = vmatpush3.bf16.msra.mxu1 %v1703_v48  ;;  %5411 = vmatprep.mubr.msk.bf16.mxu1 %vm5919_vm0, %v5918_v1 }
 0x6d4   : > { %5423 = vmatprep.subr.bf16.mxu1 %v5918_v1 }
 0x6da   : > { %5412 = vmatmul.mubr.msk.bf16.vlgmr.msra.gmra.mxu1 %vm1203_vm3, %v1312_v50 }
 0x6db   : > { %5424 = vmatpush3.bf16.msra.mxu1 %v5777_v49  ;;  %5427 = vmatprep.mubr.msk.bf16.mxu1 %vm5919_vm0, %v5918_v1 }
 0x6dc   : > { %5425 = vmatprep.subr.bf16.mxu1 %v5918_v1 }
 0x6df   : > { %5426 = vmatpush3.bf16.msra.mxu1 %v5778_v51 }
 0x6e0   : > { %5439 = vmatprep.subr.bf16.mxu1 %v5918_v1 }
 0x6e2   : > { %5428 = vmatmul.mubr.msk.bf16.vlgmr.msra.gmra.mxu1 %vm999_vm1, %v6108_v6 }
 0x6e3   : > { %5441 = vmatprep.mubr.msk.bf16.mxu1 %vm5919_vm0, %v5918_v1 }
 0x792   : > { %v1644_v54 = vpop.f32.mrf.mxu1 }
 0x793   : > { %v1650_v56 = vpack.c.bf16 %v1644_v54, %v1644_v54 }
 0x794   : > { %v5401_v57 = vpop.f32.mrf.mxu1 }
 0x795   : > { %5406 = vmatmul.mubr.msk.bf16.vlgmr.msra.gmra.mxu0 %vm1203_vm3, %v1650_v56  ;;  %v5785_v57 = vld [vmem:[%s5959_s29 + $0x38] sm:$0xff]  }
 0x796   : > { %v1647_v58 = vpop.f32.mrf.mxu1  ;;  %5416 = vmatpush3.bf16.msra.mxu0 %v5779_v55  ;;  %5419 = vmatprep.mubr.msk.bf16.mxu0 %vm5919_vm0, %v5918_v1  ;;  %v4971_v55 = vld [vmem:[%s5989_s30 + $0x8] sm:$0xf] }
 0x797   : > { %5417 = vmatprep.subr.bf16.mxu0 %v5918_v1  ;;  %v2088_v56 = vsel %vm1207_vm2, %v4971_v55, 0  ;;  %v5786_v58 = vld [vmem:[%s5959_s29 + $0x30] sm:$0xff]  }
 0x798   : > { %v5402_v60 = vpop.f32.mrf.mxu1 }
 0x799   : > { %v5783_v60 = vld [vmem:[%s5964_s3 + $0x38] sm:$0xff]  }
 0x79a   : > { %v6223_v61 = vpop.f32.mrf.mxu1  ;;  %5418 = vmatpush3.bf16.msra.mxu0 %v5780_v59 }
 0x79b   : > { %5431 = vmatprep.subr.bf16.mxu0 %v5918_v1 }
 0x79c   : > { %v5413_v62 = vpop.f32.mrf.mxu1 }
 0x79d   : > { %5420 = vmatmul.mubr.msk.bf16.vlgmr.msra.gmra.mxu0 %vm999_vm1, %v6108_v6 }
 0x79e   : > { %v1742_v63 = vpop.f32.mrf.mxu1  ;;  %5435 = vmatprep.mubr.msk.bf16.mxu0 %vm5919_vm0, %v5918_v1  ;;  %5432 = vmatpush3.bf16.msra.mxu0 %v5781_v25 }
 0x79f   : > { %5433 = vmatprep.subr.bf16.mxu0 %v5918_v1 }
 0x7a0   : > { %v5414_v0 = vpop.f32.mrf.mxu1 }
 0x7a2   : > { %v1869_v3 = vpop.f32.mrf.mxu1  ;;  %5434 = vmatpush3.bf16.msra.mxu0 %v5782_v26 }
 0x7a3   : > { %v1870_v4 = vadd.f32 %v4956_v2, %v1869_v3  ;;  %5445 = vmatprep.subr.bf16.mxu0 %v5918_v1  ;;  %v5784_v2 = vld [vmem:[%s5964_s3 + $0x30] sm:$0xff]  }
 0x7a4   : > { %v5429_v7 = vpop.f32.mrf.mxu1 }
 0x7a5   : > { %1941 = vxpose.xlu1.b32.start.end [1/1] (short) (narrow) %v1870_v4, 8  ;;  %5436 = vmatmul.mubr.msk.bf16.vlgmr.msra.gmra.mxu0 %vm999_vm1, %v6108_v6 }
 0x7a6   : > { %v1872_v8 = vpop.f32.mrf.mxu1  ;;  %5447 = vmatprep.mubr.msk.bf16.mxu0 %vm5919_vm0, %v5918_v1 }
 0x7a8   : > { %v5430_v9 = vpop.f32.mrf.mxu1 }
 0x821   : > { %v1957_v10 = vpop.trf.xlu1 }
 0x822   : > { %v1973_v11 = vpack.c.bf16 %v1957_v10, %v1957_v10 }
 0x824   : > { %v1978_v12 = vsel %vm1207_vm2, %v1973_v11, 0 }
 0x825   : > { %5440 = vmatpush3.bf16.msra.mxu1 %v1978_v12 }
 0x826   : > { %5451 = vmatprep.subr.bf16.mxu1 %v5918_v1 }
 0x855   : > { %v6233_v13 = vpop.f32.mrf.mxu0 }
 0x856   : > { %v1740_v10 = vadd.f32 %v6223_v61, %v6233_v13 }
 0x857   : > { %v5407_v14 = vpop.f32.mrf.mxu0 }
 0x859   : > { %v1696_v15 = vpop.f32.mrf.mxu0 }
 0x85b   : > { %v5408_v16 = vpop.f32.mrf.mxu0 }
 0x85d   : > { %v1804_v18 = vpop.f32.mrf.mxu0 }
 0x85e   : > { %v1805_v19 = vadd.f32 %v4947_v17, %v1804_v18  ;;  %v4987_v17 = vld [vmem:[%s5979_s19 + $0x3] ss:$0 sm:$0xff] }
 0x85f   : > { %v5421_v21 = vpop.f32.mrf.mxu0 }
 0x860   : > { %v1940_v22 = vpack.c.bf16 %v1805_v19, %v1805_v19 }
 0x861   : > { %v1807_v23 = vpop.f32.mrf.mxu0 }
 0x862   : > { %5442 = vmatmul.mubr.msk.bf16.vlgmr.msra.gmra.mxu1 %vm1203_vm3, %v1940_v22 }
 0x863   : > { %v5422_v24 = vpop.f32.mrf.mxu0  ;;  %5453 = vmatprep.mubr.msk.bf16.mxu1 %vm5919_vm0, %v5918_v1  ;;  %5452 = vmatpush3.bf16.msra.mxu1 %v2088_v56 }
 0x864   : > { %5465 = vmatprep.subr.bf16.mxu1 %v5918_v1  ;;  %v4978_v24 = vld [vmem:[%s5974_s14 + $0x3] ss:$0 sm:$0xff] }
 0x865   : > { %v1934_v44 = vpop.f32.mrf.mxu0 }
 0x866   : > { %v1935_v45 = vadd.f32 %v4965_v43, %v1934_v44 }
 0x867   : > { %v5437_v46 = vpop.f32.mrf.mxu0 }
 0x868   : > { %v2034_v47 = vpack.c.bf16 %v1935_v45, %v1935_v45 }
 0x869   : > { %v1937_v48 = vpop.f32.mrf.mxu0 }
 0x86a   : > { %v2039_v49 = vsel %vm1207_vm2, %v2034_v47, 0 }
 0x86b   : > { %v5438_v50 = vpop.f32.mrf.mxu0  ;;  %5446 = vmatpush3.bf16.msra.mxu0 %v2039_v49 }
 0x86c   : > { %5457 = vmatprep.subr.bf16.mxu0 %v5918_v1 }
 0x922   : > { %v2014_v31 = vpop.f32.mrf.mxu1 }
 0x923   : > { %v2020_v32 = vmul.f32 0.35355338, %v2014_v31  ;;  %v5787_v31 = vld [vmem:[%s5969_s8 + $0x38] sm:$0xff]  }
 0x924   : > { %v5443_v33 = vpop.f32.mrf.mxu1 }
 0x925   : > { %v2021_v34 = vadd.f32 %v2020_v32, %v6249_v30  ;;  %v5788_v32 = vld [vmem:[%s5969_s8 + $0x30] sm:$0xff]   ;;  %v4895_v33 = vld [vmem:[%s5934_s9 + $0x18] sm:$0xff] }
 0x926   : > { %v2017_v35 = vpop.f32.mrf.mxu1 }
 0x927   : > { %v2022_v36 = vsel %vm1203_vm3, %v2021_v34, -inf }
 0x928   : > { %2023 = vmax.xlane.f32.xlu0 %v2022_v36  ;;  %v5444_v37 = vpop.f32.mrf.mxu1 }
 0x9b1   : > { %v2024_v38 = vpop.xlane.xlu0 %2023 }
 0x9b2   : > { %v2025_v39 = vsub.f32 %v2021_v34, %v2024_v38  ;;  %v6303_v34 = vadd.f32 %v4895_v33, %v6137_v27  ;;  %v4996_v27 = vld [vmem:[%s5984_s24 + $0x3] ss:$0 sm:$0xff]  ;;  %v5792_v33 = vld [vmem:[%s6627_s18 + $0x10] sm:$0xff]  }
 0x9b4   : > { %v2026_v40 = vmul.f32 1.442695, %v2025_v39 }
 0x9b6   : > { %5837 = vpow2.f32 %v2026_v40 }
 0x9c3   : > { %v5838_v41 = vpop.eup %5837 }
 0x9c4   : > { %v2028_v42 = vsel %vm1203_vm3, %v5838_v41, 0.0 }
 0x9c5   : > { %2029 = vadd.xlane.f32.xlu1 %v2028_v42 }
 0xa4e   : > { %v2030_v51 = vpop.xlane.xlu1 %2029 }
 0xa4f   : > { %5839 = vrcp.f32 %v2030_v51 }
 0xa5c   : > { %v5840_v52 = vpop.eup %5839 }
 0xa5d   : > { %v2032_v53 = vmul.f32 %v5840_v52, %v5838_v41 }
 0xa5f   : > { %v2033_v54 = vpack.c.bf16 %v2032_v53, %v2032_v53 }
 0xa61   : > { %5448 = vmatmul.mubr.msk.bf16.vlgmr.msra.gmra.mxu0 %vm1203_vm3, %v2033_v54 }
 0xa62   : > { %5461 = vmatprep.mubr.msk.bf16.mxu0 %vm5919_vm0, %v5918_v1  ;;  %5458 = vmatpush3.bf16.msra.mxu0 %v5785_v57  ;;  %v5002_v57 = vld [vmem:[%s5989_s30 + $0xc] sm:$0xf] }
 0xa63   : > { %5459 = vmatprep.subr.bf16.mxu0 %v5918_v1 }
 0xa66   : > { %5460 = vmatpush3.bf16.msra.mxu0 %v5786_v58  ;;  %v2474_v58 = vsel %vm1207_vm2, %v5002_v57, 0 }
 0xa67   : > { %5473 = vmatprep.subr.bf16.mxu0 %v5918_v1 }
 0xa69   : > { %5462 = vmatmul.mubr.msk.bf16.vlgmr.msra.gmra.mxu0 %vm999_vm1, %v6108_v6 }
 0xa6a   : > { %5477 = vmatprep.mubr.msk.bf16.mxu0 %vm5919_vm0, %v5918_v1  ;;  %5474 = vmatpush3.bf16.msra.mxu0 %v5787_v31 }
 0xa6b   : > { %5475 = vmatprep.subr.bf16.mxu0 %v5918_v1 }
 0xa6e   : > { %5476 = vmatpush3.bf16.msra.mxu0 %v5788_v32  ;;  %v5791_v32 = vld [vmem:[%s6627_s18 + $0x18] sm:$0xff]  }
 0xa6f   : > { %5487 = vmatprep.subr.bf16.mxu0 %v5918_v1 }
 0xa71   : > { %5478 = vmatmul.mubr.msk.bf16.vlgmr.msra.gmra.mxu0 %vm999_vm1, %v6108_v6 }
 0xa72   : > { %5489 = vmatprep.mubr.msk.bf16.mxu0 %vm5919_vm0, %v5918_v1 }
 0xb21   : > { %v2075_v59 = vpop.f32.mrf.mxu0 }
 0xb22   : > { %v2081_v62 = vpack.c.bf16 %v2075_v59, %v2075_v59 }
 0xb23   : > { %v5449_v63 = vpop.f32.mrf.mxu0 }
 0xb24   : > { %5454 = vmatmul.mubr.msk.bf16.vlgmr.msra.gmra.mxu1 %vm1203_vm3, %v2081_v62 }
 0xb25   : > { %v2078_v0 = vpop.f32.mrf.mxu0  ;;  %5466 = vmatpush3.bf16.msra.mxu1 %v5783_v60  ;;  %5469 = vmatprep.mubr.msk.bf16.mxu1 %vm5919_vm0, %v5918_v1 }
 0xb26   : > { %5467 = vmatprep.subr.bf16.mxu1 %v5918_v1 }
 0xb27   : > { %v5450_v3 = vpop.f32.mrf.mxu0 }
 0xb28   : > { %v5004_v3 = vld [vmem:[%s5994_s6] ss:$0 sm:$0xff] }
 0xb29   : > { %5468 = vmatpush3.bf16.msra.mxu1 %v5784_v2  ;;  %v2190_v4 = vpop.f32.mrf.mxu0 }
 0xb2a   : > { %5481 = vmatprep.subr.bf16.mxu1 %v5918_v1  ;;  %v2191_v25 = vadd.f32 %v4978_v24, %v2190_v4 }
 0xb2b   : > { %v5463_v7 = vpop.f32.mrf.mxu0 }
 0xb2c   : > { %5470 = vmatmul.mubr.msk.bf16.vlgmr.msra.gmra.mxu1 %vm999_vm1, %v6108_v6  ;;  %v2326_v13 = vpack.c.bf16 %v2191_v25, %v2191_v25  ;;  %v5005_v25 = vld [vmem:[%s5999_s12] ss:$0 sm:$0xff] }
 0xb2d   : > { %5483 = vmatprep.mubr.msk.bf16.mxu1 %vm5919_vm0, %v5918_v1  ;;  %v2193_v8 = vpop.f32.mrf.mxu0 }
 0xb2f   : > { %v5464_v9 = vpop.f32.mrf.mxu0 }
 0xb31   : > { %v2320_v46 = vpop.f32.mrf.mxu0 }
 0xb32   : > { %v2321_v47 = vadd.f32 %v4996_v27, %v2320_v46 }
 0xb33   : > { %v5479_v48 = vpop.f32.mrf.mxu0 }
 0xb34   : > { %v2420_v49 = vpack.c.bf16 %v2321_v47, %v2321_v47 }
 0xb35   : > { %v2323_v50 = vpop.f32.mrf.mxu0 }
 0xb36   : > { %v2425_v51 = vsel %vm1207_vm2, %v2420_v49, 0 }
 0xb37   : > { %v5480_v52 = vpop.f32.mrf.mxu0  ;;  %5488 = vmatpush3.bf16.msra.mxu0 %v2425_v51  ;;  %v5011_v51 = vld [vmem:[%s6629_s23] ss:$0 sm:$0xff] }
 0xb38   : > { %5499 = vmatprep.subr.bf16.mxu0 %v5918_v1 }
 0xbe4   : > { %v2124_v11 = vpop.f32.mrf.mxu1 }
 0xbe5   : > { %v6284_v12 = vadd.f32 %v2124_v11, %v1740_v10 }
 0xbe6   : > { %v5455_v14 = vpop.f32.mrf.mxu1 }
 0xbe8   : > { %v2127_v15 = vpop.f32.mrf.mxu1 }
 0xbea   : > { %v5456_v16 = vpop.f32.mrf.mxu1 }
 0xbec   : > { %v2255_v18 = vpop.f32.mrf.mxu1 }
 0xbed   : > { %v2256_v19 = vadd.f32 %v4987_v17, %v2255_v18 }
 0xbee   : > { %v5471_v21 = vpop.f32.mrf.mxu1 }
 0xbef   : > { %2327 = vxpose.xlu0.b32.start.end [1/1] (short) (narrow) %v2256_v19, 8  ;;  %v5790_v21 = vld [vmem:[%s6009_s27] sm:$0xff]  }
 0xbf0   : > { %v2258_v22 = vpop.f32.mrf.mxu1 }
 0xbf2   : > { %v5472_v23 = vpop.f32.mrf.mxu1 }
 0xc6b   : > { %v2343_v26 = vpop.trf.xlu0 }
 0xc6c   : > { %v2359_v61 = vpack.c.bf16 %v2343_v26, %v2343_v26 }
 0xc6e   : > { %v2364_v28 = vsel %vm1207_vm2, %v2359_v61, 0  ;;  %v5006_v61 = vld [vmem:[%s6626_s16] ss:$0 sm:$0xff] }
 0xc6f   : > { %5482 = vmatpush3.bf16.msra.mxu1 %v2364_v28 }
 0xc70   : > { %5493 = vmatprep.subr.bf16.mxu1 %v5918_v1 }
 0xc72   : > { %5484 = vmatmul.mubr.msk.bf16.vlgmr.msra.gmra.mxu1 %vm1203_vm3, %v2326_v13 }
 0xc73   : > { %5495 = vmatprep.mubr.msk.bf16.mxu1 %vm5919_vm0, %v5918_v1  ;;  %5494 = vmatpush3.bf16.msra.mxu1 %v2474_v58 }
 0xc74   : > { %5507 = vmatprep.subr.bf16.mxu1 %v5918_v1 }
 0xd32   : > { %v2400_v35 = vpop.f32.mrf.mxu1 }
 0xd33   : > { %v2406_v36 = vmul.f32 0.35355338, %v2400_v35  ;;  %v5793_v35 = vld [vmem:[%s6627_s18 + $0x8] sm:$0xff]  }
 0xd34   : > { %v5485_v37 = vpop.f32.mrf.mxu1 }
 0xd35   : > { %v2407_v38 = vadd.f32 %v2406_v36, %v6303_v34  ;;  %v5794_v36 = vld [vmem:[%s6627_s18] sm:$0xff]  }
 0xd36   : > { %v2403_v39 = vpop.f32.mrf.mxu1  ;;  %v5007_v37 = vld [vmem:[%s6628_s22] ss:$0 sm:$0xff] }
 0xd37   : > { %v2408_v40 = vsel %vm1203_vm3, %v2407_v38, -inf }
 0xd38   : > { %2409 = vmax.xlane.f32.xlu1 %v2408_v40  ;;  %v5486_v41 = vpop.f32.mrf.mxu1 }
 0xdc1   : > { %v2410_v42 = vpop.xlane.xlu1 %2409 }
 0xdc2   : > { %v2411_v6 = vsub.f32 %v2407_v38, %v2410_v42 }
 0xdc4   : > { %v2412_v43 = vmul.f32 1.442695, %v2411_v6 }
 0xdc6   : > { %5841 = vpow2.f32 %v2412_v43 }
 0xdd3   : > { %v5842_v44 = vpop.eup %5841 }
 0xdd4   : > { %v2414_v45 = vsel %vm1203_vm3, %v5842_v44, 0.0 }
 0xdd5   : > { %2415 = vadd.xlane.f32.xlu1 %v2414_v45 }
 0xe5e   : > { %v2416_v53 = vpop.xlane.xlu1 %2415 }
 0xe5f   : > { %5843 = vrcp.f32 %v2416_v53 }
 0xe6c   : > { %v5844_v54 = vpop.eup %5843 }
 0xe6d   : > { %v2418_v55 = vmul.f32 %v5844_v54, %v5842_v44 }
 0xe6f   : > { %v2419_v56 = vpack.c.bf16 %v2418_v55, %v2418_v55 }
 0xe71   : > { %5490 = vmatmul.mubr.msk.bf16.vlgmr.msra.gmra.mxu0 %vm1203_vm3, %v2419_v56 }
 0xe72   : > { %5503 = vmatprep.mubr.msk.bf16.mxu0 %vm5919_vm0, %v5918_v1 }
 0xf31   : > { %v2461_v59 = vpop.f32.mrf.mxu0 }
 0xf32   : > { %v2467_v60 = vpack.c.bf16 %v2461_v59, %v2461_v59 }
 0xf33   : > { %v5491_v62 = vpop.f32.mrf.mxu0 }
 0xf34   : > { %5496 = vmatmul.mubr.msk.bf16.vlgmr.msra.gmra.mxu1 %vm1203_vm3, %v2467_v60 }
 0xf35   : > { %v2464_v63 = vpop.f32.mrf.mxu0  ;;  %5515 = vmatprep.mubr.msk.bf16.mxu1 %vm5919_vm0, %v5918_v1  ;;  %5508 = vmatpush3.bf16.msra.mxu1 %v5791_v32 }
 0xf36   : > { %5509 = vmatprep.subr.bf16.mxu1 %v5918_v1 }
 0xf37   : > { %v5492_v0 = vpop.f32.mrf.mxu0 }
 0xf39   : > { %5510 = vmatpush3.bf16.msra.mxu1 %v5792_v33 }
 0xf3a   : > { %5511 = vmatprep.subr.bf16.mxu1 %v5918_v1 }
 0xf3d   : > { %5512 = vmatpush3.bf16.msra.mxu1 %v5793_v35  ;;  %v5033_v35 = vld [vmem:[%s5979_s19 + $0x4] ss:$0 sm:$0xff] }
 0xf3e   : > { %5513 = vmatprep.subr.bf16.mxu1 %v5918_v1 }
 0xf41   : > { %5514 = vmatpush3.bf16.msra.mxu1 %v5794_v36 }
 0xf42   : > { %5535 = vmatprep.subr.bf16.mxu1 %v5918_v1 }
 0xff4   : > { %v2510_v2 = vpop.f32.mrf.mxu1 }
 0xff5   : > { %v2516_v4 = vadd.f32 %v2510_v2, %v6284_v12  ;;  %v5789_v12 = vld [vmem:[%s6009_s27 + $0x8] sm:$0xff]  }
 0xff6   : > { %v5497_v7 = vpop.f32.mrf.mxu1  ;;  %5500 = vmatpush3.bf16.msra.mxu0 %v5789_v12  ;;  %v5795_v2 = vld [vmem:[%s5959_s29 + $0x48] sm:$0xff]  }
 0xff7   : > { %v2524_v8 = vadd.f32 %v5004_v3, %v2516_v4  ;;  %5501 = vmatprep.subr.bf16.mxu0 %v5918_v1  ;;  %v5796_v3 = vld [vmem:[%s5969_s8 + $0x48] sm:$0xff]   ;;  %v5797_v4 = vld [vmem:[%s5959_s29 + $0x40] sm:$0xff]  }
 0xff8   : > { %v2513_v9 = vpop.f32.mrf.mxu1  ;;  %v5798_v7 = vld [vmem:[%s5969_s8 + $0x40] sm:$0xff]  }
 0xff9   : > { %v2525_v10 = vadd.f32 %v2524_v8, %v6104_v5 }
 0xffa   : > { %v5498_v11 = vpop.f32.mrf.mxu1  ;;  %5502 = vmatpush3.bf16.msra.mxu0 %v5790_v21  ;;  %v5800_v21 = vld [vmem:[%s5964_s3 + $0x40] sm:$0xff]  }
 0xffb   : > { %v2526_v14 = vsel %vm999_vm1, %v2525_v10, 0.0  ;;  %5519 = vmatprep.subr.bf16.mxu0 %v5918_v1 }
 0xffc   : > { %2527 = vadd.xlane.f32.xlu0 %v2526_v14  ;;  %v5017_v14 = vld [vmem:[%s6630_s26] ss:$0 sm:$0xff] }
0x1085   : > { %v2528_v15 = vpop.xlane.xlu0 %2527 }
0x1086   : > { %v2530_v16 = vmul.f32 0.03125, %v2528_v15 }
0x1088   : > { %v2531_v17 = vsub.f32 %v2525_v10, %v2530_v16  ;;  %v5018_v16 = vld [vmem:[%s6631_s28] ss:$0 sm:$0xff] }
0x108a   : > { %v2532_v18 = vmul.f32 %v2531_v17, %v2531_v17 }
0x108c   : > { %v2533_v19 = vsel %vm999_vm1, %v2532_v18, 0.0 }
0x108d   : > { %2534 = vadd.xlane.f32.xlu1 %v2533_v19  ;;  %v5799_v19 = vld [vmem:[%s5964_s3 + $0x48] sm:$0xff]  }
0x1116   : > { %v2535_v5 = vpop.xlane.xlu1 %2534 }
0x1117   : > { %v2536_v22 = vmul.f32 0.03125, %v2535_v5  ;;  %v5042_v5 = vld [vmem:[%s5984_s24 + $0x4] ss:$0 sm:$0xff] }
0x1119   : > { %v2537_v23 = vadd.f32 1e-06, %v2536_v22 }
0x111b   : > { %5845 = vrsqrt.f32 %v2537_v23 }
0x1128   : > { %v5846_v24 = vpop.eup %5845 }
0x1129   : > { %v2539_v26 = vmul.f32 %v5846_v24, %v2531_v17 }
0x112b   : > { %v2547_v13 = vmul.f32 %v5005_v25, %v2539_v26 }
0x112d   : > { %v2555_v28 = vadd.f32 %v5006_v61, %v2547_v13 }
0x112f   : > { %v2556_v31 = vpack.c.bf16 %v2555_v28, %v2555_v28 }
0x1131   : > { %5504 = vmatmul.mubr.msk.bf16.vlgmr.msra.gmra.mxu0 %vm999_vm1, %v2556_v31 }
0x1132   : > { %5523 = vmatprep.mubr.msk.bf16.mxu0 %vm5919_vm0, %v5918_v1  ;;  %5520 = vmatpush3.bf16.msra.mxu0 %v5795_v2 }
0x1133   : > { %5521 = vmatprep.subr.bf16.mxu0 %v5918_v1 }
0x1136   : > { %5522 = vmatpush3.bf16.msra.mxu0 %v5797_v4 }
0x1137   : > { %5527 = vmatprep.subr.bf16.mxu0 %v5918_v1 }
0x11f1   : > { %v2617_v38 = vpop.f32.mrf.mxu0 }
0x11f2   : > { %v2618_v39 = vadd.f32 %v5007_v37, %v2617_v38 }
0x11f3   : > { %v5505_v40 = vpop.f32.mrf.mxu0 }
0x11f4   : > { %v2624_v41 = vmul.f32 0.044715, %v2618_v39  ;;  %v2623_v47 = vmul.f32 0.5, %v2618_v39 }
0x11f5   : > { %v2620_v42 = vpop.f32.mrf.mxu0 }
0x11f6   : > { %v2625_v6 = vmul.f32 %v2624_v41, %v2618_v39  ;;  %v5024_v41 = vld [vmem:[%s5974_s14 + $0x4] ss:$0 sm:$0xff] }
0x11f7   : > { %v5506_v43 = vpop.f32.mrf.mxu0 }
0x11f8   : > { %v2626_v44 = vmul.f32 %v2625_v6, %v2618_v39 }
0x11fa   : > { %v2627_v45 = vadd.f32 %v2626_v44, %v2618_v39 }
0x11fc   : > { %v2628_v27 = vmul.f32 0.7978846, %v2627_v45  ;;  %v5801_v45 = vld [vmem:[%s5959_s29 + $0x58] sm:$0xff]  }
0x11fe   : > { %5847 = vtanh.f32 %v2628_v27 }
0x120b   : > { %v5848_v46 = vpop.eup %5847 }
0x120c   : > { %v2630_v48 = vadd.f32 1.0, %v5848_v46  ;;  %v5802_v46 = vld [vmem:[%s5959_s29 + $0x50] sm:$0xff]  }
0x120e   : > { %v2631_v49 = vmul.f32 %v2630_v48, %v2623_v47  ;;  %v5803_v47 = vld [vmem:[%s5969_s8 + $0x58] sm:$0xff]   ;;  %v5804_v48 = vld [vmem:[%s5969_s8 + $0x50] sm:$0xff]  }
0x1210   : > { %v2632_v50 = vpack.c.bf16 %v2631_v49, %v2631_v49 }
0x1212   : > { %5516 = vmatmul.mubr.msk.bf16.vlgmr.msra.gmra.mxu1 %vm2672_vm4, %v2632_v50 }
0x1213   : > { %5539 = vmatprep.mubr.msk.bf16.mxu1 %vm5919_vm0, %v5918_v1  ;;  %5536 = vmatpush3.bf16.msra.mxu1 %v5796_v3 }
0x1214   : > { %5537 = vmatprep.subr.bf16.mxu1 %v5918_v1 }
0x1217   : > { %5538 = vmatpush3.bf16.msra.mxu1 %v5798_v7 }
0x1218   : > { %5549 = vmatprep.subr.bf16.mxu1 %v5918_v1 }
0x12d2   : > { %v2710_v52 = vpop.f32.mrf.mxu1 }
0x12d3   : > { %v2711_v53 = vadd.f32 %v5011_v51, %v2710_v52 }
0x12d4   : > { %v5517_v54 = vpop.f32.mrf.mxu1 }
0x12d5   : > { %v2716_v55 = vadd.f32 %v2711_v53, %v2555_v28 }
0x12d6   : > { %v2713_v56 = vpop.f32.mrf.mxu1 }
0x12d7   : > { %v2717_v57 = vsel %vm999_vm1, %v2716_v55, 0.0 }
0x12d8   : > { %2718 = vadd.xlane.f32.xlu1 %v2717_v57  ;;  %v5518_v58 = vpop.f32.mrf.mxu1 }
0x1361   : > { %v2719_v59 = vpop.xlane.xlu1 %2718 }
0x1362   : > { %v2720_v60 = vmul.f32 0.03125, %v2719_v59 }
0x1364   : > { %v2721_v62 = vsub.f32 %v2716_v55, %v2720_v60  ;;  %v5072_v60 = vld [vmem:[%s5984_s24 + $0x5] ss:$0 sm:$0xff] }
0x1366   : > { %v2722_v63 = vmul.f32 %v2721_v62, %v2721_v62 }
0x1368   : > { %v2723_v0 = vsel %vm999_vm1, %v2722_v63, 0.0 }
0x1369   : > { %2724 = vadd.xlane.f32.xlu1 %v2723_v0 }
0x13f2   : > { %v2725_v8 = vpop.xlane.xlu1 %2724 }
0x13f3   : > { %v2726_v9 = vmul.f32 0.03125, %v2725_v8 }
0x13f5   : > { %v2727_v10 = vadd.f32 1e-06, %v2726_v9 }
0x13f7   : > { %5849 = vrsqrt.f32 %v2727_v10 }
0x1404   : > { %v5850_v11 = vpop.eup %5849 }
0x1405   : > { %v2729_v15 = vmul.f32 %v5850_v11, %v2721_v62 }
0x1407   : > { %v2737_v17 = vmul.f32 %v5017_v14, %v2729_v15 }
0x1409   : > { %v6359_v18 = vadd.f32 %v5018_v16, %v2737_v17  ;;  %v5805_v17 = vld [vmem:[%s5964_s3 + $0x58] sm:$0xff]  }
0x140b   : > { %v6364_v12 = vpack.c.bf16 %v6359_v18, %v6359_v18 }
0x140d   : > { %5524 = vmatmul.mubr.msk.bf16.vlgmr.msra.gmra.mxu0 %vm999_vm1, %v6364_v12  ;;  %5540 = vmatmul.mubr.msk.bf16.vlgmr.msra.gmra.mxu1 %vm999_vm1, %v6364_v12 }
0x140e   : > { %5528 = vmatpush3.bf16.msra.mxu0 %v5799_v19  ;;  %5531 = vmatprep.mubr.msk.bf16.mxu0 %vm5919_vm0, %v5918_v1 }
0x140f   : > { %5529 = vmatprep.subr.bf16.mxu0 %v5918_v1  ;;  %5551 = vmatprep.mubr.msk.bf16.mxu1 %vm5919_vm0, %v5918_v1 }
0x1412   : > { %5530 = vmatpush3.bf16.msra.mxu0 %v5800_v21  ;;  %v5806_v21 = vld [vmem:[%s5964_s3 + $0x50] sm:$0xff]  }
0x1413   : > { %5543 = vmatprep.subr.bf16.mxu0 %v5918_v1 }
0x1415   : > { %5532 = vmatmul.mubr.msk.bf16.vlgmr.msra.gmra.mxu0 %vm999_vm1, %v6364_v12 }
0x1416   : > { %5545 = vmatprep.mubr.msk.bf16.mxu0 %vm5919_vm0, %v5918_v1 }
0x14cd   : > { %v2809_v22 = vpop.f32.mrf.mxu0  ;;  %v2939_v23 = vpop.f32.mrf.mxu1 }
0x14ce   : > { %v2940_v24 = vadd.f32 %v5042_v5, %v2939_v23  ;;  %v2810_v6 = vadd.f32 %v5024_v41, %v2809_v22 }
0x14cf   : > { %v5525_v25 = vpop.f32.mrf.mxu0  ;;  %v5541_v26 = vpop.f32.mrf.mxu1 }
0x14d0   : > { %v3039_v61 = vpack.c.bf16 %v2940_v24, %v2940_v24  ;;  %v2945_v27 = vpack.c.bf16 %v2810_v6, %v2810_v6  ;;  %v5063_v25 = vld [vmem:[%s5979_s19 + $0x5] ss:$0 sm:$0xff] }
0x14d1   : > { %v2812_v13 = vpop.f32.mrf.mxu0  ;;  %v2942_v28 = vpop.f32.mrf.mxu1 }
0x14d2   : > { %v3044_v31 = vsel %vm1207_vm2, %v3039_v61, 0 }
0x14d3   : > { %v5526_v32 = vpop.f32.mrf.mxu0  ;;  %v5542_v33 = vpop.f32.mrf.mxu1  ;;  %5550 = vmatpush3.bf16.msra.mxu1 %v3044_v31 }
0x14d4   : > { %5563 = vmatprep.subr.bf16.mxu1 %v5918_v1  ;;  %v5054_v32 = vld [vmem:[%s5974_s14 + $0x5] ss:$0 sm:$0xff] }
0x14d5   : > { %v2874_v36 = vpop.f32.mrf.mxu0 }
0x14d6   : > { %v2875_v37 = vadd.f32 %v5033_v35, %v2874_v36 }
0x14d7   : > { %v5533_v38 = vpop.f32.mrf.mxu0 }
0x14d8   : > { %2946 = vxpose.xlu1.b32.start.end [1/1] (short) (narrow) %v2875_v37, 8 }
0x14d9   : > { %v2877_v39 = vpop.f32.mrf.mxu0 }
0x14db   : > { %v5534_v40 = vpop.f32.mrf.mxu0 }
0x1554   : > { %v2962_v42 = vpop.trf.xlu1 }
0x1555   : > { %v2978_v43 = vpack.c.bf16 %v2962_v42, %v2962_v42 }
0x1557   : > { %v2983_v44 = vsel %vm1207_vm2, %v2978_v43, 0 }
0x1558   : > { %5544 = vmatpush3.bf16.msra.mxu0 %v2983_v44 }
0x1559   : > { %5555 = vmatprep.subr.bf16.mxu0 %v5918_v1 }
0x155b   : > { %5546 = vmatmul.mubr.msk.bf16.vlgmr.msra.gmra.mxu0 %vm1203_vm3, %v2945_v27 }
0x155c   : > { %5556 = vmatpush3.bf16.msra.mxu0 %v5801_v45  ;;  %5559 = vmatprep.mubr.msk.bf16.mxu0 %vm5919_vm0, %v5918_v1 }
0x155d   : > { %5557 = vmatprep.subr.bf16.mxu0 %v5918_v1 }
0x1560   : > { %5558 = vmatpush3.bf16.msra.mxu0 %v5802_v46 }
0x1561   : > { %5571 = vmatprep.subr.bf16.mxu0 %v5918_v1 }
0x1563   : > { %5560 = vmatmul.mubr.msk.bf16.vlgmr.msra.gmra.mxu0 %vm999_vm1, %v6364_v12 }
0x1564   : > { %5572 = vmatpush3.bf16.msra.mxu0 %v5803_v47  ;;  %5575 = vmatprep.mubr.msk.bf16.mxu0 %vm5919_vm0, %v5918_v1 }
0x1565   : > { %5573 = vmatprep.subr.bf16.mxu0 %v5918_v1 }
0x1568   : > { %5574 = vmatpush3.bf16.msra.mxu0 %v5804_v48 }
0x1569   : > { %5585 = vmatprep.subr.bf16.mxu0 %v5918_v1 }
0x156b   : > { %5576 = vmatmul.mubr.msk.bf16.vlgmr.msra.gmra.mxu0 %vm999_vm1, %v6364_v12 }
0x156c   : > { %5587 = vmatprep.mubr.msk.bf16.mxu0 %vm5919_vm0, %v5918_v1 }
0x161b   : > { %v3019_v49 = vpop.f32.mrf.mxu0 }
0x161c   : > { %v3025_v50 = vmul.f32 0.35355338, %v3019_v49 }
0x161d   : > { %v5547_v51 = vpop.f32.mrf.mxu0 }
0x161e   : > { %v3026_v52 = vadd.f32 %v3025_v50, %v6141_v29  ;;  %v5048_v51 = vld [vmem:[%s5989_s30 + $0x10] sm:$0xf] }
0x161f   : > { %v3022_v53 = vpop.f32.mrf.mxu0 }
0x1620   : > { %v3027_v54 = vsel %vm1203_vm3, %v3026_v52, -inf  ;;  %v3478_v53 = vsel %vm1207_vm2, %v5048_v51, 0 }
0x1621   : > { %3028 = vmax.xlane.f32.xlu0 %v3027_v54  ;;  %v5548_v55 = vpop.f32.mrf.mxu0  ;;  %v5807_v54 = vld [vmem:[%s5964_s3 + $0x68] sm:$0xff]  }
0x1623   : > { %v3148_v56 = vpop.f32.mrf.mxu0 }
0x1624   : > { %v3149_v35 = vadd.f32 %v5054_v32, %v3148_v56  ;;  %v5808_v56 = vld [vmem:[%s5964_s3 + $0x60] sm:$0xff]  }
0x1625   : > { %v5561_v57 = vpop.f32.mrf.mxu0 }
0x1626   : > { %v3284_v38 = vpack.c.bf16 %v3149_v35, %v3149_v35  ;;  %v5078_v57 = vld [vmem:[%s5989_s30 + $0x14] sm:$0xf] }
0x1627   : > { %v3151_v58 = vpop.f32.mrf.mxu0 }
0x1628   : > { %v3432_v58 = vsel %vm1207_vm2, %v5078_v57, 0  ;;  %v5814_v57 = vld [vmem:[%s5959_s29 + $0x70] sm:$0xff]  }
0x1629   : > { %v5562_v59 = vpop.f32.mrf.mxu0 }
0x162b   : > { %v3278_v62 = vpop.f32.mrf.mxu0 }
0x162c   : > { %v3279_v63 = vadd.f32 %v5072_v60, %v3278_v62  ;;  %v5809_v60 = vld [vmem:[%s5959_s29 + $0x68] sm:$0xff]  }
0x162d   : > { %v5577_v0 = vpop.f32.mrf.mxu0 }
0x162e   : > { %v3378_v2 = vpack.c.bf16 %v3279_v63, %v3279_v63 }
0x162f   : > { %v3281_v3 = vpop.f32.mrf.mxu0 }
0x1630   : > { %v3383_v4 = vsel %vm1207_vm2, %v3378_v2, 0  ;;  %v5810_v2 = vld [vmem:[%s5959_s29 + $0x60] sm:$0xff]  }
0x1631   : > { %v5578_v7 = vpop.f32.mrf.mxu0  ;;  %5586 = vmatpush3.bf16.msra.mxu0 %v3383_v4 }
0x1632   : > { %5597 = vmatprep.subr.bf16.mxu0 %v5918_v1  ;;  %v5811_v7 = vld [vmem:[%s5969_s8 + $0x68] sm:$0xff]  }
0x16aa   : > { %v3029_v29 = vpop.xlane.xlu0 %3028 }
0x16ab   : > { %v3030_v8 = vsub.f32 %v3026_v52, %v3029_v29 }
0x16ad   : > { %v3031_v9 = vmul.f32 1.442695, %v3030_v8 }
0x16af   : > { %5851 = vpow2.f32 %v3031_v9  ;;  %v5812_v9 = vld [vmem:[%s5969_s8 + $0x60] sm:$0xff]  }
0x16bc   : > { %v5852_v10 = vpop.eup %5851 }
0x16bd   : > { %v3033_v11 = vsel %vm1203_vm3, %v5852_v10, 0.0 }
0x16be   : > { %3034 = vadd.xlane.f32.xlu0 %v3033_v11  ;;  %v5095_v11 = vld [vmem:[%s5979_s19 + $0x6] ss:$0 sm:$0xff] }
0x1747   : > { %v3035_v14 = vpop.xlane.xlu0 %3034 }
0x1748   : > { %5853 = vrcp.f32 %v3035_v14 }
0x1755   : > { %v5854_v15 = vpop.eup %5853 }
0x1756   : > { %v3037_v16 = vmul.f32 %v5854_v15, %v5852_v10 }
0x1758   : > { %v3038_v19 = vpack.c.bf16 %v3037_v16, %v3037_v16 }
0x175a   : > { %5552 = vmatmul.mubr.msk.bf16.vlgmr.msra.gmra.mxu1 %vm1203_vm3, %v3038_v19 }
0x175b   : > { %5564 = vmatpush3.bf16.msra.mxu1 %v5805_v17  ;;  %5567 = vmatprep.mubr.msk.bf16.mxu1 %vm5919_vm0, %v5918_v1 }
0x175c   : > { %5565 = vmatprep.subr.bf16.mxu1 %v5918_v1 }
0x175f   : > { %5566 = vmatpush3.bf16.msra.mxu1 %v5806_v21 }
0x1760   : > { %5579 = vmatprep.subr.bf16.mxu1 %v5918_v1 }
0x1762   : > { %5568 = vmatmul.mubr.msk.bf16.vlgmr.msra.gmra.mxu1 %vm999_vm1, %v6364_v12 }
0x1763   : > { %5581 = vmatprep.mubr.msk.bf16.mxu1 %vm5919_vm0, %v5918_v1 }
0x181a   : > { %v3080_v5 = vpop.f32.mrf.mxu1 }
0x181b   : > { %v3086_v55 = vpack.c.bf16 %v3080_v5, %v3080_v5 }
0x181c   : > { %v5553_v22 = vpop.f32.mrf.mxu1 }
0x181e   : > { %v3083_v23 = vpop.f32.mrf.mxu1 }
0x1820   : > { %v5554_v24 = vpop.f32.mrf.mxu1 }
0x1822   : > { %v3213_v26 = vpop.f32.mrf.mxu1 }
0x1823   : > { %v3214_v61 = vadd.f32 %v5063_v25, %v3213_v26 }
0x1824   : > { %v5569_v13 = vpop.f32.mrf.mxu1 }
0x1825   : > { %3285 = vxpose.xlu0.b32.start.end [1/1] (short) (narrow) %v3214_v61, 8  ;;  %v5086_v61 = vld [vmem:[%s5974_s14 + $0x6] ss:$0 sm:$0xff] }
0x1826   : > { %v3216_v28 = vpop.f32.mrf.mxu1 }
0x1828   : > { %v5570_v31 = vpop.f32.mrf.mxu1 }
0x18a1   : > { %v3301_v33 = vpop.trf.xlu0 }
0x18a2   : > { %v3317_v36 = vpack.c.bf16 %v3301_v33, %v3301_v33 }
0x18a4   : > { %v3322_v37 = vsel %vm1207_vm2, %v3317_v36, 0  ;;  %v5104_v36 = vld [vmem:[%s5984_s24 + $0x6] ss:$0 sm:$0xff] }
0x18a5   : > { %5580 = vmatpush3.bf16.msra.mxu1 %v3322_v37 }
0x18a6   : > { %5591 = vmatprep.subr.bf16.mxu1 %v5918_v1 }
0x18a8   : > { %5582 = vmatmul.mubr.msk.bf16.vlgmr.msra.gmra.mxu1 %vm1203_vm3, %v3284_v38 }
0x18a9   : > { %5593 = vmatprep.mubr.msk.bf16.mxu1 %vm5919_vm0, %v5918_v1  ;;  %5592 = vmatpush3.bf16.msra.mxu1 %v3432_v58  ;;  %v5815_v58 = vld [vmem:[%s5969_s8 + $0x78] sm:$0xff]  }
0x18aa   : > { %5603 = vmatprep.subr.bf16.mxu1 %v5918_v1 }
0x1968   : > { %v3358_v39 = vpop.f32.mrf.mxu1 }
0x1969   : > { %v3364_v40 = vmul.f32 0.35355338, %v3358_v39 }
0x196a   : > { %v5583_v41 = vpop.f32.mrf.mxu1 }
0x196b   : > { %v3365_v42 = vadd.f32 %v3364_v40, %v6187_v20 }
0x196c   : > { %v3361_v6 = vpop.f32.mrf.mxu1 }
0x196d   : > { %v3366_v43 = vsel %vm1203_vm3, %v3365_v42, -inf }
0x196e   : > { %3367 = vmax.xlane.f32.xlu1 %v3366_v43  ;;  %v5584_v44 = vpop.f32.mrf.mxu1 }
0x19f7   : > { %v3368_v45 = vpop.xlane.xlu1 %3367 }
0x19f8   : > { %v3369_v27 = vsub.f32 %v3365_v42, %v3368_v45 }
0x19fa   : > { %v3370_v46 = vmul.f32 1.442695, %v3369_v27 }
0x19fc   : > { %5855 = vpow2.f32 %v3370_v46 }
0x1a09   : > { %v5856_v47 = vpop.eup %5855 }
0x1a0a   : > { %v3372_v48 = vsel %vm1203_vm3, %v5856_v47, 0.0 }
0x1a0b   : > { %3373 = vadd.xlane.f32.xlu0 %v3372_v48 }
0x1a94   : > { %v3374_v49 = vpop.xlane.xlu0 %3373 }
0x1a95   : > { %5857 = vrcp.f32 %v3374_v49 }
0x1aa2   : > { %v5858_v50 = vpop.eup %5857 }
0x1aa3   : > { %v3376_v20 = vmul.f32 %v5858_v50, %v5856_v47 }
0x1aa5   : > { %v3377_v52 = vpack.c.bf16 %v3376_v20, %v3376_v20 }
0x1aa7   : > { %5588 = vmatmul.mubr.msk.bf16.vlgmr.msra.gmra.mxu0 %vm1203_vm3, %v3377_v52 }
0x1aa8   : > { %5598 = vmatpush3.bf16.msra.mxu0 %v3478_v53  ;;  %5599 = vmatprep.mubr.msk.bf16.mxu0 %vm5919_vm0, %v5918_v1 }
0x1aa9   : > { %5611 = vmatprep.subr.bf16.mxu0 %v5918_v1 }
0x1aaf   : > { %5600 = vmatmul.mubr.msk.bf16.vlgmr.msra.gmra.mxu0 %vm1203_vm3, %v3086_v55  ;;  %v5813_v55 = vld [vmem:[%s5959_s29 + $0x78] sm:$0xff]  }
0x1ab0   : > { %5612 = vmatpush3.bf16.msra.mxu0 %v5807_v54  ;;  %5615 = vmatprep.mubr.msk.bf16.mxu0 %vm5919_vm0, %v5918_v1 }
0x1ab1   : > { %5613 = vmatprep.subr.bf16.mxu0 %v5918_v1 }
0x1ab4   : > { %5614 = vmatpush3.bf16.msra.mxu0 %v5808_v56 }
0x1ab5   : > { %5627 = vmatprep.subr.bf16.mxu0 %v5918_v1 }
0x1ab7   : > { %5616 = vmatmul.mubr.msk.bf16.vlgmr.msra.gmra.mxu0 %vm999_vm1, %v6364_v12 }
0x1ab8   : > { %5629 = vmatprep.mubr.msk.bf16.mxu0 %vm5919_vm0, %v5918_v1 }
0x1b67   : > { %v3419_v59 = vpop.f32.mrf.mxu0 }
0x1b68   : > { %v3425_v62 = vpack.c.bf16 %v3419_v59, %v3419_v59  ;;  %v5816_v59 = vld [vmem:[%s5969_s8 + $0x70] sm:$0xff]  }
0x1b69   : > { %v5589_v63 = vpop.f32.mrf.mxu0 }
0x1b6a   : > { %5594 = vmatmul.mubr.msk.bf16.vlgmr.msra.gmra.mxu1 %vm1203_vm3, %v3425_v62 }
0x1b6b   : > { %v3422_v0 = vpop.f32.mrf.mxu0  ;;  %5604 = vmatpush3.bf16.msra.mxu1 %v5809_v60  ;;  %5607 = vmatprep.mubr.msk.bf16.mxu1 %vm5919_vm0, %v5918_v1  ;;  %v5110_v60 = vld [vmem:[%s5989_s30 + $0x18] sm:$0xf] }
0x1b6c   : > { %5605 = vmatprep.subr.bf16.mxu1 %v5918_v1  ;;  %v3863_v62 = vsel %vm1207_vm2, %v5110_v60, 0  ;;  %v5817_v0 = vld [vmem:[%s5964_s3 + $0x78] sm:$0xff]  }
0x1b6d   : > { %v5590_v3 = vpop.f32.mrf.mxu0 }
0x1b6f   : > { %v6460_v4 = vpop.f32.mrf.mxu0  ;;  %5606 = vmatpush3.bf16.msra.mxu1 %v5810_v2 }
0x1b70   : > { %5619 = vmatprep.subr.bf16.mxu1 %v5918_v1 }
0x1b71   : > { %v5601_v29 = vpop.f32.mrf.mxu0 }
0x1b72   : > { %5608 = vmatmul.mubr.msk.bf16.vlgmr.msra.gmra.mxu1 %vm999_vm1, %v6364_v12  ;;  %v5818_v29 = vld [vmem:[%s5964_s3 + $0x70] sm:$0xff]  }
0x1b73   : > { %v3517_v8 = vpop.f32.mrf.mxu0  ;;  %5620 = vmatpush3.bf16.msra.mxu1 %v5811_v7  ;;  %5623 = vmatprep.mubr.msk.bf16.mxu1 %vm5919_vm0, %v5918_v1 }
0x1b74   : > { %5621 = vmatprep.subr.bf16.mxu1 %v5918_v1 }
0x1b75   : > { %v5602_v10 = vpop.f32.mrf.mxu0 }
0x1b77   : > { %v3644_v14 = vpop.f32.mrf.mxu0  ;;  %5622 = vmatpush3.bf16.msra.mxu1 %v5812_v9 }
0x1b78   : > { %v3645_v15 = vadd.f32 %v5095_v11, %v3644_v14  ;;  %5633 = vmatprep.subr.bf16.mxu1 %v5918_v1 }
0x1b79   : > { %v5617_v16 = vpop.f32.mrf.mxu0 }
0x1b7a   : > { %5624 = vmatmul.mubr.msk.bf16.vlgmr.msra.gmra.mxu1 %vm999_vm1, %v6364_v12  ;;  %3716 = vxpose.xlu1.b32.start.end [1/1] (short) (narrow) %v3645_v15, 8  ;;  %v5135_v15 = vld [vmem:[%s5984_s24 + $0x7] ss:$0 sm:$0xff] }
0x1b7b   : > { %v3647_v17 = vpop.f32.mrf.mxu0  ;;  %5635 = vmatprep.mubr.msk.bf16.mxu1 %vm5919_vm0, %v5918_v1 }
0x1b7d   : > { %v5618_v19 = vpop.f32.mrf.mxu0 }
0x1bf6   : > { %v3732_v21 = vpop.trf.xlu1 }
0x1bf7   : > { %v3748_v5 = vpack.c.bf16 %v3732_v21, %v3732_v21 }
0x1bf9   : > { %v3753_v22 = vsel %vm1207_vm2, %v3748_v5, 0 }
0x1bfa   : > { %5628 = vmatpush3.bf16.msra.mxu0 %v3753_v22 }
0x1bfb   : > { %5639 = vmatprep.subr.bf16.mxu0 %v5918_v1 }
0x1c2a   : > { %v6478_v23 = vpop.f32.mrf.mxu1 }
0x1c2c   : > { %v5595_v24 = vpop.f32.mrf.mxu1 }
0x1c2e   : > { %v3471_v25 = vpop.f32.mrf.mxu1 }
0x1c30   : > { %v5596_v26 = vpop.f32.mrf.mxu1 }
0x1c32   : > { %v3579_v13 = vpop.f32.mrf.mxu1 }
0x1c33   : > { %v3580_v28 = vadd.f32 %v5086_v61, %v3579_v13 }
0x1c34   : > { %v5609_v31 = vpop.f32.mrf.mxu1 }
0x1c35   : > { %v3715_v32 = vpack.c.bf16 %v3580_v28, %v3580_v28  ;;  %v5126_v31 = vld [vmem:[%s5979_s19 + $0x7] ss:$0 sm:$0xff] }
0x1c36   : > { %v3582_v33 = vpop.f32.mrf.mxu1 }
0x1c37   : > { %5630 = vmatmul.mubr.msk.bf16.vlgmr.msra.gmra.mxu0 %vm1203_vm3, %v3715_v32 }
0x1c38   : > { %v5610_v35 = vpop.f32.mrf.mxu1  ;;  %5641 = vmatprep.mubr.msk.bf16.mxu0 %vm5919_vm0, %v5918_v1  ;;  %5640 = vmatpush3.bf16.msra.mxu0 %v3863_v62  ;;  %v5144_v62 = vld [vmem:[%s5994_s6 + $0x1] ss:$0 sm:$0xff] }
0x1c39   : > { %5653 = vmatprep.subr.bf16.mxu0 %v5918_v1 }
0x1c3a   : > { %v3709_v37 = vpop.f32.mrf.mxu1 }
0x1c3b   : > { %v3710_v38 = vadd.f32 %v5104_v36, %v3709_v37 }
0x1c3c   : > { %v5625_v39 = vpop.f32.mrf.mxu1 }
0x1c3d   : > { %v3809_v40 = vpack.c.bf16 %v3710_v38, %v3710_v38  ;;  %v5117_v38 = vld [vmem:[%s5974_s14 + $0x7] ss:$0 sm:$0xff] }
0x1c3e   : > { %v3712_v41 = vpop.f32.mrf.mxu1 }
0x1c3f   : > { %v3814_v42 = vsel %vm1207_vm2, %v3809_v40, 0 }
0x1c40   : > { %v5626_v6 = vpop.f32.mrf.mxu1  ;;  %5634 = vmatpush3.bf16.msra.mxu1 %v3814_v42 }
0x1c41   : > { %5645 = vmatprep.subr.bf16.mxu1 %v5918_v1 }
0x1cf7   : > { %v3789_v43 = vpop.f32.mrf.mxu0 }
0x1cf8   : > { %v3795_v44 = vmul.f32 0.35355338, %v3789_v43 }
0x1cf9   : > { %v5631_v45 = vpop.f32.mrf.mxu0 }
0x1cfa   : > { %v3796_v27 = vadd.f32 %v3795_v44, %v6249_v30 }
0x1cfb   : > { %v3792_v46 = vpop.f32.mrf.mxu0 }
0x1cfc   : > { %v3797_v47 = vsel %vm1203_vm3, %v3796_v27, -inf }
0x1cfd   : > { %3798 = vmax.xlane.f32.xlu0 %v3797_v47  ;;  %v5632_v48 = vpop.f32.mrf.mxu0 }
0x1d86   : > { %v3799_v49 = vpop.xlane.xlu0 %3798 }
0x1d87   : > { %v3800_v50 = vsub.f32 %v3796_v27, %v3799_v49 }
0x1d89   : > { %v3801_v51 = vmul.f32 1.442695, %v3800_v50 }
0x1d8b   : > { %5859 = vpow2.f32 %v3801_v51 }
0x1d98   : > { %v5860_v20 = vpop.eup %5859 }
0x1d99   : > { %v3803_v52 = vsel %vm1203_vm3, %v5860_v20, 0.0 }
0x1d9a   : > { %3804 = vadd.xlane.f32.xlu0 %v3803_v52 }
0x1e23   : > { %v3805_v53 = vpop.xlane.xlu0 %3804 }
0x1e24   : > { %5861 = vrcp.f32 %v3805_v53 }
0x1e31   : > { %v5862_v30 = vpop.eup %5861 }
0x1e32   : > { %v3807_v54 = vmul.f32 %v5862_v30, %v5860_v20  ;;  %v5141_v30 = vld [vmem:[%s5989_s30 + $0x1c] sm:$0xf] }
0x1e34   : > { %v3808_v56 = vpack.c.bf16 %v3807_v54, %v3807_v54  ;;  %v4249_v54 = vsel %vm1207_vm2, %v5141_v30, 0 }
0x1e36   : > { %5636 = vmatmul.mubr.msk.bf16.vlgmr.msra.gmra.mxu1 %vm1203_vm3, %v3808_v56 }
0x1e37   : > { %5646 = vmatpush3.bf16.msra.mxu1 %v5813_v55  ;;  %5649 = vmatprep.mubr.msk.bf16.mxu1 %vm5919_vm0, %v5918_v1 }
0x1e38   : > { %5647 = vmatprep.subr.bf16.mxu1 %v5918_v1 }
0x1e3b   : > { %5648 = vmatpush3.bf16.msra.mxu1 %v5814_v57 }
0x1e3c   : > { %5661 = vmatprep.subr.bf16.mxu1 %v5918_v1 }
0x1e3e   : > { %5650 = vmatmul.mubr.msk.bf16.vlgmr.msra.gmra.mxu1 %vm999_vm1, %v6364_v12 }
0x1e3f   : > { %5662 = vmatpush3.bf16.msra.mxu1 %v5815_v58  ;;  %5665 = vmatprep.mubr.msk.bf16.mxu1 %vm5919_vm0, %v5918_v1 }
0x1e40   : > { %5663 = vmatprep.subr.bf16.mxu1 %v5918_v1 }
0x1e43   : > { %5664 = vmatpush3.bf16.msra.mxu1 %v5816_v59 }
0x1e44   : > { %5675 = vmatprep.subr.bf16.mxu1 %v5918_v1 }
0x1e46   : > { %5666 = vmatmul.mubr.msk.bf16.vlgmr.msra.gmra.mxu1 %vm999_vm1, %v6364_v12 }
0x1e47   : > { %5677 = vmatprep.mubr.msk.bf16.mxu1 %vm5919_vm0, %v5918_v1 }
0x1ef6   : > { %v3850_v63 = vpop.f32.mrf.mxu1 }
0x1ef7   : > { %v3856_v2 = vpack.c.bf16 %v3850_v63, %v3850_v63 }
0x1ef8   : > { %v5637_v3 = vpop.f32.mrf.mxu1 }
0x1ef9   : > { %5642 = vmatmul.mubr.msk.bf16.vlgmr.msra.gmra.mxu0 %vm1203_vm3, %v3856_v2 }
0x1efa   : > { %v3853_v7 = vpop.f32.mrf.mxu1  ;;  %5654 = vmatpush3.bf16.msra.mxu0 %v5817_v0  ;;  %5657 = vmatprep.mubr.msk.bf16.mxu0 %vm5919_vm0, %v5918_v1 }
0x1efb   : > { %5655 = vmatprep.subr.bf16.mxu0 %v5918_v1 }
0x1efc   : > { %v5638_v8 = vpop.f32.mrf.mxu1 }
0x1efe   : > { %v3965_v9 = vpop.f32.mrf.mxu1  ;;  %5656 = vmatpush3.bf16.msra.mxu0 %v5818_v29 }
0x1eff   : > { %5669 = vmatprep.subr.bf16.mxu0 %v5918_v1  ;;  %v3966_v40 = vadd.f32 %v5117_v38, %v3965_v9 }
0x1f00   : > { %v5651_v10 = vpop.f32.mrf.mxu1 }
0x1f01   : > { %5658 = vmatmul.mubr.msk.bf16.vlgmr.msra.gmra.mxu0 %vm999_vm1, %v6364_v12  ;;  %v3515_v12 = vadd.f32 %v6460_v4, %v6478_v23  ;;  %v4101_v4 = vpack.c.bf16 %v3966_v40, %v3966_v40 }
0x1f02   : > { %v3968_v11 = vpop.f32.mrf.mxu1  ;;  %5671 = vmatprep.mubr.msk.bf16.mxu0 %vm5919_vm0, %v5918_v1 }
0x1f04   : > { %v5652_v14 = vpop.f32.mrf.mxu1 }
0x1f06   : > { %v4095_v16 = vpop.f32.mrf.mxu1 }
0x1f07   : > { %v4096_v17 = vadd.f32 %v5135_v15, %v4095_v16  ;;  %v5819_v16 = vld [vmem:[%s6009_s27 + $0x18] sm:$0xff]  }
0x1f08   : > { %v5667_v19 = vpop.f32.mrf.mxu1 }
0x1f09   : > { %v4195_v21 = vpack.c.bf16 %v4096_v17, %v4096_v17  ;;  %v5820_v17 = vld [vmem:[%s6009_s27 + $0x10] sm:$0xff]  }
0x1f0a   : > { %v4098_v5 = vpop.f32.mrf.mxu1 }
0x1f0b   : > { %v4200_v22 = vsel %vm1207_vm2, %v4195_v21, 0 }
0x1f0c   : > { %v5668_v24 = vpop.f32.mrf.mxu1  ;;  %5676 = vmatpush3.bf16.msra.mxu1 %v4200_v22  ;;  %v5146_v22 = vld [vmem:[%s5999_s12 + $0x1] ss:$0 sm:$0xff] }
0x1f0d   : > { %5687 = vmatprep.subr.bf16.mxu1 %v5918_v1 }
0x1fb9   : > { %v3899_v25 = vpop.f32.mrf.mxu0 }
0x1fba   : > { %v3905_v26 = vadd.f32 %v3899_v25, %v3515_v12  ;;  %v5148_v12 = vld [vmem:[%s6626_s16 + $0x1] ss:$0 sm:$0xff] }
0x1fbb   : > { %v5643_v61 = vpop.f32.mrf.mxu0 }
0x1fbd   : > { %v3902_v13 = vpop.f32.mrf.mxu0 }
0x1fbe   : > { %v5821_v13 = vld [vmem:[%s6627_s18 + $0x38] sm:$0xff]  }
0x1fbf   : > { %v5644_v28 = vpop.f32.mrf.mxu0 }
0x1fc0   : > { %v5822_v28 = vld [vmem:[%s6627_s18 + $0x30] sm:$0xff]  }
0x1fc1   : > { %v4030_v32 = vpop.f32.mrf.mxu0 }
0x1fc2   : > { %v4031_v33 = vadd.f32 %v5126_v31, %v4030_v32  ;;  %v5823_v31 = vld [vmem:[%s6627_s18 + $0x28] sm:$0xff]   ;;  %v5824_v32 = vld [vmem:[%s6627_s18 + $0x20] sm:$0xff]  }
0x1fc3   : > { %v5659_v35 = vpop.f32.mrf.mxu0 }
0x1fc4   : > { %4102 = vxpose.xlu0.b32.start.end [1/1] (short) (narrow) %v4031_v33, 8  ;;  %v5154_v33 = vld [vmem:[%s6628_s22 + $0x1] ss:$0 sm:$0xff] }
0x1fc5   : > { %v4033_v36 = vpop.f32.mrf.mxu0 }
0x1fc7   : > { %v5660_v37 = vpop.f32.mrf.mxu0 }
0x2040   : > { %v4118_v39 = vpop.trf.xlu0 }
0x2041   : > { %v4134_v41 = vpack.c.bf16 %v4118_v39, %v4118_v39 }
0x2043   : > { %v4139_v42 = vsel %vm1207_vm2, %v4134_v41, 0 }
0x2044   : > { %5670 = vmatpush3.bf16.msra.mxu0 %v4139_v42 }
0x2045   : > { %5681 = vmatprep.subr.bf16.mxu0 %v5918_v1 }
0x2047   : > { %5672 = vmatmul.mubr.msk.bf16.vlgmr.msra.gmra.mxu0 %vm1203_vm3, %v4101_v4 }
0x2048   : > { %5683 = vmatprep.mubr.msk.bf16.mxu0 %vm5919_vm0, %v5918_v1  ;;  %5682 = vmatpush3.bf16.msra.mxu0 %v4249_v54 }
0x2049   : > { %5695 = vmatprep.subr.bf16.mxu0 %v5918_v1 }
0x2107   : > { %v4175_v23 = vpop.f32.mrf.mxu0 }
0x2108   : > { %v4181_v6 = vmul.f32 0.35355338, %v4175_v23 }
0x2109   : > { %v5673_v43 = vpop.f32.mrf.mxu0 }
0x210a   : > { %v4182_v44 = vadd.f32 %v4181_v6, %v6303_v34 }
0x210b   : > { %v4178_v45 = vpop.f32.mrf.mxu0 }
0x210c   : > { %v4183_v27 = vsel %vm1203_vm3, %v4182_v44, -inf }
0x210d   : > { %4184 = vmax.xlane.f32.xlu1 %v4183_v27  ;;  %v5674_v46 = vpop.f32.mrf.mxu0 }
0x210e   : > { %v5167_v46 = vld [vmem:[%s6629_s23 + $0x1] ss:$0 sm:$0xff] }
0x2196   : > { %v4185_v47 = vpop.xlane.xlu1 %4184 }
0x2197   : > { %v4186_v48 = vsub.f32 %v4182_v44, %v4185_v47 }
0x2199   : > { %v4187_v49 = vmul.f32 1.442695, %v4186_v48 }
0x219b   : > { %5863 = vpow2.f32 %v4187_v49 }
0x21a8   : > { %v5864_v50 = vpop.eup %5863 }
0x21a9   : > { %v4189_v51 = vsel %vm1203_vm3, %v5864_v50, 0.0 }
0x21aa   : > { %4190 = vadd.xlane.f32.xlu1 %v4189_v51 }
0x2233   : > { %v4191_v20 = vpop.xlane.xlu1 %4190 }
0x2234   : > { %5865 = vrcp.f32 %v4191_v20 }
0x2241   : > { %v5866_v52 = vpop.eup %5865 }
0x2242   : > { %v4193_v53 = vmul.f32 %v5866_v52, %v5864_v50 }
0x2244   : > { %v4194_v34 = vpack.c.bf16 %v4193_v53, %v4193_v53 }
0x2246   : > { %5678 = vmatmul.mubr.msk.bf16.vlgmr.msra.gmra.mxu1 %vm1203_vm3, %v4194_v34 }
0x2247   : > { %5691 = vmatprep.mubr.msk.bf16.mxu1 %vm5919_vm0, %v5918_v1  ;;  %5688 = vmatpush3.bf16.msra.mxu1 %v5819_v16 }
0x2248   : > { %5689 = vmatprep.subr.bf16.mxu1 %v5918_v1 }
0x224b   : > { %5690 = vmatpush3.bf16.msra.mxu1 %v5820_v17 }
0x224c   : > { %5707 = vmatprep.subr.bf16.mxu1 %v5918_v1 }
0x2306   : > { %v4236_v55 = vpop.f32.mrf.mxu1 }
0x2307   : > { %v4242_v56 = vpack.c.bf16 %v4236_v55, %v4236_v55 }
0x2308   : > { %v5679_v57 = vpop.f32.mrf.mxu1 }
0x2309   : > { %5684 = vmatmul.mubr.msk.bf16.vlgmr.msra.gmra.mxu0 %vm1203_vm3, %v4242_v56  ;;  %v5825_v56 = vld [vmem:[%s6632_s1 + $0x8] sm:$0xff]   ;;  %v5826_v57 = vld [vmem:[%s6632_s1] sm:$0xff]  }
0x230a   : > { %v4239_v58 = vpop.f32.mrf.mxu1  ;;  %5703 = vmatprep.mubr.msk.bf16.mxu0 %vm5919_vm0, %v5918_v1  ;;  %5696 = vmatpush3.bf16.msra.mxu0 %v5821_v13 }
0x230b   : > { %5697 = vmatprep.subr.bf16.mxu0 %v5918_v1 }
0x230c   : > { %v5680_v59 = vpop.f32.mrf.mxu1 }
0x230e   : > { %5698 = vmatpush3.bf16.msra.mxu0 %v5822_v28 }
0x230f   : > { %5699 = vmatprep.subr.bf16.mxu0 %v5918_v1 }
0x2312   : > { %5700 = vmatpush3.bf16.msra.mxu0 %v5823_v31 }
0x2313   : > { %5701 = vmatprep.subr.bf16.mxu0 %v5918_v1 }
0x2316   : > { %5702 = vmatpush3.bf16.msra.mxu0 %v5824_v32  ;;  %v5827_v32 = vld [vmem:[%s6059_s25 + $0x8] sm:$0xff]  }
0x23c9   : > { %v4285_v60 = vpop.f32.mrf.mxu0 }
0x23ca   : > { %v4291_v63 = vadd.f32 %v4285_v60, %v3905_v26 }
0x23cb   : > { %v5685_v0 = vpop.f32.mrf.mxu0 }
0x23cc   : > { %v4300_v2 = vadd.f32 %v5144_v62, %v4291_v63  ;;  %v5174_v63 = vld [vmem:[%s6630_s26 + $0x1] ss:$0 sm:$0xff] }
0x23cd   : > { %v4288_v3 = vpop.f32.mrf.mxu0 }
0x23ce   : > { %v4301_v7 = vadd.f32 %v4300_v2, %v6359_v18  ;;  %v5176_v2 = vld [vmem:[%s6631_s28 + $0x1] ss:$0 sm:$0xff] }
0x23cf   : > { %v5686_v29 = vpop.f32.mrf.mxu0 }
0x23d0   : > { %v4302_v8 = vsel %vm999_vm1, %v4301_v7, 0.0 }
0x23d1   : > { %4303 = vadd.xlane.f32.xlu0 %v4302_v8  ;;  %v5177_v8 = vld [vmem:[%s6633_s2] ss:$0 sm:$0xff]  ;;  %s6636_s2 = sld [smem:[#allocation2_spill]] }
0x245a   : > { %v4304_v9 = vpop.xlane.xlu0 %4303 }
0x245b   : > { %v4305_v10 = vmul.f32 0.03125, %v4304_v9 }
0x245d   : > { %v4306_v11 = vsub.f32 %v4301_v7, %v4305_v10 }
0x245f   : > { %v4307_v14 = vmul.f32 %v4306_v11, %v4306_v11 }
0x2461   : > { %v4308_v15 = vsel %vm999_vm1, %v4307_v14, 0.0 }
0x2462   : > { %4309 = vadd.xlane.f32.xlu1 %v4308_v15 }
0x24eb   : > { %v4310_v18 = vpop.xlane.xlu1 %4309 }
0x24ec   : > { %v4311_v19 = vmul.f32 0.03125, %v4310_v18 }
0x24ee   : > { %v4312_v21 = vadd.f32 1e-06, %v4311_v19 }
0x24f0   : > { %5867 = vrsqrt.f32 %v4312_v21 }
0x24fd   : > { %v5868_v5 = vpop.eup %5867 }
0x24fe   : > { %v4314_v24 = vmul.f32 %v5868_v5, %v4306_v11 }
0x2500   : > { %v4323_v25 = vmul.f32 %v5146_v22, %v4314_v24 }
0x2502   : > { %v4332_v26 = vadd.f32 %v5148_v12, %v4323_v25 }
0x2504   : > { %v4333_v61 = vpack.c.bf16 %v4332_v26, %v4332_v26 }
0x2506   : > { %5692 = vmatmul.mubr.msk.bf16.vlgmr.msra.gmra.mxu1 %vm999_vm1, %v4333_v61 }
0x2507   : > { %5711 = vmatprep.mubr.msk.bf16.mxu1 %vm5919_vm0, %v5918_v1  ;;  %5708 = vmatpush3.bf16.msra.mxu1 %v5825_v56 }
0x2508   : > { %5709 = vmatprep.subr.bf16.mxu1 %v5918_v1 }
0x250b   : > { %5710 = vmatpush3.bf16.msra.mxu1 %v5826_v57 }
0x250c   : > { %5715 = vmatprep.subr.bf16.mxu1 %v5918_v1 }
0x25c6   : > { %v4396_v35 = vpop.f32.mrf.mxu1 }
0x25c7   : > { %v4397_v36 = vadd.f32 %v5154_v33, %v4396_v35  ;;  %v5828_v33 = vld [vmem:[%s6059_s25] sm:$0xff]  }
0x25c8   : > { %v5693_v37 = vpop.f32.mrf.mxu1 }
0x25c9   : > { %v4403_v38 = vmul.f32 0.044715, %v4397_v36  ;;  %v4402_v43 = vmul.f32 0.5, %v4397_v36 }
0x25ca   : > { %v4399_v39 = vpop.f32.mrf.mxu1 }
0x25cb   : > { %v4404_v40 = vmul.f32 %v4403_v38, %v4397_v36  ;;  %v5181_v39 = vld [vmem:[%s6634_s11] ss:$0 sm:$0xff]  ;;  %s942_s11 = scalar_lea.vmem %s6636_s2, %s6098_s0 }
0x25cc   : > { %v5694_v41 = vpop.f32.mrf.mxu1 }
0x25cd   : > { %v4405_v42 = vmul.f32 %v4404_v40, %v4397_v36  ;;  %v5182_v41 = vld [vmem:[%s6635_s15] ss:$0 sm:$0xff]  ;;  %s6637_s15 = sld [smem:[#allocation3_spill]] }
0x25cf   : > { %v4406_v4 = vadd.f32 %v4405_v42, %v4397_v36 }
0x25d1   : > { %v4407_v23 = vmul.f32 0.7978846, %v4406_v4 }
0x25d3   : > { %5869 = vtanh.f32 %v4407_v23  ;;  %s946_s2 = scalar_lea.vmem %s6637_s15, %s6098_s0  ;;  %s952_s0 = scalar_lea.vmem %s6074_s4, %s6639_s10 }
0x25e0   : > { %v5870_v6 = vpop.eup %5869 }
0x25e1   : > { %v4409_v44 = vadd.f32 1.0, %v5870_v6  ;;  %v5183_v6 = vld [vmem:[%s6064_s21] ss:$0 sm:$0xff] }
0x25e3   : > { %v4410_v45 = vmul.f32 %v4409_v44, %v4402_v43 }
0x25e5   : > { %v4411_v27 = vpack.c.bf16 %v4410_v45, %v4410_v45 }
0x25e7   : > { %5704 = vmatmul.mubr.msk.bf16.vlgmr.msra.gmra.mxu0 %vm2672_vm4, %v4411_v27 }
0x26a7   : > { %v4490_v47 = vpop.f32.mrf.mxu0 }
0x26a8   : > { %v4491_v48 = vadd.f32 %v5167_v46, %v4490_v47  ;;  %v5920_v47 = vmov 0  }
0x26a9   : > { %v5705_v49 = vpop.f32.mrf.mxu0  ;;  %5763 = vset.pattern.permute.xlu1 %v5920_v47  ;;  %5764 = vset.pattern.permute.xlu0 %v5920_v47 }
0x26aa   : > { %v4496_v50 = vadd.f32 %v4491_v48, %v4332_v26 }
0x26ab   : > { %v4493_v51 = vpop.f32.mrf.mxu0 }
0x26ac   : > { %v4497_v20 = vsel %vm999_vm1, %v4496_v50, 0.0 }
0x26ad   : > { %4498 = vadd.xlane.f32.xlu1 %v4497_v20  ;;  %v5706_v52 = vpop.f32.mrf.mxu0 }
0x26ae   : > { %v4713_v52 = vld [vmem:[%s942_s11] sm:$0xff]  ;;  %s949_s11 = scalar_lea.vmem %s6069_s20, %s6639_s10 }
0x2736   : > { %v4499_v53 = vpop.xlane.xlu1 %4498 }
0x2737   : > { %v4500_v34 = vmul.f32 0.03125, %v4499_v53 }
0x2739   : > { %v4501_v30 = vsub.f32 %v4496_v50, %v4500_v34  ;;  %v4715_v34 = vlaneseq }
0x273b   : > { %v4502_v54 = vmul.f32 %v4501_v30, %v4501_v30 }
0x273d   : > { %v4503_v55 = vsel %vm999_vm1, %v4502_v54, 0.0  ;;  %v4716_v54 = vand.u32 127, %v4715_v34 }
0x273e   : > { %4504 = vadd.xlane.f32.xlu1 %v4503_v55 }
0x27c7   : > { %v4505_v58 = vpop.xlane.xlu1 %4504 }
0x27c8   : > { %v4506_v59 = vmul.f32 0.03125, %v4505_v58 }
0x27ca   : > { %v4507_v60 = vadd.f32 1e-06, %v4506_v59 }
0x27cc   : > { %5871 = vrsqrt.f32 %v4507_v60 }
0x27d9   : > { %v5872_v62 = vpop.eup %5871 }
0x27da   : > { %v4509_v0 = vmul.f32 %v5872_v62, %v4501_v30 }
0x27dc   : > { %v4518_v3 = vmul.f32 %v5174_v63, %v4509_v0  ;;  %v4714_v63 = vld [vmem:[%s946_s2] sm:$0xff] }
0x27de   : > { %v4527_v7 = vadd.f32 %v5176_v2, %v4518_v3 }
0x27e0   : > { %v4528_v29 = vpack.c.bf16 %v4527_v7, %v4527_v7 }
0x27e2   : > { %5712 = vmatmul.mubr.msk.bf16.vlgmr.msra.gmra.mxu1 %vm999_vm1, %v4528_v29 }
0x27e3   : > { %5719 = vmatprep.mubr.msk.bf16.mxu1 %vm5919_vm0, %v5918_v1  ;;  %5716 = vmatpush3.bf16.msra.mxu1 %v5827_v32 }
0x27e4   : > { %5717 = vmatprep.subr.bf16.mxu1 %v5918_v1 }
0x27e7   : > { %5718 = vmatpush3.bf16.msra.mxu1 %v5828_v33 }
0x28a2   : > { %v4589_v9 = vpop.f32.mrf.mxu1 }
0x28a3   : > { %v4590_v10 = vadd.f32 %v5177_v8, %v4589_v9 }
0x28a4   : > { %v5713_v11 = vpop.f32.mrf.mxu1 }
0x28a5   : > { %v4596_v14 = vmul.f32 0.044715, %v4590_v10  ;;  %v4595_v22 = vmul.f32 0.5, %v4590_v10 }
0x28a6   : > { %v4592_v15 = vpop.f32.mrf.mxu1 }
0x28a7   : > { %v4597_v16 = vmul.f32 %v4596_v14, %v4590_v10 }
0x28a8   : > { %v5714_v17 = vpop.f32.mrf.mxu1 }
0x28a9   : > { %v4598_v18 = vmul.f32 %v4597_v16, %v4590_v10 }
0x28ab   : > { %v4599_v19 = vadd.f32 %v4598_v18, %v4590_v10 }
0x28ad   : > { %v4600_v21 = vmul.f32 0.7978846, %v4599_v19 }
0x28af   : > { %5873 = vtanh.f32 %v4600_v21 }
0x28bc   : > { %v5874_v5 = vpop.eup %5873 }
0x28bd   : > { %v4602_v24 = vadd.f32 1.0, %v5874_v5 }
0x28bf   : > { %v4603_v12 = vmul.f32 %v4602_v24, %v4595_v22 }
0x28c1   : > { %v4604_v25 = vsel %vm999_vm1, %v4603_v12, 0.0 }
0x28c2   : > { %4605 = vadd.xlane.f32.xlu1 %v4604_v25 }
0x294b   : > { %v4606_v26 = vpop.xlane.xlu1 %4605 }
0x294c   : > { %v4607_v61 = vmul.f32 0.03125, %v4606_v26 }
0x294e   : > { %v4608_v13 = vsub.f32 %v4603_v12, %v4607_v61 }
0x2950   : > { %v4609_v28 = vmul.f32 %v4608_v13, %v4608_v13 }
0x2952   : > { %v4610_v31 = vsel %vm999_vm1, %v4609_v28, 0.0 }
0x2953   : > { %4611 = vadd.xlane.f32.xlu1 %v4610_v31 }
0x29dc   : > { %v4612_v35 = vpop.xlane.xlu1 %4611 }
0x29dd   : > { %v4613_v36 = vmul.f32 0.03125, %v4612_v35 }
0x29df   : > { %v4614_v37 = vadd.f32 1e-06, %v4613_v36 }
0x29e1   : > { %5875 = vrsqrt.f32 %v4614_v37 }
0x29ee   : > { %v5876_v38 = vpop.eup %5875 }
0x29ef   : > { %v4616_v40 = vmul.f32 %v5876_v38, %v4608_v13 }
0x29f1   : > { %v4624_v42 = vmul.f32 %v5181_v39, %v4616_v40 }
0x29f3   : > { %v4632_v4 = vadd.f32 %v5182_v41, %v4624_v42 }
0x29f5   : > { %v4633_v23 = vpack.c.bf16 %v4632_v4, %v4632_v4 }
0x29f7   : > { %5720 = vmatmul.mubr.msk.bf16.vlgmr.msra.gmra.mxu1 %vm999_vm1, %v4633_v23 }
0x2ab7   : > { %v4694_v43 = vpop.f32.mrf.mxu1 }
0x2ab8   : > { %v4695_v44 = vadd.f32 %v5183_v6, %v4694_v43 }
0x2ab9   : > { %v5721_v1 = vpop.f32.mrf.mxu1 }
0x2aba   : > { %v4700_v45 = vsel %vm2672_vm4, %v4695_v44, -inf }
0x2abb   : > { %4701 = vmax.xlane.f32.xlu1 %v4700_v45  ;;  %v4697_v27 = vpop.f32.mrf.mxu1 }
0x2abd   : > { %v5722_v46 = vpop.f32.mrf.mxu1 }
0x2b44   : > { %v4702_v48 = vpop.xlane.xlu1 %4701 }
0x2b45   : > { %v4703_v49 = vsub.f32 %v4695_v44, %v4702_v48 }
0x2b47   : > { %v4704_v50 = vmul.f32 1.442695, %v4703_v49 }
0x2b49   : > { %5877 = vpow2.f32 %v4704_v50 }
0x2b56   : > { %v5878_v51 = vpop.eup %5877 }
0x2b57   : > { %v4706_v20 = vsel %vm2672_vm4, %v5878_v51, 0.0 }
0x2b58   : > { %4707 = vadd.xlane.f32.xlu1 %v4706_v20 }
0x2b69   : > { %4718 = vperm.xlu1 %5763, %v4713_v52  }
0x2be1   : > { %v4708_v53 = vpop.xlane.xlu1 %4707 }
0x2be2   : > { %5879 = vlog2.f32 %v4708_v53 }
0x2be5   : > { %v4719_v56 = vpop.permute.xlu1 %4718 }
0x2be6   : > { %vm4720_vm5 = vcmp.eq.s32.totalorder %v4716_v54, %v4719_v56 }
0x2bef   : > { %v5880_v30 = vpop.eup %5879 }
0x2bf0   : > { %v4710_v55 = vmul.f32 0.6931472, %v5880_v30 }
0x2bf2   : > { %v4711_v57 = vadd.f32 %v4710_v55, %v4702_v48 }
0x2bf4   : > { %v4712_v58 = vsub.f32 %v4695_v44, %v4711_v57 }
0x2bf6   : > { %v4737_v59 = vsel %vm2672_vm4, %v4712_v58, 0.0  ;;  %v4721_v60 = vsel %vm4720_vm5, %v4712_v58, 0.0 }
0x2bf7   : > { %4738 = vadd.xlane.f32.xlu1 %v4737_v59  ;;  %v4722_v62 = vsel %vm2672_vm4, %v4721_v60, 0.0 }
0x2bf8   : > { %4723 = vadd.xlane.f32.xlu0 %v4722_v62 }
0x2c80   : > { %v4739_v0 = vpop.xlane.xlu1 %4738 }
0x2c81   : > { %v4740_v2 = vmul.f32 %v4739_v0, %v4714_v63  ;;  %v4724_v3 = vpop.xlane.xlu0 %4723 }
0x2c82   : > { %v4725_v7 = vmul.f32 %v4724_v3, %v4714_v63 }
0x2c83   : > { %v4741_v29 = vsel %vm4726_vm6, %v4740_v2, 0.0 }
0x2c84   : > { %v4742_v8 = vrot.slane %v4741_v29, 4  ;;  %v4727_v9 = vsel %vm4726_vm6, %v4725_v7, 0.0 }
0x2c85   : > { %v4728_v10 = vrot.slane %v4727_v9, 4 }
0x2c86   : > { %v4743_v11 = vadd.f32 %v4742_v8, %v4741_v29 }
0x2c87   : > { %v4729_v14 = vadd.f32 %v4728_v10, %v4727_v9 }
0x2c88   : > { %v4744_v15 = vrot.slane %v4743_v11, 2 }
0x2c89   : > { %v4730_v16 = vrot.slane %v4729_v14, 2 }
0x2c8a   : > { %v4745_v17 = vadd.f32 %v4744_v15, %v4743_v11 }
0x2c8b   : > { %v4731_v18 = vadd.f32 %v4730_v16, %v4729_v14 }
0x2c8c   : > { %v4746_v19 = vrot.slane %v4745_v17, 1 }
0x2c8d   : > { %v4732_v21 = vrot.slane %v4731_v18, 1 }
0x2c8e   : > { %v4747_v5 = vadd.f32 %v4746_v19, %v4745_v17 }
0x2c8f   : > { %v4733_v22 = vadd.f32 %v4732_v21, %v4731_v18 }
0x2c90   : > { %v4748_v24 = vsub.f32 0.0, %v4747_v5 }
0x2c91   : > { %v4734_v12 = vsub.f32 0.0, %v4733_v22 }
0x2c92   : > { %4749 = vst.msk [vmem:[%s952_s0] sm:$0x1] %vm4735_vm7, %v4748_v24 }
0x2c93   : > { %4736 = vst.msk [vmem:[%s949_s11] sm:$0x1] %vm4735_vm7, %v4734_v12 }
0x2c94 PF: > { %s70_s7 = sadd.s32 1, %s5887_s7  }
0x2c95   : > { %p67_p4 = scmp.ge.s32.totalorder %s70_s7, 4  }
0x2c97   :  { %69 = sbr.rel (!%p67_p4) target bundleno = 45 (0x2d), region = 273 }

</bundles_post_ra>
